<compile_context>
chip_gen: v6e
topology: v6e:2x2x1
jax: 0.10.0
libtpu: 0.0.40
codegen_flags: <defaults>
</compile_context>

<pallas_src>
import jax
import jax.numpy as jnp
from jax import lax
from jax.experimental import pallas as pl
from jax.experimental.pallas import tpu as pltpu

HIDDEN = 32          # hidden_dim
NUM_SEEDS = 32       # granularity='atom' keeps num_seeds
NUM_HEADS = 8
HEAD_DIM = HIDDEN // NUM_HEADS


# --------------------------------------------------------------------------
# Kernel factory: each grid step handles G graphs (E_TILE padded edges each).
# --------------------------------------------------------------------------
def _make_attn_pool_kernel(G, E_TILE):

    def kernel(counts_ref,          # SMEM [B_pad] int32 (scalar prefetch)
               qh_ref,              # [NH*S, H] bf16 resident (pre-scaled, head-blocked Q)
               feat_ref,            # [G*E_TILE, H] bf16: this step's graphs' raw edge feats
               wk_ref, wv_ref,      # [H, H] bf16 resident
               wo_blk_ref,          # [NH, H, H] bf16 resident (head-masked Wo^T)
               bo_ref,              # [1, H] f32
               out_ref):            # [1, S, G*H] f32 (lane-dense slab)
        step = pl.program_id(0)
        qh = qh_ref[...]                                     # [NH*S, H]
        feat = feat_ref[...]                                 # [G*E_TILE, H]

        # In-kernel K/V projection for all G graphs at once (review #7).
        k_all = jnp.dot(feat, wk_ref[...],
                        preferred_element_type=jnp.float32).astype(jnp.bfloat16)
        v_all = jnp.dot(feat, wv_ref[...],
                        preferred_element_type=jnp.float32).astype(jnp.bfloat16)

        wo_blk = wo_blk_ref[...]                             # [NH, H, H] bf16
        bo = bo_ref[...]                                     # [1, H] f32
        edge_ids = lax.broadcasted_iota(jnp.int32, (1, E_TILE), 1)  # hoisted once

        # Unrolled over G graphs; iterations are independent -> MXU pipelines.
        for g in range(G):
            n_valid = counts_ref[step * G + g]               # real (non-pad) edges
            k_g = k_all[g * E_TILE:(g + 1) * E_TILE, :]      # [E_TILE, H] bf16
            v_g = v_all[g * E_TILE:(g + 1) * E_TILE, :]      # [E_TILE, H] bf16

            # All 8 heads' scores in ONE MXU matmul: [NH*S, E_TILE].
            s_g = lax.dot_general(qh, k_g, (((1,), (1,)), ((), ())),
                                  preferred_element_type=jnp.float32)
            # Only the padded tail needs masking (no foreign edges in this tile).
            s_g = jnp.where(edge_ids < n_valid, s_g, jnp.float32(-1e30))

            m = jnp.max(s_g, axis=-1, keepdims=True)
            p = jnp.exp(s_g - m)
            denom = jnp.sum(p, axis=-1, keepdims=True)

            # Unnormalized PV matmul, then deferred normalization on the EUP slot.
            pv = jnp.dot(p.astype(jnp.bfloat16), v_g,
                         preferred_element_type=jnp.float32)             # [NH*S, H]
            pv = pv * pl.reciprocal(denom, approx=True)

            # Head recombination folded into the out-projection (review #5):
            # batched dot over NH against the head-masked Wo, then sum over NH.
            pv3 = pv.reshape(NUM_HEADS, NUM_SEEDS, HIDDEN).astype(jnp.bfloat16)
            pooled_h = lax.dot_general(pv3, wo_blk,
                                       (((2,), (1,)), ((0,), (0,))),
                                       preferred_element_type=jnp.float32)  # [NH,S,H]
            pooled = jnp.sum(pooled_h, axis=0) + bo                          # [S, H]

            # Pack graph g into its lane slice of the [S, G*H] slab.
            out_ref[0, :, g * HIDDEN:(g + 1) * HIDDEN] = pooled

    return kernel


# --------------------------------------------------------------------------
# Wrapper
# --------------------------------------------------------------------------
def multi_granularity_global_pooling(edge_features, edge_coords, batch, params,
                                     num_graphs, max_edges_per_graph,
                                     graphs_per_step=4):
    # edge_coords is unused by the reference forward pass.
    del edge_coords
    E, H = edge_features.shape
    S = params["seed_vectors"].shape[0]
    B = int(num_graphs)
    G = int(graphs_per_step)          # G*H == 128 -> lane-dense output slab
    batch_i32 = batch.astype(jnp.int32)

    # ---- tiny prologue: Q projection + head blocking + head-masked Wo ------
    scale = 1.0 / (HEAD_DIM ** 0.5)
    q = params["seed_vectors"] @ params["wq_t"]                           # [S, H]
    dim_ids = jnp.arange(H, dtype=jnp.int32)
    head_masks = ((dim_ids[None, :] // HEAD_DIM)
                  == jnp.arange(NUM_HEADS, dtype=jnp.int32)[:, None])     # [NH, H]
    qh = (q[None] * head_masks.astype(q.dtype)[:, None, :] * scale
          ).reshape(NUM_HEADS * S, H).astype(jnp.bfloat16)                # [NH*S, H]
    wo_blk = (head_masks.astype(jnp.float32)[:, :, None]
              * params["wo_t"][None, :, :]).astype(jnp.bfloat16)          # [NH, H, H]

    # ---- per-graph slicing: sort by graph id + pad to static tile ----------
    # TODO(synk): if max_edges_per_graph < the true per-graph max, edges are
    # silently truncated; callers must pass an upper bound.
    e_tile = max(16, ((int(max_edges_per_graph) + 15) // 16) * 16)        # bf16-friendly
    counts = jnp.bincount(batch_i32, length=B).astype(jnp.int32)          # [B]
    offsets = jnp.concatenate([jnp.zeros((1,), jnp.int32),
                               jnp.cumsum(counts)[:-1].astype(jnp.int32)])
    order = jnp.argsort(batch_i32)                                        # handles unsorted batch
    pos = offsets[:, None] + jnp.arange(e_tile, dtype=jnp.int32)[None, :] # [B, e_tile]
    gidx = order[jnp.minimum(pos, E - 1)]                                 # clip padded tail
    feat_pad = edge_features[gidx].astype(jnp.bfloat16)                   # [B, e_tile, H]

    num_steps = -(-B // G)
    B_pad = num_steps * G
    if B_pad > B:
        feat_pad = jnp.concatenate(
            [feat_pad, jnp.zeros((B_pad - B, e_tile, H), jnp.bfloat16)], axis=0)
        counts = jnp.concatenate(
            [counts, jnp.zeros((B_pad - B,), jnp.int32)], axis=0)
    feat_pad = feat_pad.reshape(B_pad * e_tile, H)

    # TODO(synk): the reference skips graphs with zero edges (dynamic output
    # length); here every graph id in [0, num_graphs) must have >= 1 edge.
    # TODO(synk): for very large graphs add an inner 'arbitrary' grid axis over
    # e_tile chunks with an online (flash-style) softmax to bound the
    # [NH*S, e_tile] score state (matters earliest on v7x/v5e scoped VMEM).

    kernel = _make_attn_pool_kernel(G, e_tile)
    pooled_slab = pl.pallas_call(
        kernel,
        out_shape=jax.ShapeDtypeStruct((num_steps, S, G * H), jnp.float32),
        grid_spec=pltpu.PrefetchScalarGridSpec(
            num_scalar_prefetch=1,                    # counts -> SMEM
            grid=(num_steps,),
            in_specs=[
                pl.BlockSpec((NUM_HEADS * S, H), lambda i, c: (0, 0)),    # Qh (resident)
                pl.BlockSpec((G * e_tile, H), lambda i, c: (i, 0)),       # this step's feats
                pl.BlockSpec((H, H), lambda i, c: (0, 0)),                # Wk^T
                pl.BlockSpec((H, H), lambda i, c: (0, 0)),                # Wv^T
                pl.BlockSpec((NUM_HEADS, H, H), lambda i, c: (0, 0, 0)),  # head-masked Wo^T
                pl.BlockSpec((1, H), lambda i, c: (0, 0)),                # bo
            ],
            out_specs=pl.BlockSpec((1, S, G * H), lambda i, c: (i, 0, 0)),
        ),
        compiler_params=pltpu.CompilerParams(
            dimension_semantics=("parallel",)),       # both v7x TCs get steps
    )(counts, qh, feat_pad,
      params["wk_t"].astype(jnp.bfloat16), params["wv_t"].astype(jnp.bfloat16),
      wo_blk, params["bo"])

    # ---- epilogue: un-pack slab + final MLP as ONE batched XLA matmul ------
    pooled = (pooled_slab.reshape(num_steps, S, G, H)
              .transpose(0, 2, 1, 3).reshape(B_pad, S * H))[:B]           # [B, S*H]
    h1 = pooled @ params["w1_t"] + params["b1"]                           # [B, H]
    h1 = h1 * jax.nn.sigmoid(h1)                                          # SiLU
    return h1 @ params["w2_t"] + params["b2"]                             # [B, H]


# --------------------------------------------------------------------------
# Deterministic parameter init (shapes follow the module's __init__)
# --------------------------------------------------------------------------
def init_params(key, hidden=HIDDEN, num_seeds=NUM_SEEDS):
    ks = jax.random.split(key, 10)
    scale = 1.0 / jnp.sqrt(float(hidden))
    seed_vectors = jax.random.normal(ks[0], (num_seeds, hidden), jnp.float32)
    wq = jax.random.normal(ks[1], (hidden, hidden), jnp.float32) * scale
    wk = jax.random.normal(ks[2], (hidden, hidden), jnp.float32) * scale
    wv = jax.random.normal(ks[3], (hidden, hidden), jnp.float32) * scale
    wo = jax.random.normal(ks[4], (hidden, hidden), jnp.float32) * scale
    bo = jax.random.normal(ks[5], (hidden,), jnp.float32) * 0.01
    w1 = (jax.random.normal(ks[6], (hidden, hidden * num_seeds), jnp.float32)
          / jnp.sqrt(float(hidden * num_seeds)))
    b1 = jax.random.normal(ks[7], (hidden,), jnp.float32) * 0.01
    w2 = jax.random.normal(ks[8], (hidden, hidden), jnp.float32) * scale
    b2 = jax.random.normal(ks[9], (hidden,), jnp.float32) * 0.01
    return {
        "seed_vectors": seed_vectors,
        "wq_t": wq.T, "wk_t": wk.T, "wv_t": wv.T,
        "wo_t": wo.T, "bo": bo.reshape(1, hidden),
        "w1_t": w1.T, "b1": b1.reshape(1, hidden),
        "w2_t": w2.T, "b2": b2.reshape(1, hidden),
    }


# --------------------------------------------------------------------------
# Pure-JAX reference (mirrors the PyTorch forward)
# --------------------------------------------------------------------------
def reference(edge_features, batch, params, num_graphs):
    S, H = params["seed_vectors"].shape
    nh, hd = NUM_HEADS, HEAD_DIM
    outs = []
    for b in range(num_graphs):
        feats = edge_features[batch == b]
        q = (params["seed_vectors"] @ params["wq_t"]).reshape(S, nh, hd)
        k = (feats @ params["wk_t"]).reshape(-1, nh, hd)
        v = (feats @ params["wv_t"]).reshape(-1, nh, hd)
        scores = jnp.einsum("qhd,khd->hqk", q, k) / (hd ** 0.5)
        w = jax.nn.softmax(scores, axis=-1)
        att = jnp.einsum("hqk,khd->qhd", w, v).reshape(S, H)
        out = att @ params["wo_t"] + params["bo"][0]
        flat = out.reshape(-1)
        h1 = jax.nn.silu(flat @ params["w1_t"] + params["b1"][0])
        outs.append(h1 @ params["w2_t"] + params["b2"][0])
    return jnp.stack(outs)


if __name__ == "__main__":
    key = jax.random.PRNGKey(0)
    kf, kc, kp = jax.random.split(key, 3)

    # 8 ragged graphs -> with graphs_per_step=4 the grid has 2 steps (v7x 2-TC).
    counts_py = [8, 5, 8, 3, 8, 7, 6, 8]
    B = len(counts_py)
    E = sum(counts_py)

    edge_features = jax.random.normal(kf, (E, HIDDEN), jnp.float32)
    edge_coords = jax.random.normal(kc, (E, 3), jnp.float32)   # unused by forward
    batch = jnp.repeat(jnp.arange(B, dtype=jnp.int32),
                       jnp.array(counts_py, dtype=jnp.int32),
                       total_repeat_length=E)

    params = init_params(kp)

    out = multi_granularity_global_pooling(edge_features, edge_coords, batch,
                                           params, B,
                                           max_edges_per_graph=max(counts_py),
                                           graphs_per_step=4)
    out = jax.block_until_ready(out)

    ref = reference(edge_features, batch, params, B)
    assert out.shape == (B, HIDDEN), out.shape
    assert bool(jnp.all(jnp.isfinite(out)))
    assert bool(jnp.allclose(out, ref, atol=5e-2, rtol=5e-2)), (
        float(jnp.max(jnp.abs(out - ref))))

    print("KERNEL_OK")
</pallas_src>

<mosaic_0001>
module attributes {stable_mosaic.version = 11 : i64} {
  func.func @kernel(%arg0: i32, %arg1: memref<8xi32, #tpu.memory_space<smem>>, %arg2: memref<256x32xbf16, #tpu.memory_space<vmem>>, %arg3: memref<64x32xbf16, #tpu.memory_space<vmem>>, %arg4: memref<32x32xbf16, #tpu.memory_space<vmem>>, %arg5: memref<32x32xbf16, #tpu.memory_space<vmem>>, %arg6: memref<8x32x32xbf16, #tpu.memory_space<vmem>>, %arg7: memref<1x32xf32, #tpu.memory_space<vmem>>, %arg8: memref<1x32x128xf32, #tpu.memory_space<vmem>>) attributes {dimension_semantics = [#tpu.dimension_semantics<parallel>], iteration_bounds = array<i64: 2>, scalar_prefetch = 1 : i64, scratch_operands = 0 : i64, tpu.core_type = #tpu.core_type<tc>, window_params = [{pipeline_mode = #tpu.pipeline_mode<synchronous>, transform_indices = @transform_0, window_bounds = array<i64: 256, 32>}, {transform_indices = @transform_1, window_bounds = array<i64: 64, 32>}, {pipeline_mode = #tpu.pipeline_mode<synchronous>, transform_indices = @transform_2, window_bounds = array<i64: 32, 32>}, {pipeline_mode = #tpu.pipeline_mode<synchronous>, transform_indices = @transform_3, window_bounds = array<i64: 32, 32>}, {pipeline_mode = #tpu.pipeline_mode<synchronous>, transform_indices = @transform_4, window_bounds = array<i64: 8, 32, 32>}, {pipeline_mode = #tpu.pipeline_mode<synchronous>, transform_indices = @transform_5, window_bounds = array<i64: 1, 32>}, {transform_indices = @transform_6, window_bounds = array<i64: 1, 32, 128>}]} {
    %c0 = arith.constant 0 : index
    %c0_0 = arith.constant 0 : index
    %0 = vector.load %arg2[%c0, %c0_0] : memref<256x32xbf16, #tpu.memory_space<vmem>>, vector<256x32xbf16>
    %c0_1 = arith.constant 0 : index
    %c0_2 = arith.constant 0 : index
    %1 = vector.load %arg3[%c0_1, %c0_2] : memref<64x32xbf16, #tpu.memory_space<vmem>>, vector<64x32xbf16>
    %c0_3 = arith.constant 0 : index
    %c0_4 = arith.constant 0 : index
    %2 = vector.load %arg4[%c0_3, %c0_4] : memref<32x32xbf16, #tpu.memory_space<vmem>>, vector<32x32xbf16>
    %cst = arith.constant dense<0.000000e+00> : vector<64x32xf32>
    %3 = tpu.matmul %1, %2, %cst {dimension_numbers = #tpu.dot_dimension_numbers<[1], [0], [0], [1], [0, 0, 1, 1], [], []>} : vector<64x32xbf16>, vector<32x32xbf16>, vector<64x32xf32> -> vector<64x32xf32>
    %4 = arith.truncf %3 : vector<64x32xf32> to vector<64x32xbf16>
    %c0_5 = arith.constant 0 : index
    %c0_6 = arith.constant 0 : index
    %5 = vector.load %arg5[%c0_5, %c0_6] : memref<32x32xbf16, #tpu.memory_space<vmem>>, vector<32x32xbf16>
    %cst_7 = arith.constant dense<0.000000e+00> : vector<64x32xf32>
    %6 = tpu.matmul %1, %5, %cst_7 {dimension_numbers = #tpu.dot_dimension_numbers<[1], [0], [0], [1], [0, 0, 1, 1], [], []>} : vector<64x32xbf16>, vector<32x32xbf16>, vector<64x32xf32> -> vector<64x32xf32>
    %7 = arith.truncf %6 : vector<64x32xf32> to vector<64x32xbf16>
    %c0_8 = arith.constant 0 : index
    %c0_9 = arith.constant 0 : index
    %c0_10 = arith.constant 0 : index
    %8 = vector.load %arg6[%c0_8, %c0_9, %c0_10] : memref<8x32x32xbf16, #tpu.memory_space<vmem>>, vector<8x32x32xbf16>
    %c0_11 = arith.constant 0 : index
    %c0_12 = arith.constant 0 : index
    %9 = vector.load %arg7[%c0_11, %c0_12] : memref<1x32xf32, #tpu.memory_space<vmem>>, vector<1x32xf32>
    %10 = tpu.iota {dimensions = array<i32: 1>} : vector<1x16xi32>
    %c4_i32 = arith.constant 4 : i32
    %11 = arith.muli %arg0, %c4_i32 : i32
    %c0_i32 = arith.constant 0 : i32
    %12 = arith.addi %11, %c0_i32 : i32
    %13 = arith.index_cast %12 : i32 to index
    %14 = memref.load %arg1[%13] : memref<8xi32, #tpu.memory_space<smem>>
    %15 = vector.extract_strided_slice %4 {offsets = [0, 0], sizes = [16, 32], strides = [1, 1]} : vector<64x32xbf16> to vector<16x32xbf16>
    %16 = vector.extract_strided_slice %7 {offsets = [0, 0], sizes = [16, 32], strides = [1, 1]} : vector<64x32xbf16> to vector<16x32xbf16>
    %cst_13 = arith.constant dense<0.000000e+00> : vector<256x16xf32>
    %17 = tpu.matmul %0, %15, %cst_13 {dimension_numbers = #tpu.dot_dimension_numbers<[1], [1], [0], [0], [0, 0, 1, 0], [], []>} : vector<256x32xbf16>, vector<16x32xbf16>, vector<256x16xf32> -> vector<256x16xf32>
    %18 = vector.broadcast %14 : i32 to vector<1x16xi32>
    %19 = arith.cmpi slt, %10, %18 : vector<1x16xi32>
    %cst_14 = arith.constant -1.000000e+30 : f32
    %20 = vector.shape_cast %19 : vector<1x16xi1> to vector<1x16xi1>
    %21 = vector.broadcast %20 : vector<1x16xi1> to vector<256x16xi1>
    %22 = vector.broadcast %cst_14 : f32 to vector<256x16xf32>
    %23 = arith.select %21, %17, %22 : vector<256x16xi1>, vector<256x16xf32>
    %cst_15 = arith.constant dense<0xFF800000> : vector<256xf32>
    %24 = vector.multi_reduction <maximumf>, %23, %cst_15 [1] : vector<256x16xf32> to vector<256xf32>
    %25 = vector.shape_cast %24 : vector<256xf32> to vector<256x1xf32>
    %26 = vector.broadcast %25 : vector<256x1xf32> to vector<256x16xf32>
    %27 = arith.subf %23, %26 : vector<256x16xf32>
    %28 = math.exp %27 : vector<256x16xf32>
    %cst_16 = arith.constant dense<0.000000e+00> : vector<256xf32>
    %29 = vector.multi_reduction <add>, %28, %cst_16 [1] : vector<256x16xf32> to vector<256xf32>
    %30 = vector.shape_cast %29 : vector<256xf32> to vector<256x1xf32>
    %31 = arith.truncf %28 : vector<256x16xf32> to vector<256x16xbf16>
    %cst_17 = arith.constant dense<0.000000e+00> : vector<256x32xf32>
    %32 = tpu.matmul %31, %16, %cst_17 {dimension_numbers = #tpu.dot_dimension_numbers<[1], [0], [0], [1], [0, 0, 1, 1], [], []>} : vector<256x16xbf16>, vector<16x32xbf16>, vector<256x32xf32> -> vector<256x32xf32>
    %33 = tpu.reciprocal %30 {approx = true} : vector<256x1xf32> -> vector<256x1xf32>
    %34 = vector.broadcast %33 : vector<256x1xf32> to vector<256x32xf32>
    %35 = arith.mulf %32, %34 : vector<256x32xf32>
    %36 = vector.shape_cast %35 : vector<256x32xf32> to vector<8x32x32xf32>
    %37 = arith.truncf %36 : vector<8x32x32xf32> to vector<8x32x32xbf16>
    %cst_18 = arith.constant dense<0.000000e+00> : vector<8x32x32xf32>
    %38 = tpu.matmul %37, %8, %cst_18 {dimension_numbers = #tpu.dot_dimension_numbers<[2], [1], [1], [2], [0, 0, 0, 1, 1, 2], [0], [0]>} : vector<8x32x32xbf16>, vector<8x32x32xbf16>, vector<8x32x32xf32> -> vector<8x32x32xf32>
    %cst_19 = arith.constant dense<0.000000e+00> : vector<32x32xf32>
    %39 = vector.multi_reduction <add>, %38, %cst_19 [0] : vector<8x32x32xf32> to vector<32x32xf32>
    %40 = vector.broadcast %9 : vector<1x32xf32> to vector<32x32xf32>
    %41 = arith.addf %39, %40 : vector<32x32xf32>
    %c0_20 = arith.constant 0 : index
    %c0_21 = arith.constant 0 : index
    %c0_22 = arith.constant 0 : index
    %42 = vector.load %arg8[%c0_20, %c0_21, %c0_22] : memref<1x32x128xf32, #tpu.memory_space<vmem>>, vector<1x32x32xf32>
    %43 = vector.shape_cast %42 : vector<1x32x32xf32> to vector<32x32xf32>
    %44 = vector.shape_cast %41 : vector<32x32xf32> to vector<1x32x32xf32>
    tpu.vector_store %arg8[%c0_20, %c0_21, %c0_22], %44 {strides = array<i32>} : memref<1x32x128xf32, #tpu.memory_space<vmem>>, vector<1x32x32xf32>,
    %c4_i32_23 = arith.constant 4 : i32
    %45 = arith.muli %arg0, %c4_i32_23 : i32
    %c1_i32 = arith.constant 1 : i32
    %46 = arith.addi %45, %c1_i32 : i32
    %47 = arith.index_cast %46 : i32 to index
    %48 = memref.load %arg1[%47] : memref<8xi32, #tpu.memory_space<smem>>
    %49 = vector.extract_strided_slice %4 {offsets = [16, 0], sizes = [16, 32], strides = [1, 1]} : vector<64x32xbf16> to vector<16x32xbf16>
    %50 = vector.extract_strided_slice %7 {offsets = [16, 0], sizes = [16, 32], strides = [1, 1]} : vector<64x32xbf16> to vector<16x32xbf16>
    %cst_24 = arith.constant dense<0.000000e+00> : vector<256x16xf32>
    %51 = tpu.matmul %0, %49, %cst_24 {dimension_numbers = #tpu.dot_dimension_numbers<[1], [1], [0], [0], [0, 0, 1, 0], [], []>} : vector<256x32xbf16>, vector<16x32xbf16>, vector<256x16xf32> -> vector<256x16xf32>
    %52 = vector.broadcast %48 : i32 to vector<1x16xi32>
    %53 = arith.cmpi slt, %10, %52 : vector<1x16xi32>
    %cst_25 = arith.constant -1.000000e+30 : f32
    %54 = vector.shape_cast %53 : vector<1x16xi1> to vector<1x16xi1>
    %55 = vector.broadcast %54 : vector<1x16xi1> to vector<256x16xi1>
    %56 = vector.broadcast %cst_25 : f32 to vector<256x16xf32>
    %57 = arith.select %55, %51, %56 : vector<256x16xi1>, vector<256x16xf32>
    %cst_26 = arith.constant dense<0xFF800000> : vector<256xf32>
    %58 = vector.multi_reduction <maximumf>, %57, %cst_26 [1] : vector<256x16xf32> to vector<256xf32>
    %59 = vector.shape_cast %58 : vector<256xf32> to vector<256x1xf32>
    %60 = vector.broadcast %59 : vector<256x1xf32> to vector<256x16xf32>
    %61 = arith.subf %57, %60 : vector<256x16xf32>
    %62 = math.exp %61 : vector<256x16xf32>
    %cst_27 = arith.constant dense<0.000000e+00> : vector<256xf32>
    %63 = vector.multi_reduction <add>, %62, %cst_27 [1] : vector<256x16xf32> to vector<256xf32>
    %64 = vector.shape_cast %63 : vector<256xf32> to vector<256x1xf32>
    %65 = arith.truncf %62 : vector<256x16xf32> to vector<256x16xbf16>
    %cst_28 = arith.constant dense<0.000000e+00> : vector<256x32xf32>
    %66 = tpu.matmul %65, %50, %cst_28 {dimension_numbers = #tpu.dot_dimension_numbers<[1], [0], [0], [1], [0, 0, 1, 1], [], []>} : vector<256x16xbf16>, vector<16x32xbf16>, vector<256x32xf32> -> vector<256x32xf32>
    %67 = tpu.reciprocal %64 {approx = true} : vector<256x1xf32> -> vector<256x1xf32>
    %68 = vector.broadcast %67 : vector<256x1xf32> to vector<256x32xf32>
    %69 = arith.mulf %66, %68 : vector<256x32xf32>
    %70 = vector.shape_cast %69 : vector<256x32xf32> to vector<8x32x32xf32>
    %71 = arith.truncf %70 : vector<8x32x32xf32> to vector<8x32x32xbf16>
    %cst_29 = arith.constant dense<0.000000e+00> : vector<8x32x32xf32>
    %72 = tpu.matmul %71, %8, %cst_29 {dimension_numbers = #tpu.dot_dimension_numbers<[2], [1], [1], [2], [0, 0, 0, 1, 1, 2], [0], [0]>} : vector<8x32x32xbf16>, vector<8x32x32xbf16>, vector<8x32x32xf32> -> vector<8x32x32xf32>
    %cst_30 = arith.constant dense<0.000000e+00> : vector<32x32xf32>
    %73 = vector.multi_reduction <add>, %72, %cst_30 [0] : vector<8x32x32xf32> to vector<32x32xf32>
    %74 = vector.broadcast %9 : vector<1x32xf32> to vector<32x32xf32>
    %75 = arith.addf %73, %74 : vector<32x32xf32>
    %c0_31 = arith.constant 0 : index
    %c0_32 = arith.constant 0 : index
    %c32 = arith.constant 32 : index
    %76 = vector.load %arg8[%c0_31, %c0_32, %c32] : memref<1x32x128xf32, #tpu.memory_space<vmem>>, vector<1x32x32xf32>
    %77 = vector.shape_cast %76 : vector<1x32x32xf32> to vector<32x32xf32>
    %78 = vector.shape_cast %75 : vector<32x32xf32> to vector<1x32x32xf32>
    tpu.vector_store %arg8[%c0_31, %c0_32, %c32], %78 {strides = array<i32>} : memref<1x32x128xf32, #tpu.memory_space<vmem>>, vector<1x32x32xf32>,
    %c4_i32_33 = arith.constant 4 : i32
    %79 = arith.muli %arg0, %c4_i32_33 : i32
    %c2_i32 = arith.constant 2 : i32
    %80 = arith.addi %79, %c2_i32 : i32
    %81 = arith.index_cast %80 : i32 to index
    %82 = memref.load %arg1[%81] : memref<8xi32, #tpu.memory_space<smem>>
    %83 = vector.extract_strided_slice %4 {offsets = [32, 0], sizes = [16, 32], strides = [1, 1]} : vector<64x32xbf16> to vector<16x32xbf16>
    %84 = vector.extract_strided_slice %7 {offsets = [32, 0], sizes = [16, 32], strides = [1, 1]} : vector<64x32xbf16> to vector<16x32xbf16>
    %cst_34 = arith.constant dense<0.000000e+00> : vector<256x16xf32>
    %85 = tpu.matmul %0, %83, %cst_34 {dimension_numbers = #tpu.dot_dimension_numbers<[1], [1], [0], [0], [0, 0, 1, 0], [], []>} : vector<256x32xbf16>, vector<16x32xbf16>, vector<256x16xf32> -> vector<256x16xf32>
    %86 = vector.broadcast %82 : i32 to vector<1x16xi32>
    %87 = arith.cmpi slt, %10, %86 : vector<1x16xi32>
    %cst_35 = arith.constant -1.000000e+30 : f32
    %88 = vector.shape_cast %87 : vector<1x16xi1> to vector<1x16xi1>
    %89 = vector.broadcast %88 : vector<1x16xi1> to vector<256x16xi1>
    %90 = vector.broadcast %cst_35 : f32 to vector<256x16xf32>
    %91 = arith.select %89, %85, %90 : vector<256x16xi1>, vector<256x16xf32>
    %cst_36 = arith.constant dense<0xFF800000> : vector<256xf32>
    %92 = vector.multi_reduction <maximumf>, %91, %cst_36 [1] : vector<256x16xf32> to vector<256xf32>
    %93 = vector.shape_cast %92 : vector<256xf32> to vector<256x1xf32>
    %94 = vector.broadcast %93 : vector<256x1xf32> to vector<256x16xf32>
    %95 = arith.subf %91, %94 : vector<256x16xf32>
    %96 = math.exp %95 : vector<256x16xf32>
    %cst_37 = arith.constant dense<0.000000e+00> : vector<256xf32>
    %97 = vector.multi_reduction <add>, %96, %cst_37 [1] : vector<256x16xf32> to vector<256xf32>
    %98 = vector.shape_cast %97 : vector<256xf32> to vector<256x1xf32>
    %99 = arith.truncf %96 : vector<256x16xf32> to vector<256x16xbf16>
    %cst_38 = arith.constant dense<0.000000e+00> : vector<256x32xf32>
    %100 = tpu.matmul %99, %84, %cst_38 {dimension_numbers = #tpu.dot_dimension_numbers<[1], [0], [0], [1], [0, 0, 1, 1], [], []>} : vector<256x16xbf16>, vector<16x32xbf16>, vector<256x32xf32> -> vector<256x32xf32>
    %101 = tpu.reciprocal %98 {approx = true} : vector<256x1xf32> -> vector<256x1xf32>
    %102 = vector.broadcast %101 : vector<256x1xf32> to vector<256x32xf32>
    %103 = arith.mulf %100, %102 : vector<256x32xf32>
    %104 = vector.shape_cast %103 : vector<256x32xf32> to vector<8x32x32xf32>
    %105 = arith.truncf %104 : vector<8x32x32xf32> to vector<8x32x32xbf16>
    %cst_39 = arith.constant dense<0.000000e+00> : vector<8x32x32xf32>
    %106 = tpu.matmul %105, %8, %cst_39 {dimension_numbers = #tpu.dot_dimension_numbers<[2], [1], [1], [2], [0, 0, 0, 1, 1, 2], [0], [0]>} : vector<8x32x32xbf16>, vector<8x32x32xbf16>, vector<8x32x32xf32> -> vector<8x32x32xf32>
    %cst_40 = arith.constant dense<0.000000e+00> : vector<32x32xf32>
    %107 = vector.multi_reduction <add>, %106, %cst_40 [0] : vector<8x32x32xf32> to vector<32x32xf32>
    %108 = vector.broadcast %9 : vector<1x32xf32> to vector<32x32xf32>
    %109 = arith.addf %107, %108 : vector<32x32xf32>
    %c0_41 = arith.constant 0 : index
    %c0_42 = arith.constant 0 : index
    %c64 = arith.constant 64 : index
    %110 = vector.load %arg8[%c0_41, %c0_42, %c64] : memref<1x32x128xf32, #tpu.memory_space<vmem>>, vector<1x32x32xf32>
    %111 = vector.shape_cast %110 : vector<1x32x32xf32> to vector<32x32xf32>
    %112 = vector.shape_cast %109 : vector<32x32xf32> to vector<1x32x32xf32>
    tpu.vector_store %arg8[%c0_41, %c0_42, %c64], %112 {strides = array<i32>} : memref<1x32x128xf32, #tpu.memory_space<vmem>>, vector<1x32x32xf32>,
    %c4_i32_43 = arith.constant 4 : i32
    %113 = arith.muli %arg0, %c4_i32_43 : i32
    %c3_i32 = arith.constant 3 : i32
    %114 = arith.addi %113, %c3_i32 : i32
    %115 = arith.index_cast %114 : i32 to index
    %116 = memref.load %arg1[%115] : memref<8xi32, #tpu.memory_space<smem>>
    %117 = vector.extract_strided_slice %4 {offsets = [48, 0], sizes = [16, 32], strides = [1, 1]} : vector<64x32xbf16> to vector<16x32xbf16>
    %118 = vector.extract_strided_slice %7 {offsets = [48, 0], sizes = [16, 32], strides = [1, 1]} : vector<64x32xbf16> to vector<16x32xbf16>
    %cst_44 = arith.constant dense<0.000000e+00> : vector<256x16xf32>
    %119 = tpu.matmul %0, %117, %cst_44 {dimension_numbers = #tpu.dot_dimension_numbers<[1], [1], [0], [0], [0, 0, 1, 0], [], []>} : vector<256x32xbf16>, vector<16x32xbf16>, vector<256x16xf32> -> vector<256x16xf32>
    %120 = vector.broadcast %116 : i32 to vector<1x16xi32>
    %121 = arith.cmpi slt, %10, %120 : vector<1x16xi32>
    %cst_45 = arith.constant -1.000000e+30 : f32
    %122 = vector.shape_cast %121 : vector<1x16xi1> to vector<1x16xi1>
    %123 = vector.broadcast %122 : vector<1x16xi1> to vector<256x16xi1>
    %124 = vector.broadcast %cst_45 : f32 to vector<256x16xf32>
    %125 = arith.select %123, %119, %124 : vector<256x16xi1>, vector<256x16xf32>
    %cst_46 = arith.constant dense<0xFF800000> : vector<256xf32>
    %126 = vector.multi_reduction <maximumf>, %125, %cst_46 [1] : vector<256x16xf32> to vector<256xf32>
    %127 = vector.shape_cast %126 : vector<256xf32> to vector<256x1xf32>
    %128 = vector.broadcast %127 : vector<256x1xf32> to vector<256x16xf32>
    %129 = arith.subf %125, %128 : vector<256x16xf32>
    %130 = math.exp %129 : vector<256x16xf32>
    %cst_47 = arith.constant dense<0.000000e+00> : vector<256xf32>
    %131 = vector.multi_reduction <add>, %130, %cst_47 [1] : vector<256x16xf32> to vector<256xf32>
    %132 = vector.shape_cast %131 : vector<256xf32> to vector<256x1xf32>
    %133 = arith.truncf %130 : vector<256x16xf32> to vector<256x16xbf16>
    %cst_48 = arith.constant dense<0.000000e+00> : vector<256x32xf32>
    %134 = tpu.matmul %133, %118, %cst_48 {dimension_numbers = #tpu.dot_dimension_numbers<[1], [0], [0], [1], [0, 0, 1, 1], [], []>} : vector<256x16xbf16>, vector<16x32xbf16>, vector<256x32xf32> -> vector<256x32xf32>
    %135 = tpu.reciprocal %132 {approx = true} : vector<256x1xf32> -> vector<256x1xf32>
    %136 = vector.broadcast %135 : vector<256x1xf32> to vector<256x32xf32>
    %137 = arith.mulf %134, %136 : vector<256x32xf32>
    %138 = vector.shape_cast %137 : vector<256x32xf32> to vector<8x32x32xf32>
    %139 = arith.truncf %138 : vector<8x32x32xf32> to vector<8x32x32xbf16>
    %cst_49 = arith.constant dense<0.000000e+00> : vector<8x32x32xf32>
    %140 = tpu.matmul %139, %8, %cst_49 {dimension_numbers = #tpu.dot_dimension_numbers<[2], [1], [1], [2], [0, 0, 0, 1, 1, 2], [0], [0]>} : vector<8x32x32xbf16>, vector<8x32x32xbf16>, vector<8x32x32xf32> -> vector<8x32x32xf32>
    %cst_50 = arith.constant dense<0.000000e+00> : vector<32x32xf32>
    %141 = vector.multi_reduction <add>, %140, %cst_50 [0] : vector<8x32x32xf32> to vector<32x32xf32>
    %142 = vector.broadcast %9 : vector<1x32xf32> to vector<32x32xf32>
    %143 = arith.addf %141, %142 : vector<32x32xf32>
    %c0_51 = arith.constant 0 : index
    %c0_52 = arith.constant 0 : index
    %c96 = arith.constant 96 : index
    %144 = vector.load %arg8[%c0_51, %c0_52, %c96] : memref<1x32x128xf32, #tpu.memory_space<vmem>>, vector<1x32x32xf32>
    %145 = vector.shape_cast %144 : vector<1x32x32xf32> to vector<32x32xf32>
    %146 = vector.shape_cast %143 : vector<32x32xf32> to vector<1x32x32xf32>
    tpu.vector_store %arg8[%c0_51, %c0_52, %c96], %146 {strides = array<i32>} : memref<1x32x128xf32, #tpu.memory_space<vmem>>, vector<1x32x32xf32>,
    return
  }
  func.func @transform_0(%arg0: i32, %arg1: memref<8xi32, #tpu.memory_space<smem>>) -> (i32, i32) {
    %c0_i32 = arith.constant 0 : i32
    %c0_i32_0 = arith.constant 0 : i32
    %c0_i32_1 = arith.constant 0 : i32
    return %c0_i32, %c0_i32_0 : i32, i32
  }
  func.func @transform_1(%arg0: i32, %arg1: memref<8xi32, #tpu.memory_space<smem>>) -> (i32, i32) {
    %c0_i32 = arith.constant 0 : i32
    %c0_i32_0 = arith.constant 0 : i32
    return %arg0, %c0_i32 : i32, i32
  }
  func.func @transform_2(%arg0: i32, %arg1: memref<8xi32, #tpu.memory_space<smem>>) -> (i32, i32) {
    %c0_i32 = arith.constant 0 : i32
    %c0_i32_0 = arith.constant 0 : i32
    %c0_i32_1 = arith.constant 0 : i32
    return %c0_i32, %c0_i32_0 : i32, i32
  }
  func.func @transform_3(%arg0: i32, %arg1: memref<8xi32, #tpu.memory_space<smem>>) -> (i32, i32) {
    %c0_i32 = arith.constant 0 : i32
    %c0_i32_0 = arith.constant 0 : i32
    %c0_i32_1 = arith.constant 0 : i32
    return %c0_i32, %c0_i32_0 : i32, i32
  }
  func.func @transform_4(%arg0: i32, %arg1: memref<8xi32, #tpu.memory_space<smem>>) -> (i32, i32, i32) {
    %c0_i32 = arith.constant 0 : i32
    %c0_i32_0 = arith.constant 0 : i32
    %c0_i32_1 = arith.constant 0 : i32
    %c0_i32_2 = arith.constant 0 : i32
    return %c0_i32, %c0_i32_0, %c0_i32_1 : i32, i32, i32
  }
  func.func @transform_5(%arg0: i32, %arg1: memref<8xi32, #tpu.memory_space<smem>>) -> (i32, i32) {
    %c0_i32 = arith.constant 0 : i32
    %c0_i32_0 = arith.constant 0 : i32
    %c0_i32_1 = arith.constant 0 : i32
    return %c0_i32, %c0_i32_0 : i32, i32
  }
  func.func @transform_6(%arg0: i32, %arg1: memref<8xi32, #tpu.memory_space<smem>>) -> (i32, i32, i32) {
    %c0_i32 = arith.constant 0 : i32
    %c0_i32_0 = arith.constant 0 : i32
    %c0_i32_1 = arith.constant 0 : i32
    return %arg0, %c0_i32, %c0_i32_0 : i32, i32, i32
  }
}

</mosaic_0001>

<bundles_post_ra>
// kernel: tpu_custom_call.1
= control target key start
LH: loop header
LB: loop body
LE: loop exit
PB: predicated region body
PF: predicated region fallthrough
CT: control target
= control target key end

     0   :  { %s10353_s0 = inlined_call_operand.vmem [shape: s32[8], index: 0, kind: input, shape index: {}]   ;;  %s10354_s1 = inlined_call_operand.vmem [shape: bf16[256,32], index: 1, kind: input, shape index: {}]   ;;  %s10355_s2 = inlined_call_operand.vmem [shape: bf16[128,32], index: 2, kind: input, shape index: {}]   ;;  %s10356_s3 = inlined_call_operand.vmem [shape: bf16[32,32], index: 3, kind: input, shape index: {}]   ;;  %s10357_s4 = inlined_call_operand.vmem [shape: bf16[32,32], index: 4, kind: input, shape index: {}]   ;;  %s10358_s5 = inlined_call_operand.vmem [shape: bf16[8,32,32], index: 5, kind: input, shape index: {}]   ;;  %s10359_s6 = inlined_call_operand.vmem [shape: f32[1,32], index: 6, kind: input, shape index: {}]   ;;  %s10360_s7 = inlined_call_operand.hbm [shape: f32[2,32,128], index: 7, kind: output, shape index: {}]  }
   0x1   :  { %s12_s26 = sshll.u32 %s10353_s0, 4  ;;  %s13_s26 = int_to_ptr.vmem [resolvable:$true] %s12_s26 }
   0x2   :  { %s7887_s27 = scalar_lea.vmem %s13_s26, 16  ;;  %p7892_p1 = scmp.lt.s32.totalorder %s13_s26, %s13_s26 }
   0x3   :  { %p7888_p0 = scmp.ne.s32.totalorder %s13_s26, %s7887_s27  ;;  %p7893_p2 = scmp.lt.s32.totalorder %s7887_s27, %s7887_s27 }
   0x5   :  { %p7894_p3 = por %p7893_p2, %p7892_p1 }
   0x7   :  { %p7895_p4 = pnand %p7894_p3, %p7888_p0 }
   0x9   :  { %7898 = shalt.err (!%p7895_p4)  }
   0xa   :  { %s7963_s28 = smov [#allocation3]  }
   0xb   :  { %15 = dma.vmem_to_smem %s13_s26, 16, %s7963_s28, [#allocation2] }
   0xc   :  { %7941 = dma.done.wait [#allocation2], 16 }
   0xd   :  { %7942 = vsyncadd [#allocation2], 4294967280 }
   0xe   :  { %17 = sfence }
   0xf   :  { %18 = vsyncpa [#allocation5], 0 }
  0x10   :  { %20 = vsyncpa [#allocation5 + $0x1], 0  ;;  %s8013_s29 = smov 0   ;;  %s8015_s30 = smov 0  }
  0x11   :  { %s8017_s0 = smov 0   ;;  %s8019_s8 = smov 0  }
  0x12 LB: > { %s8034_s9 = sadd.s32 4294967295, %s7961_s8   ;;  %s6108_s10 = sadd.s32 4294967294, %s7961_s8   ;;  %s7961_s8 = sphi %s8019_s8, %s10374_s8   ;;  %s7957_s0 = sphi %s8017_s0, %s10373_s0   ;;  %s7953_s30 = sphi %s8015_s30, %s10372_s30   ;;  %s7949_s29 = sphi %s8013_s29, %s10371_s29  }
  0x13   : > { %s8038_s11 = sadd.s32 1, %s7961_s8   ;;  %s164_s12 = sadd.s32 1, %s7957_s0 }
  0x14   : > { %s161_s13 = ssub.s32 %s7961_s8, %s8038_s11  ;;  %p174_p5 = scmp.ne.s32.totalorder %s7957_s0, %s7953_s30 }
  0x15   : > { %p162_p6 = scmp.eq.s32.totalorder %s161_s13, 0  ;;  %p175_p7 = scmp.eq.s32.totalorder %s8034_s9, 1 }
  0x16   : > { %p180_p8 = scmp.ne.s32.totalorder %s7953_s30, %s7949_s29  ;;  %p181_p9 = scmp.eq.s32.totalorder %s6108_s10, 1 }
  0x17   : > { %s8049_s14 = scalar_select %p162_p6, %s7957_s0, %s164_s12  }
  0x18   : > { %p8051_p10 = por %p175_p7, %p174_p5  ;;  %p8055_p11 = por %p181_p9, %p180_p8 }
  0x19   : > { %p6111_p12 = scmp.ge.s32.totalorder %s7961_s8, 1  ;;  %p223_p13 = scmp.lt.s32.totalorder %s7961_s8, 3 }
  0x1b   : > { %p224_p0 = pnand %p6111_p12, %p223_p13 }
  0x1c   : > { %s6113_s19 = sshll.u32 (!%p224_p0), %s8034_s9, 3  ;;  %s8158_s17 = sshll.u32 (!%p224_p0), %s8034_s9, 2 }
  0x1d   : > { %227 = sbr.rel (%p224_p0) target bundleno = 3084 (0xc0c), region = 44  ;;  %p254_p1 = scmp.lt.s32.totalorder (!%p224_p0), %s6113_s19, 15 }
  0x1e   : > { %s539_s18 = sld [smem:[#allocation3 + %s8158_s17]] (!%p224_p0)  ;;  %s2072_s27 = sadd.s32 (!%p224_p0), 1, %s8158_s17 }
  0x1f   : > { %s2073_s28 = sld [smem:[#allocation3 + %s2072_s27]] (!%p224_p0)  ;;  %s250_s10 = sand.u32 (!%p224_p0), 1, %s7953_s30  }
  0x20   : > { %s8919_s12 = sshll.u32 (!%p224_p0), %s250_s10, 5  ;;  %s3392_s24 = sadd.s32 (!%p224_p0), 2, %s8158_s17 }
  0x21   : > { %s4712_s13 = sadd.s32 (!%p224_p0), 3, %s8158_s17  ;;  %s7964_s27 = smov (!%p224_p0), 32  }
  0x22   : > { %v7240_v0 = vld [vmem:[%s10356_s3 + $0x8] sm:$0xff]   ;;  %v7241_v1 = vld [vmem:[%s10356_s3] sm:$0xff]   ;;  %s10376_s19 = smov (!%p254_p1, %s6113_s19), 15  ;;  %vm336_vm0 = vcmask 261120   ;;  %v7248_v17 = vld [vmem:[%s10354_s1 + $0x10] sm:$0xff]   ;;  %v536_v35 = vlaneseq  ;;  %vm868_vm2 = vcmask 130048  }
  0x23   : > { %6639 = vmatprep.subr.bf16.mxu0 %v7240_v0  ;;  %s6114_s22 = sshll.u32 %s10376_s19, 2  ;;  %v7246_v6 = vld [vmem:[%s10354_s1] sm:$0xff]   ;;  %v7260_v7 = vld [vmem:[%s10357_s4 + $0x8] sm:$0xff]   ;;  %v7249_v18 = vld [vmem:[%s10354_s1 + $0x18] sm:$0xff]   ;;  %s8937_s19 = scalar_lea.vmem [#allocation4], %s8919_s12  ;;  %vm3387_vm6 = vcmask 523520  }
  0x24   : > { %6640 = vmatpush3.bf16.msra.mxu0 %v7240_v0  ;;  %s257_s25 = scalar_lea.vmem %s10355_s2, %s6114_s22  ;;  %v7261_v8 = vld [vmem:[%s10357_s4] sm:$0xff]   ;;  %6651 = vmatprep.subr.bf16.mxu1 %v7260_v7  ;;  %v7247_v16 = vld [vmem:[%s10354_s1 + $0x8] sm:$0xff]   ;;  %v7252_v21 = vld [vmem:[%s10354_s1 + $0x30] sm:$0xff]   ;;  %v8161_v36 = vand.u32 127, %v536_v35  ;;  %v832_v37 = vstv %s539_s18  ;;  %s4713_s18 = sld [smem:[#allocation3 + %s4712_s13]]  ;;  %vm4707_vm7 = vcmask 785920  }
  0x25   : > { %6641 = vmatprep.subr.bf16.mxu0 %v7241_v1  ;;  %v7242_v2 = vld [vmem:[%s257_s25] sm:$0xff]   ;;  %v7243_v3 = vld [vmem:[%s257_s25 + $0x8] sm:$0xff]   ;;  %v7244_v4 = vld [vmem:[%s257_s25 + $0x10] sm:$0xff]   ;;  %6652 = vmatpush3.bf16.msra.mxu1 %v7260_v7  ;;  %vm6027_vm8 = vcmask 1048320   ;;  %s6362_s26 = sshll.u32 %s8034_s9, 9  ;;  %s7967_s17 = smov [#allocation4]  }
  0x26   : > { %6643 = vmatprep.mubr.msk.bf16.mxu0 %vm336_vm0, %v7242_v2  ;;  %6655 = vmatprep.mubr.msk.bf16.mxu1 %vm336_vm0, %v7242_v2  ;;  %v7245_v5 = vld [vmem:[%s257_s25 + $0x18] sm:$0xff]   ;;  %v7250_v19 = vld [vmem:[%s10354_s1 + $0x20] sm:$0xff]   ;;  %v7251_v20 = vld [vmem:[%s10354_s1 + $0x28] sm:$0xff]   ;;  %vm8166_vm1 = vcmp.lt.s32.totalorder %v8161_v36, %v832_v37  ;;  %s3393_s25 = sld [smem:[#allocation3 + %s3392_s24]]  ;;  %s10306_s13 = scalar_lea.hbm %s10360_s7, %s6362_s26 }
  0x27   : > { %6653 = vmatprep.subr.bf16.mxu1 %v7261_v8  ;;  %v7253_v22 = vld [vmem:[%s10354_s1 + $0x38] sm:$0xff]   ;;  %v7254_v23 = vld [vmem:[%s10354_s1 + $0x40] sm:$0xff]   ;;  %v7255_v24 = vld [vmem:[%s10354_s1 + $0x48] sm:$0xff]   ;;  %s7903_s20 = sshll.u32 %s7967_s17, 4  ;;  %s7904_s20 = int_to_ptr.vmem [resolvable:$false] %s7903_s20 }
  0x28   : > { %6642 = vmatpush3.bf16.msra.mxu0 %v7241_v1  ;;  %v7256_v25 = vld [vmem:[%s10354_s1 + $0x50] sm:$0xff]   ;;  %v7257_v26 = vld [vmem:[%s10354_s1 + $0x58] sm:$0xff]   ;;  %v7258_v27 = vld [vmem:[%s10354_s1 + $0x60] sm:$0xff]   ;;  %s7905_s21 = scalar_lea.vmem %s7904_s20, 1024 }
  0x29   : > { %6654 = vmatpush3.bf16.msra.mxu1 %v7261_v8  ;;  %v7259_v28 = vld [vmem:[%s10354_s1 + $0x68] sm:$0xff]   ;;  %v7262_v33 = vld [vmem:[%s10354_s1 + $0x70] sm:$0xff]   ;;  %v7263_v34 = vld [vmem:[%s10354_s1 + $0x78] sm:$0xff]  }
  0x2b   : > { %6644 = vmatmul.mubr.msk.bf16.vlgmr.msra.gmra.mxu0 %vm336_vm0, %v7243_v3 }
  0x2c   : > { %6647 = vmatprep.mubr.msk.bf16.mxu0 %vm336_vm0, %v7244_v4  ;;  %6656 = vmatmul.mubr.msk.bf16.vlgmr.msra.gmra.mxu1 %vm336_vm0, %v7243_v3 }
  0x2d   : > { %6659 = vmatprep.mubr.msk.bf16.mxu1 %vm336_vm0, %v7244_v4 }
  0x33   : > { %6648 = vmatmul.mubr.msk.bf16.gmra.mxu0 %vm336_vm0, %v7245_v5 }
  0x34   : > { %6665 = vmatprep.mubr.msk.bf16.mxu0 %vm336_vm0, %v7246_v6  ;;  %6660 = vmatmul.mubr.msk.bf16.gmra.mxu1 %vm336_vm0, %v7245_v5 }
  0xeb   : > { %v6645_v9 = vpop.f32.mrf.mxu0 }
  0xec   : > { %v6657_v8 = vpop.f32.mrf.mxu1 }
  0xed   : > { %v383_v10 = vpop.f32.mrf.mxu0 }
  0xef   : > { %v6646_v11 = vpop.f32.mrf.mxu0 }
  0xf0   : > { %v8089_v12 = vpack.c.bf16 %v6646_v11, %v6645_v9 }
  0xf1   : > { %v386_v13 = vpop.f32.mrf.mxu0 }
  0xf2   : > { %v414_v14 = vpack.c.bf16 %v386_v13, %v383_v10 }
  0xf3   : > { %v6649_v29 = vpop.f32.mrf.mxu0 }
  0xf4   : > { %7191 = vmatprep.subr.msk.bf16.mxu0 %vm336_vm0, %v414_v14  ;;  %v669_v15 = vsel %vm336_vm0, %v414_v14, 0  ;;  %v468_v14 = vpop.f32.mrf.mxu1 }
  0xf5   : > { %6664 = vmatpush3.bf16.xpose.msra.mxu0 %v669_v15  ;;  %v8145_v30 = vpop.f32.mrf.mxu0 }
  0xf7   : > { %v6650_v31 = vpop.f32.mrf.mxu0 }
  0xf8   : > { %v8147_v32 = vpack.c.bf16 %v6650_v31, %v6649_v29 }
  0xf9   : > { %v8163_v38 = vpop.f32.mrf.mxu0 }
  0xfc   : > { %6666 = vmatmul.mubr.msk.bf16.vlgmr.msra.gmra.mxu0 %vm336_vm0, %v7247_v16 }
  0xfd   : > { %6669 = vmatprep.mubr.msk.bf16.mxu0 %vm336_vm0, %v7248_v17  ;;  %v6658_v17 = vpop.f32.mrf.mxu1 }
 0x104   : > { %6670 = vmatmul.mubr.msk.bf16.gmra.mxu0 %vm336_vm0, %v7249_v18 }
 0x105   : > { %6673 = vmatprep.mubr.msk.bf16.mxu0 %vm336_vm0, %v7250_v19 }
 0x10c   : > { %6674 = vmatmul.mubr.msk.bf16.gmra.mxu0 %vm336_vm0, %v7251_v20 }
 0x10d   : > { %6677 = vmatprep.mubr.msk.bf16.mxu0 %vm336_vm0, %v7252_v21 }
 0x114   : > { %6678 = vmatmul.mubr.msk.bf16.gmra.mxu0 %vm336_vm0, %v7253_v22  ;;  %v471_v22 = vpop.f32.mrf.mxu1 }
 0x115   : > { %6681 = vmatprep.mubr.msk.bf16.mxu0 %vm336_vm0, %v7254_v23 }
 0x11c   : > { %6682 = vmatmul.mubr.msk.bf16.gmra.mxu0 %vm336_vm0, %v7255_v24  ;;  %v499_v24 = vpack.c.bf16 %v471_v22, %v468_v14 }
 0x11d   : > { %6685 = vmatprep.mubr.msk.bf16.mxu0 %vm336_vm0, %v7256_v25 }
 0x11e   : > { %6697 = vmatprep.subr.bf16.mxu1 %v499_v24 }
 0x11f   : > { %6698 = vmatpush3.bf16.msra.mxu1 %v499_v24 }
 0x124   : > { %6686 = vmatmul.mubr.msk.bf16.gmra.mxu0 %vm336_vm0, %v7257_v26  ;;  %v8256_v26 = vpack.c.bf16 %v6658_v17, %v6657_v8 }
 0x125   : > { %6689 = vmatprep.mubr.msk.bf16.mxu0 %vm336_vm0, %v7258_v27 }
 0x12c   : > { %6690 = vmatmul.mubr.msk.bf16.gmra.mxu0 %vm336_vm0, %v7259_v28 }
 0x12d   : > { %6693 = vmatprep.mubr.msk.bf16.mxu0 %vm336_vm0, %v7262_v33 }
 0x134   : > { %6694 = vmatmul.mubr.msk.bf16.gmra.mxu0 %vm336_vm0, %v7263_v34 }
 0x1bc   : > { %v6667_v40 = vpop.f32.mrf.mxu0 }
 0x1bd   : > { %v8172_v41 = vsel %vm8166_vm1, %v6667_v40, -1e+30 }
 0x1be   : > { %v705_v42 = vpop.f32.mrf.mxu0  ;;  %v875_v43 = vsel %vm868_vm2, %v8172_v41, -inf }
 0x1bf   : > { %v8178_v44 = vsel %vm8166_vm1, %v705_v42, -1e+30  ;;  %876 = vmax.xlane.f32.xlu1 %v875_v43 }
 0x1c0   : > { %v6668_v45 = vpop.f32.mrf.mxu0  ;;  %v869_v46 = vsel %vm868_vm2, %v8178_v44, -inf }
 0x1c1   : > { %v8184_v47 = vsel %vm8166_vm1, %v6668_v45, -1e+30  ;;  %870 = vmax.xlane.f32.xlu0 %v869_v46 }
 0x1c2   : > { %v708_v48 = vpop.f32.mrf.mxu0  ;;  %v878_v49 = vsel %vm868_vm2, %v8184_v47, -inf }
 0x1c3   : > { %879 = vmax.xlane.f32.xlu1 %v878_v49  ;;  %v8190_v50 = vsel %vm8166_vm1, %v708_v48, -1e+30 }
 0x1c4   : > { %v6671_v51 = vpop.f32.mrf.mxu0  ;;  %v872_v52 = vsel %vm868_vm2, %v8190_v50, -inf }
 0x1c5   : > { %873 = vmax.xlane.f32.xlu0 %v872_v52  ;;  %v8202_v57 = vsel %vm8166_vm1, %v6671_v51, -1e+30 }
 0x1c6   : > { %v721_v53 = vpop.f32.mrf.mxu0  ;;  %v887_v61 = vsel %vm868_vm2, %v8202_v57, -inf }
 0x1c7   : > { %v8196_v54 = vsel %vm8166_vm1, %v721_v53, -1e+30 }
 0x1c8   : > { %v6672_v55 = vpop.f32.mrf.mxu0  ;;  %v881_v56 = vsel %vm868_vm2, %v8196_v54, -inf }
 0x1c9   : > { %882 = vmax.xlane.f32.xlu0 %v881_v56  ;;  %v8214_v63 = vsel %vm8166_vm1, %v6672_v55, -1e+30 }
 0x1ca   : > { %v724_v58 = vpop.f32.mrf.mxu0  ;;  %v890_v3 = vsel %vm868_vm2, %v8214_v63, -inf }
 0x1cb   : > { %v8206_v59 = vsel %vm8166_vm1, %v724_v58, -1e+30 }
 0x1cc   : > { %v6675_v60 = vpop.f32.mrf.mxu0  ;;  %v884_v62 = vsel %vm868_vm2, %v8206_v59, -inf }
 0x1cd   : > { %888 = vmax.xlane.f32.xlu0 %v887_v61  ;;  %885 = vmax.xlane.f32.xlu1 %v884_v62  ;;  %v8226_v5 = vsel %vm8166_vm1, %v6675_v60, -1e+30 }
 0x1ce   : > { %v737_v0 = vpop.f32.mrf.mxu0  ;;  %v899_v10 = vsel %vm868_vm2, %v8226_v5, -inf }
 0x1cf   : > { %v8218_v1 = vsel %vm8166_vm1, %v737_v0, -1e+30 }
 0x1d0   : > { %v6676_v2 = vpop.f32.mrf.mxu0  ;;  %v893_v4 = vsel %vm868_vm2, %v8218_v1, -inf }
 0x1d1   : > { %891 = vmax.xlane.f32.xlu1 %v890_v3  ;;  %894 = vmax.xlane.f32.xlu0 %v893_v4  ;;  %v8238_v13 = vsel %vm8166_vm1, %v6676_v2, -1e+30 }
 0x1d2   : > { %v740_v6 = vpop.f32.mrf.mxu0  ;;  %v902_v19 = vsel %vm868_vm2, %v8238_v13, -inf }
 0x1d3   : > { %v8230_v7 = vsel %vm8166_vm1, %v740_v6, -1e+30 }
 0x1d4   : > { %v6679_v9 = vpop.f32.mrf.mxu0  ;;  %v896_v11 = vsel %vm868_vm2, %v8230_v7, -inf }
 0x1d5   : > { %900 = vmax.xlane.f32.xlu0 %v899_v10  ;;  %897 = vmax.xlane.f32.xlu1 %v896_v11  ;;  %v8250_v21 = vsel %vm8166_vm1, %v6679_v9, -1e+30 }
 0x1d6   : > { %v753_v15 = vpop.f32.mrf.mxu0  ;;  %v911_v28 = vsel %vm868_vm2, %v8250_v21, -inf }
 0x1d7   : > { %v8242_v16 = vsel %vm8166_vm1, %v753_v15, -1e+30 }
 0x1d8   : > { %v6680_v18 = vpop.f32.mrf.mxu0  ;;  %v905_v20 = vsel %vm868_vm2, %v8242_v16, -inf }
 0x1d9   : > { %903 = vmax.xlane.f32.xlu1 %v902_v19  ;;  %906 = vmax.xlane.f32.xlu0 %v905_v20  ;;  %v8264_v31 = vsel %vm8166_vm1, %v6680_v18, -1e+30 }
 0x1da   : > { %v756_v23 = vpop.f32.mrf.mxu0  ;;  %v914_v37 = vsel %vm868_vm2, %v8264_v31, -inf }
 0x1db   : > { %v8254_v25 = vsel %vm8166_vm1, %v756_v23, -1e+30 }
 0x1dc   : > { %v6683_v27 = vpop.f32.mrf.mxu0  ;;  %v908_v29 = vsel %vm868_vm2, %v8254_v25, -inf }
 0x1dd   : > { %912 = vmax.xlane.f32.xlu0 %v911_v28  ;;  %909 = vmax.xlane.f32.xlu1 %v908_v29  ;;  %v8276_v42 = vsel %vm8166_vm1, %v6683_v27, -1e+30 }
 0x1de   : > { %v769_v33 = vpop.f32.mrf.mxu0  ;;  %v923_v48 = vsel %vm868_vm2, %v8276_v42, -inf }
 0x1df   : > { %v8268_v34 = vsel %vm8166_vm1, %v769_v33, -1e+30 }
 0x1e0   : > { %v6684_v35 = vpop.f32.mrf.mxu0  ;;  %v917_v40 = vsel %vm868_vm2, %v8268_v34, -inf }
 0x1e1   : > { %915 = vmax.xlane.f32.xlu1 %v914_v37  ;;  %918 = vmax.xlane.f32.xlu0 %v917_v40  ;;  %v8288_v51 = vsel %vm8166_vm1, %v6684_v35, -1e+30 }
 0x1e2   : > { %v772_v43 = vpop.f32.mrf.mxu0  ;;  %v926_v56 = vsel %vm868_vm2, %v8288_v51, -inf }
 0x1e3   : > { %v8280_v45 = vsel %vm8166_vm1, %v772_v43, -1e+30 }
 0x1e4   : > { %v6687_v46 = vpop.f32.mrf.mxu0  ;;  %v920_v49 = vsel %vm868_vm2, %v8280_v45, -inf }
 0x1e5   : > { %924 = vmax.xlane.f32.xlu0 %v923_v48  ;;  %921 = vmax.xlane.f32.xlu1 %v920_v49  ;;  %v8300_v60 = vsel %vm8166_vm1, %v6687_v46, -1e+30 }
 0x1e6   : > { %v785_v52 = vpop.f32.mrf.mxu0  ;;  %v935_v2 = vsel %vm868_vm2, %v8300_v60, -inf }
 0x1e7   : > { %v8292_v53 = vsel %vm8166_vm1, %v785_v52, -1e+30 }
 0x1e8   : > { %v6688_v55 = vpop.f32.mrf.mxu0  ;;  %v929_v58 = vsel %vm868_vm2, %v8292_v53, -inf }
 0x1e9   : > { %927 = vmax.xlane.f32.xlu1 %v926_v56  ;;  %930 = vmax.xlane.f32.xlu0 %v929_v58  ;;  %v8312_v4 = vsel %vm8166_vm1, %v6688_v55, -1e+30 }
 0x1ea   : > { %v788_v61 = vpop.f32.mrf.mxu0  ;;  %v938_v10 = vsel %vm868_vm2, %v8312_v4, -inf }
 0x1eb   : > { %v8304_v62 = vsel %vm8166_vm1, %v788_v61, -1e+30 }
 0x1ec   : > { %v6691_v0 = vpop.f32.mrf.mxu0  ;;  %v932_v3 = vsel %vm868_vm2, %v8304_v62, -inf }
 0x1ed   : > { %936 = vmax.xlane.f32.xlu0 %v935_v2  ;;  %933 = vmax.xlane.f32.xlu1 %v932_v3  ;;  %v8324_v14 = vsel %vm8166_vm1, %v6691_v0, -1e+30 }
 0x1ee   : > { %v801_v6 = vpop.f32.mrf.mxu0  ;;  %v947_v18 = vsel %vm868_vm2, %v8324_v14, -inf }
 0x1ef   : > { %v8316_v8 = vsel %vm8166_vm1, %v801_v6, -1e+30 }
 0x1f0   : > { %v6692_v9 = vpop.f32.mrf.mxu0  ;;  %v941_v11 = vsel %vm868_vm2, %v8316_v8, -inf }
 0x1f1   : > { %939 = vmax.xlane.f32.xlu1 %v938_v10  ;;  %942 = vmax.xlane.f32.xlu0 %v941_v11  ;;  %v8336_v20 = vsel %vm8166_vm1, %v6692_v9, -1e+30 }
 0x1f2   : > { %v804_v15 = vpop.f32.mrf.mxu0  ;;  %v950_v22 = vsel %vm868_vm2, %v8336_v20, -inf }
 0x1f3   : > { %v8328_v17 = vsel %vm8166_vm1, %v804_v15, -1e+30 }
 0x1f4   : > { %v944_v19 = vsel %vm868_vm2, %v8328_v17, -inf }
 0x1f5   : > { %948 = vmax.xlane.f32.xlu0 %v947_v18  ;;  %945 = vmax.xlane.f32.xlu1 %v944_v19 }
 0x1f9   : > { %951 = vmax.xlane.f32.xlu1 %v950_v22 }
 0x248   : > { %v877_v23 = vpop.xlane.xlu1 %876 }
 0x249   : > { %v967_v24 = vsub.f32 %v8172_v41, %v877_v23 }
 0x24a   : > { %v871_v27 = vpop.xlane.xlu0 %870 }
 0x24b   : > { %v965_v28 = vsub.f32 %v8178_v44, %v871_v27  ;;  %v1001_v29 = vmul.f32 1.442695, %v967_v24 }
 0x24c   : > { %v880_v33 = vpop.xlane.xlu1 %879 }
 0x24d   : > { %v997_v35 = vmul.f32 1.442695, %v965_v28  ;;  %v968_v37 = vsub.f32 %v8184_v47, %v880_v33 }
 0x24e   : > { %v874_v40 = vpop.xlane.xlu0 %873 }
 0x24f   : > { %7280 = vpow2.f32 %v997_v35  ;;  %v1003_v43 = vmul.f32 1.442695, %v968_v37  ;;  %v966_v46 = vsub.f32 %v8190_v50, %v874_v40 }
 0x250   : > { %7282 = vpow2.f32 %v1001_v29 }
 0x251   : > { %v999_v48 = vmul.f32 1.442695, %v966_v46  ;;  %7284 = vpow2.f32 %v1003_v43 }
 0x252   : > { %v883_v49 = vpop.xlane.xlu0 %882 }
 0x253   : > { %7286 = vpow2.f32 %v999_v48  ;;  %v969_v41 = vsub.f32 %v8196_v54, %v883_v49 }
 0x255   : > { %v1005_v44 = vmul.f32 1.442695, %v969_v41 }
 0x256   : > { %v889_v52 = vpop.xlane.xlu0 %888  ;;  %v886_v55 = vpop.xlane.xlu1 %885 }
 0x257   : > { %v971_v56 = vsub.f32 %v8202_v57, %v889_v52  ;;  %v970_v58 = vsub.f32 %v8206_v59, %v886_v55  ;;  %7288 = vpow2.f32 %v1005_v44 }
 0x259   : > { %v1007_v47 = vmul.f32 1.442695, %v970_v58  ;;  %v1009_v61 = vmul.f32 1.442695, %v971_v56 }
 0x25a   : > { %v892_v0 = vpop.xlane.xlu1 %891  ;;  %v895_v2 = vpop.xlane.xlu0 %894 }
 0x25b   : > { %v972_v50 = vsub.f32 %v8214_v63, %v892_v0  ;;  %v973_v3 = vsub.f32 %v8218_v1, %v895_v2  ;;  %7290 = vpow2.f32 %v1007_v47 }
 0x25c   : > { %v7281_v6 = vpop.eup %7280  ;;  %7292 = vpow2.f32 %v1009_v61 }
 0x25d   : > { %v7283_v9 = vpop.eup %7282  ;;  %v1011_v54 = vmul.f32 1.442695, %v972_v50  ;;  %v1013_v10 = vmul.f32 1.442695, %v973_v3  ;;  %v1061_v11 = vsel %vm868_vm2, %v7281_v6, 0.0 }
 0x25e   : > { %v901_v57 = vpop.xlane.xlu0 %900  ;;  %v898_v15 = vpop.xlane.xlu1 %897  ;;  %1062 = vadd.xlane.f32.xlu0 %v1061_v11  ;;  %v1067_v1 = vsel %vm868_vm2, %v7283_v9, 0.0 }
 0x25f   : > { %v7285_v59 = vpop.eup %7284  ;;  %7294 = vpow2.f32 %v1011_v54  ;;  %v975_v18 = vsub.f32 %v8226_v5, %v901_v57  ;;  %v974_v19 = vsub.f32 %v8230_v7, %v898_v15 }
 0x260   : > { %v7287_v63 = vpop.eup %7286  ;;  %7296 = vpow2.f32 %v1013_v10  ;;  %v1158_v28 = vpack.c.bf16 %v7285_v59, %v7283_v9  ;;  %v1070_v37 = vsel %vm868_vm2, %v7285_v59, 0.0 }
 0x261   : > { %v1017_v22 = vmul.f32 1.442695, %v975_v18  ;;  %v1015_v23 = vmul.f32 1.442695, %v974_v19  ;;  %v1064_v24 = vsel %vm868_vm2, %v7287_v63, 0.0  ;;  %v1157_v27 = vpack.c.bf16 %v7287_v63, %v7281_v6 }
 0x262   : > { %v904_v29 = vpop.xlane.xlu1 %903  ;;  %v907_v33 = vpop.xlane.xlu0 %906  ;;  %1068 = vadd.xlane.f32.xlu0 %v1067_v1  ;;  %1065 = vadd.xlane.f32.xlu1 %v1064_v24 }
 0x263   : > { %7298 = vpow2.f32 %v1017_v22  ;;  %v976_v35 = vsub.f32 %v8238_v13, %v904_v29  ;;  %v977_v5 = vsub.f32 %v8242_v16, %v907_v33  ;;  %6699 = vmatprep.mubr.msk.bf16.mxu1 %vm868_vm2, %v1157_v27 }
 0x264   : > { %7300 = vpow2.f32 %v1015_v23  ;;  %6700 = vmatmul.mubr.msk.bf16.vlgmr.msra.gmra.mxu1 %vm868_vm2, %v1158_v28  ;;  %v8361_v13 = vpop.eup %7288 }
 0x265   : > { %v1019_v7 = vmul.f32 1.442695, %v976_v35  ;;  %v1021_v46 = vmul.f32 1.442695, %v977_v5 }
 0x266   : > { %v913_v40 = vpop.xlane.xlu0 %912  ;;  %v910_v43 = vpop.xlane.xlu1 %909  ;;  %1071 = vadd.xlane.f32.xlu1 %v1070_v37 }
 0x267   : > { %7302 = vpow2.f32 %v1019_v7  ;;  %v979_v48 = vsub.f32 %v8250_v21, %v913_v40  ;;  %v978_v49 = vsub.f32 %v8254_v25, %v910_v43 }
 0x268   : > { %v8363_v16 = vpop.eup %7290  ;;  %7304 = vpow2.f32 %v1021_v46 }
 0x269   : > { %v1023_v41 = vmul.f32 1.442695, %v978_v49  ;;  %v1025_v52 = vmul.f32 1.442695, %v979_v48  ;;  %v1159_v56 = vpack.c.bf16 %v8363_v16, %v8361_v13  ;;  %v8367_v58 = vpop.eup %7292  ;;  %v1076_v39 = vsel %vm868_vm2, %v8363_v16, 0.0  ;;  %v8483_v16 = vld [vmem:[%s10358_s5] sm:$0xff]  }
 0x26a   : > { %v916_v55 = vpop.xlane.xlu1 %915  ;;  %v919_v44 = vpop.xlane.xlu0 %918 }
 0x26b   : > { %v980_v47 = vsub.f32 %v8264_v31, %v916_v55  ;;  %v981_v21 = vsub.f32 %v8268_v34, %v919_v44  ;;  %7306 = vpow2.f32 %v1023_v41  ;;  %6703 = vmatprep.mubr.msk.bf16.mxu1 %vm868_vm2, %v1159_v56 }
 0x26c   : > { %v8371_v61 = vpop.eup %7294  ;;  %7308 = vpow2.f32 %v1025_v52 }
 0x26d   : > { %v7297_v25 = vpop.eup %7296  ;;  %v1027_v0 = vmul.f32 1.442695, %v980_v47  ;;  %v1029_v2 = vmul.f32 1.442695, %v981_v21  ;;  %v1160_v50 = vpack.c.bf16 %v8371_v61, %v8367_v58 }
 0x26e   : > { %v925_v3 = vpop.xlane.xlu0 %924  ;;  %v922_v6 = vpop.xlane.xlu1 %921  ;;  %v1085_v9 = vsel %vm868_vm2, %v7297_v25, 0.0 }
 0x26f   : > { %7310 = vpow2.f32 %v1027_v0  ;;  %v983_v31 = vsub.f32 %v8276_v42, %v925_v3  ;;  %v982_v34 = vsub.f32 %v8280_v45, %v922_v6  ;;  %1086 = vadd.xlane.f32.xlu0 %v1085_v9  ;;  %6704 = vmatmul.mubr.msk.bf16.gmra.mxu1 %vm868_vm2, %v1160_v50 }
 0x270   : > { %v7299_v54 = vpop.eup %7298  ;;  %7312 = vpow2.f32 %v1029_v2 }
 0x271   : > { %v7301_v10 = vpop.eup %7300  ;;  %v1033_v11 = vmul.f32 1.442695, %v983_v31  ;;  %v1031_v57 = vmul.f32 1.442695, %v982_v34  ;;  %v1091_v15 = vsel %vm868_vm2, %v7299_v54, 0.0 }
 0x272   : > { %v928_v59 = vpop.xlane.xlu1 %927  ;;  %v931_v18 = vpop.xlane.xlu0 %930  ;;  %v1088_v19 = vsel %vm868_vm2, %v7301_v10, 0.0  ;;  %v1161_v63 = vpack.c.bf16 %v7301_v10, %v7297_v25 }
 0x273   : > { %7314 = vpow2.f32 %v1033_v11  ;;  %v984_v42 = vsub.f32 %v8288_v51, %v928_v59  ;;  %v985_v45 = vsub.f32 %v8292_v53, %v931_v18  ;;  %1092 = vadd.xlane.f32.xlu0 %v1091_v15  ;;  %1089 = vadd.xlane.f32.xlu1 %v1088_v19  ;;  %v6695_v10 = vpop.f32.mrf.mxu0 }
 0x274   : > { %v7303_v1 = vpop.eup %7302  ;;  %7316 = vpow2.f32 %v1031_v57  ;;  %6707 = vmatprep.mubr.msk.bf16.mxu1 %vm868_vm2, %v1161_v63 }
 0x275   : > { %v1035_v22 = vmul.f32 1.442695, %v984_v42  ;;  %v1094_v23 = vsel %vm868_vm2, %v7303_v1, 0.0  ;;  %v1162_v24 = vpack.c.bf16 %v7303_v1, %v7299_v54  ;;  %v1037_v29 = vmul.f32 1.442695, %v985_v45  ;;  %v8389_v53 = vpop.eup %7304  ;;  %v817_v59 = vpop.f32.mrf.mxu0 }
 0x276   : > { %v937_v27 = vpop.xlane.xlu0 %936  ;;  %v934_v28 = vpop.xlane.xlu1 %933 }
 0x277   : > { %7318 = vpow2.f32 %v1035_v22  ;;  %v987_v33 = vsub.f32 %v8300_v60, %v937_v27  ;;  %v986_v51 = vsub.f32 %v8304_v62, %v934_v28  ;;  %1095 = vadd.xlane.f32.xlu1 %v1094_v23  ;;  %6708 = vmatmul.mubr.msk.bf16.gmra.mxu1 %vm868_vm2, %v1162_v24  ;;  %v6696_v45 = vpop.f32.mrf.mxu0  ;;  %v8429_v24 = vsel %vm8166_vm1, %v817_v59, -1e+30  ;;  %v8434_v27 = vld [vmem:[%s10358_s5 + $0x8] sm:$0xff]  }
 0x278   : > { %v8391_v35 = vpop.eup %7306  ;;  %7320 = vpow2.f32 %v1037_v29  ;;  %6731 = vmatprep.subr.bf16.mxu0 %v8434_v27 }
 0x279   : > { %v1039_v5 = vmul.f32 1.442695, %v986_v51  ;;  %v1041_v7 = vmul.f32 1.442695, %v987_v33  ;;  %v1163_v43 = vpack.c.bf16 %v8391_v35, %v8389_v53  ;;  %v8395_v46 = vpop.eup %7308  ;;  %v820_v33 = vpop.f32.mrf.mxu0  ;;  %6732 = vmatpush3.bf16.msra.mxu0 %v8434_v27 }
 0x27a   : > { %v940_v37 = vpop.xlane.xlu1 %939  ;;  %v943_v40 = vpop.xlane.xlu0 %942  ;;  %6733 = vmatprep.subr.bf16.mxu0 %v8483_v16 }
 0x27b   : > { %v988_v60 = vsub.f32 %v8312_v4, %v940_v37  ;;  %v989_v62 = vsub.f32 %v8316_v8, %v943_v40  ;;  %7322 = vpow2.f32 %v1039_v5  ;;  %6711 = vmatprep.mubr.msk.bf16.mxu1 %vm868_vm2, %v1163_v43  ;;  %v953_v5 = vsel %vm868_vm2, %v8429_v24, -inf }
 0x27c   : > { %v8399_v48 = vpop.eup %7310  ;;  %7324 = vpow2.f32 %v1041_v7  ;;  %v8443_v7 = vsel %vm8166_vm1, %v6695_v10, -1e+30  ;;  %v8448_v43 = vsel %vm8166_vm1, %v820_v33, -1e+30 }
 0x27d   : > { %v7313_v49 = vpop.eup %7312  ;;  %v1043_v41 = vmul.f32 1.442695, %v988_v60  ;;  %v1045_v52 = vmul.f32 1.442695, %v989_v62  ;;  %v1164_v55 = vpack.c.bf16 %v8399_v48, %v8395_v46  ;;  %v959_v60 = vsel %vm868_vm2, %v8443_v7, -inf  ;;  %6734 = vmatpush3.bf16.msra.mxu0 %v8483_v16 }
 0x27e   : > { %v1109_v44 = vsel %vm868_vm2, %v7313_v49, 0.0  ;;  %v949_v56 = vpop.xlane.xlu0 %948  ;;  %v946_v47 = vpop.xlane.xlu1 %945  ;;  %v956_v62 = vsel %vm868_vm2, %v8448_v43, -inf }
 0x27f   : > { %7326 = vpow2.f32 %v1043_v41  ;;  %1110 = vadd.xlane.f32.xlu0 %v1109_v44  ;;  %v991_v4 = vsub.f32 %v8324_v14, %v949_v56  ;;  %v990_v8 = vsub.f32 %v8328_v17, %v946_v47  ;;  %6712 = vmatmul.mubr.msk.bf16.gmra.mxu1 %vm868_vm2, %v1164_v55  ;;  %v6661_v41 = vpop.f32.mrf.mxu1  ;;  %v1073_v44 = vsel %vm868_vm2, %v8361_v13, 0.0 }
 0x280   : > { %v7315_v21 = vpop.eup %7314  ;;  %7328 = vpow2.f32 %v1045_v52  ;;  %v1079_v47 = vsel %vm868_vm2, %v8367_v58, 0.0  ;;  %v1103_v13 = vsel %vm868_vm2, %v8395_v46, 0.0  ;;  %v1100_v58 = vsel %vm868_vm2, %v8391_v35, 0.0 }
 0x281   : > { %v7317_v25 = vpop.eup %7316  ;;  %v1049_v0 = vmul.f32 1.442695, %v991_v4  ;;  %v1047_v2 = vmul.f32 1.442695, %v990_v8  ;;  %v1115_v50 = vsel %vm868_vm2, %v7315_v21, 0.0  ;;  %v8462_v55 = vpop.f32.mrf.mxu1  ;;  %v1097_v8 = vsel %vm868_vm2, %v8389_v53, 0.0 }
 0x282   : > { %v1112_v3 = vsel %vm868_vm2, %v7317_v25, 0.0  ;;  %v952_v6 = vpop.xlane.xlu1 %951  ;;  %v1165_v9 = vpack.c.bf16 %v7317_v25, %v7313_v49  ;;  %v8458_v49 = vsel %vm8166_vm1, %v6696_v45, -1e+30 }
 0x283   : > { %7330 = vpow2.f32 %v1049_v0  ;;  %1116 = vadd.xlane.f32.xlu0 %v1115_v50  ;;  %1113 = vadd.xlane.f32.xlu1 %v1112_v3  ;;  %v992_v14 = vsub.f32 %v8336_v20, %v952_v6  ;;  %v962_v52 = vsel %vm868_vm2, %v8458_v49, -inf  ;;  %v6662_v56 = vpop.f32.mrf.mxu1  ;;  %v8504_v0 = vld [vmem:[%s10358_s5 + $0x18] sm:$0xff]  }
 0x284   : > { %v7319_v31 = vpop.eup %7318  ;;  %7332 = vpow2.f32 %v1047_v2  ;;  %6715 = vmatprep.mubr.msk.bf16.mxu1 %vm868_vm2, %v1165_v9  ;;  %v8470_v4 = vpack.c.bf16 %v6662_v56, %v6661_v41  ;;  %6739 = vmatprep.subr.bf16.mxu1 %v8504_v0  ;;  %v7269_v2 = vld [vmem:[%s10358_s5 + $0x10] sm:$0xff]   ;;  %v8515_v50 = vld [vmem:[%s10358_s5 + $0x38] sm:$0xff]  }
 0x285   : > { %v1051_v17 = vmul.f32 1.442695, %v992_v14  ;;  %v1118_v34 = vsel %vm868_vm2, %v7319_v31, 0.0  ;;  %v1166_v54 = vpack.c.bf16 %v7319_v31, %v7315_v21  ;;  %v7321_v11 = vpop.eup %7320  ;;  %v1082_v21 = vsel %vm868_vm2, %v8371_v61, 0.0  ;;  %6740 = vmatpush3.bf16.msra.mxu1 %v8504_v0  ;;  %v8535_v45 = vpop.f32.mrf.mxu1 }
 0x286   : > { %v1121_v53 = vsel %vm868_vm2, %v7321_v11, 0.0  ;;  %v1106_v61 = vsel %vm868_vm2, %v8399_v48, 0.0  ;;  %v8499_v48 = vld [vmem:[%s10358_s5 + $0x28] sm:$0xff]   ;;  %6741 = vmatprep.subr.bf16.mxu1 %v7269_v2 }
 0x287   : > { %7334 = vpow2.f32 %v1051_v17  ;;  %1119 = vadd.xlane.f32.xlu1 %v1118_v34  ;;  %6716 = vmatmul.mubr.msk.bf16.gmra.mxu1 %vm868_vm2, %v1166_v54 }
 0x288   : > { %v8414_v57 = vpop.eup %7322  ;;  %6747 = vmatprep.subr.bf16.mxu0 %v8499_v48 }
 0x289   : > { %v1167_v15 = vpack.c.bf16 %v8414_v57, %v7321_v11  ;;  %v8417_v20 = vpop.eup %7324  ;;  %v1124_v46 = vsel %vm868_vm2, %v8414_v57, 0.0  ;;  %6742 = vmatpush3.bf16.msra.mxu1 %v7269_v2 }
 0x28a   : > { %v1127_v35 = vsel %vm868_vm2, %v8417_v20, 0.0  ;;  %6755 = vmatprep.subr.bf16.mxu1 %v8515_v50 }
 0x28b   : > { %6719 = vmatprep.mubr.msk.bf16.mxu1 %vm868_vm2, %v1167_v15 }
 0x28c   : > { %v8419_v18 = vpop.eup %7326 }
 0x28d   : > { %v7329_v19 = vpop.eup %7328  ;;  %v1168_v63 = vpack.c.bf16 %v8419_v18, %v8417_v20  ;;  %v1130_v25 = vsel %vm868_vm2, %v8419_v18, 0.0 }
 0x28e   : > { %v1133_v42 = vsel %vm868_vm2, %v7329_v19, 0.0 }
 0x28f   : > { %1134 = vadd.xlane.f32.xlu0 %v1133_v42  ;;  %6720 = vmatmul.mubr.msk.bf16.gmra.mxu1 %vm868_vm2, %v1168_v63 }
 0x290   : > { %v7331_v1 = vpop.eup %7330 }
 0x291   : > { %v7333_v22 = vpop.eup %7332  ;;  %v1139_v23 = vsel %vm868_vm2, %v7331_v1, 0.0 }
 0x292   : > { %v1136_v28 = vsel %vm868_vm2, %v7333_v22, 0.0  ;;  %v1169_v29 = vpack.c.bf16 %v7333_v22, %v7329_v19 }
 0x293   : > { %1140 = vadd.xlane.f32.xlu0 %v1139_v23  ;;  %1137 = vadd.xlane.f32.xlu1 %v1136_v28 }
 0x294   : > { %v7335_v51 = vpop.eup %7334  ;;  %6723 = vmatprep.mubr.msk.bf16.mxu1 %vm868_vm2, %v1169_v29 }
 0x295   : > { %v1142_v37 = vsel %vm868_vm2, %v7335_v51, 0.0  ;;  %v1170_v40 = vpack.c.bf16 %v7335_v51, %v7331_v1 }
 0x297   : > { %1143 = vadd.xlane.f32.xlu1 %v1142_v37  ;;  %954 = vmax.xlane.f32.xlu0 %v953_v5 }
 0x298   : > { %6724 = vmatmul.mubr.msk.bf16.gmra.mxu1 %vm868_vm2, %v1170_v40 }
 0x29b   : > { %960 = vmax.xlane.f32.xlu0 %v959_v60  ;;  %957 = vmax.xlane.f32.xlu1 %v956_v62 }
 0x29f   : > { %1074 = vadd.xlane.f32.xlu0 %v1073_v44  ;;  %963 = vmax.xlane.f32.xlu1 %v962_v52 }
 0x2a3   : > { %1080 = vadd.xlane.f32.xlu0 %v1079_v47  ;;  %1077 = vadd.xlane.f32.xlu1 %v1076_v39 }
 0x2a7   : > { %1098 = vadd.xlane.f32.xlu0 %v1097_v8  ;;  %1083 = vadd.xlane.f32.xlu1 %v1082_v21 }
 0x2ab   : > { %1104 = vadd.xlane.f32.xlu0 %v1103_v13  ;;  %1101 = vadd.xlane.f32.xlu1 %v1100_v58 }
 0x2af   : > { %1122 = vadd.xlane.f32.xlu0 %v1121_v53  ;;  %1107 = vadd.xlane.f32.xlu1 %v1106_v61 }
 0x2b3   : > { %1128 = vadd.xlane.f32.xlu0 %v1127_v35  ;;  %1125 = vadd.xlane.f32.xlu1 %v1124_v46  ;;  %v7268_v35 = vld [vmem:[%s10358_s5 + $0x20] sm:$0xff]  }
 0x2b7   : > { %1131 = vadd.xlane.f32.xlu1 %v1130_v25 }
 0x2e7   : > { %v1063_v3 = vpop.xlane.xlu0 %1062 }
 0x2e8   : > { %7336 = vrcp.f32 %v1063_v3 }
 0x2eb   : > { %v1066_v6 = vpop.xlane.xlu1 %1065  ;;  %v1069_v9 = vpop.xlane.xlu0 %1068 }
 0x2ef   : > { %v1072_v14 = vpop.xlane.xlu1 %1071 }
 0x2f0   : > { %7338 = vrcp.f32 %v1072_v14 }
 0x2f1   : > { %7340 = vrcp.f32 %v1066_v6  ;;  %v8551_v6 = vld [vmem:[%s10358_s5 + $0x48] sm:$0xff]  }
 0x2f2   : > { %7342 = vrcp.f32 %v1069_v9 }
 0x2f5   : > { %v7337_v62 = vpop.eup %7336 }
 0x2f8   : > { %v1087_v31 = vpop.xlane.xlu0 %1086 }
 0x2f9   : > { %7344 = vrcp.f32 %v1087_v31 }
 0x2fc   : > { %v1090_v17 = vpop.xlane.xlu1 %1089  ;;  %v1093_v34 = vpop.xlane.xlu0 %1092 }
 0x2fd   : > { %v7339_v52 = vpop.eup %7338 }
 0x2fe   : > { %v7341_v44 = vpop.eup %7340 }
 0x2ff   : > { %v7343_v47 = vpop.eup %7342 }
 0x300   : > { %v1096_v54 = vpop.xlane.xlu1 %1095 }
 0x306   : > { %v7345_v9 = vpop.eup %7344 }
 0x308   : > { %v8518_v10 = vpop.xlane.xlu0 %1110 }
 0x30c   : > { %v8520_v11 = vpop.xlane.xlu1 %1113  ;;  %v8522_v57 = vpop.xlane.xlu0 %1116 }
 0x310   : > { %v8524_v15 = vpop.xlane.xlu1 %1119 }
 0x318   : > { %v8526_v59 = vpop.xlane.xlu0 %1134 }
 0x31c   : > { %v8528_v20 = vpop.xlane.xlu0 %1140  ;;  %v8530_v18 = vpop.xlane.xlu1 %1137 }
 0x320   : > { %v8532_v19 = vpop.xlane.xlu1 %1143  ;;  %v955_v63 = vpop.xlane.xlu0 %954 }
 0x321   : > { %v993_v42 = vsub.f32 %v8429_v24, %v955_v63 }
 0x323   : > { %v1053_v1 = vmul.f32 1.442695, %v993_v42 }
 0x324   : > { %v961_v22 = vpop.xlane.xlu0 %960  ;;  %v958_v23 = vpop.xlane.xlu1 %957 }
 0x325   : > { %v995_v28 = vsub.f32 %v8443_v7, %v961_v22  ;;  %v994_v29 = vsub.f32 %v8448_v43, %v958_v23  ;;  %v6701_v33 = vpop.f32.mrf.mxu1  ;;  %7346 = vpow2.f32 %v1053_v1 }
 0x326   : > { %v1416_v58 = vmul.f32 %v7343_v47, %v6701_v33 }
 0x327   : > { %v1057_v51 = vmul.f32 1.442695, %v995_v28  ;;  %v1055_v5 = vmul.f32 1.442695, %v994_v29  ;;  %v1255_v37 = vpop.f32.mrf.mxu1 }
 0x328   : > { %v1075_v40 = vpop.xlane.xlu0 %1074  ;;  %v964_v60 = vpop.xlane.xlu1 %963  ;;  %v1414_v39 = vmul.f32 %v7337_v62, %v1255_v37 }
 0x329   : > { %7348 = vpow2.f32 %v1057_v51  ;;  %v996_v24 = vsub.f32 %v8458_v49, %v964_v60  ;;  %v6702_v41 = vpop.f32.mrf.mxu1 }
 0x32a   : > { %7350 = vpow2.f32 %v1055_v5  ;;  %v1417_v56 = vmul.f32 %v7339_v52, %v6702_v41 }
 0x32b   : > { %7352 = vrcp.f32 %v1093_v34  ;;  %v1059_v7 = vmul.f32 1.442695, %v996_v24  ;;  %v1258_v43 = vpop.f32.mrf.mxu1 }
 0x32c   : > { %7354 = vrcp.f32 %v1075_v40  ;;  %v1415_v8 = vmul.f32 %v7341_v44, %v1258_v43  ;;  %v1081_v21 = vpop.xlane.xlu0 %1080  ;;  %v1078_v13 = vpop.xlane.xlu1 %1077  ;;  %v1447_v61 = vpack.c.bf16 %v1417_v56, %v1416_v58 }
 0x32d   : > { %7356 = vpow2.f32 %v1059_v7 }
 0x32e   : > { %7358 = vrcp.f32 %v1096_v54  ;;  %v1446_v53 = vpack.c.bf16 %v1415_v8, %v1414_v39 }
 0x32f   : > { %7360 = vrcp.f32 %v1078_v13  ;;  %v8540_v49 = vpop.f32.mrf.mxu1 }
 0x330   : > { %7362 = vrcp.f32 %v1090_v17  ;;  %6735 = vmatprep.mubr.msk.bf16.mxu0 %vm336_vm0, %v1446_v53  ;;  %v1099_v46 = vpop.xlane.xlu0 %1098  ;;  %v1084_v25 = vpop.xlane.xlu1 %1083 }
 0x331   : > { %7364 = vrcp.f32 %v1081_v21  ;;  %6736 = vmatmul.mubr.msk.bf16.vlgmr.msra.gmra.mxu0 %vm336_vm0, %v1447_v61  ;;  %v1271_v2 = vpop.f32.mrf.mxu1 }
 0x332   : > { %7366 = vrcp.f32 %v1084_v25  ;;  %6748 = vmatpush3.bf16.msra.mxu0 %v8499_v48  ;;  %v7347_v31 = vpop.eup %7346 }
 0x333   : > { %v6706_v3 = vpop.f32.mrf.mxu1  ;;  %6749 = vmatprep.subr.bf16.mxu0 %v7268_v35  ;;  %7368 = vrcp.f32 %v1099_v46  ;;  %v1145_v51 = vsel %vm868_vm2, %v7347_v31, 0.0 }
 0x334   : > { %v1102_v14 = vpop.xlane.xlu1 %1101  ;;  %v1105_v54 = vpop.xlane.xlu0 %1104 }
 0x335   : > { %v1274_v17 = vpop.f32.mrf.mxu1  ;;  %7370 = vrcp.f32 %v1102_v14 }
 0x336   : > { %v7349_v34 = vpop.eup %7348  ;;  %6750 = vmatpush3.bf16.msra.mxu0 %v7268_v35  ;;  %7372 = vrcp.f32 %v1105_v54 }
 0x337   : > { %v7351_v63 = vpop.eup %7350  ;;  %v6709_v42 = vpop.f32.mrf.mxu1  ;;  %6763 = vmatprep.subr.bf16.mxu0 %v8551_v6  ;;  %v1151_v1 = vsel %vm868_vm2, %v7349_v34, 0.0 }
 0x338   : > { %v7353_v22 = vpop.eup %7352  ;;  %v1108_v23 = vpop.xlane.xlu1 %1107  ;;  %v1171_v28 = vpack.c.bf16 %v7351_v63, %v7347_v31  ;;  %1152 = vadd.xlane.f32.xlu0 %v1151_v1  ;;  %v1148_v43 = vsel %vm868_vm2, %v7351_v63, 0.0 }
 0x339   : > { %v7355_v29 = vpop.eup %7354  ;;  %v1287_v33 = vpop.f32.mrf.mxu1  ;;  %7374 = vrcp.f32 %v1108_v23  ;;  %v1424_v53 = vmul.f32 %v7353_v22, %v6709_v42 }
 0x33a   : > { %v7357_v5 = vpop.eup %7356  ;;  %6727 = vmatprep.mubr.msk.bf16.mxu1 %vm868_vm2, %v1171_v28  ;;  %v1418_v52 = vmul.f32 %v7355_v29, %v1271_v2  ;;  %7376 = vrcp.f32 %v8518_v10  ;;  %v1422_v39 = vmul.f32 %v7345_v9, %v1287_v33  ;;  %v1123_v46 = vpop.xlane.xlu0 %1122 }
 0x33b   : > { %v7359_v37 = vpop.eup %7358  ;;  %v6710_v40 = vpop.f32.mrf.mxu1  ;;  %v1172_v60 = vpack.c.bf16 %v7357_v5, %v7349_v34  ;;  %v1154_v62 = vsel %vm868_vm2, %v7357_v5, 0.0  ;;  %7378 = vrcp.f32 %v8524_v15  ;;  %v7273_v15 = vld [vmem:[%s10358_s5 + $0x40] sm:$0xff]   ;;  %v7275_v34 = vld [vmem:[%s10358_s5 + $0x68] sm:$0xff]  }
 0x33c   : > { %v7361_v24 = vpop.eup %7360  ;;  %1155 = vadd.xlane.f32.xlu1 %v1154_v62  ;;  %1146 = vadd.xlane.f32.xlu0 %v1145_v51  ;;  %v1425_v7 = vmul.f32 %v7359_v37, %v6710_v40  ;;  %v1126_v8 = vpop.xlane.xlu1 %1125  ;;  %7380 = vrcp.f32 %v8520_v11  ;;  %v7276_v40 = vld [vmem:[%s10358_s5 + $0x50] sm:$0xff]  }
 0x33d   : > { %v7363_v41 = vpop.eup %7362  ;;  %v1419_v44 = vmul.f32 %v7361_v24, %v1274_v17  ;;  %6728 = vmatmul.mubr.msk.bf16.gmra.mxu1 %vm868_vm2, %v1172_v60  ;;  %v1290_v56 = vpop.f32.mrf.mxu1  ;;  %7382 = vrcp.f32 %v8522_v57  ;;  %v7271_v57 = vld [vmem:[%s10358_s5 + $0x30] sm:$0xff]  }
 0x33e   : > { %v7365_v47 = vpop.eup %7364  ;;  %v1423_v21 = vmul.f32 %v7363_v41, %v1290_v56  ;;  %v1451_v10 = vpack.c.bf16 %v1425_v7, %v1424_v53  ;;  %7384 = vrcp.f32 %v1123_v46  ;;  %v1129_v63 = vpop.xlane.xlu0 %1128 }
 0x33f   : > { %v7367_v13 = vpop.eup %7366  ;;  %v1448_v58 = vpack.c.bf16 %v1419_v44, %v1418_v52  ;;  %v6713_v61 = vpop.f32.mrf.mxu1  ;;  %v1420_v2 = vmul.f32 %v7365_v47, %v8540_v49  ;;  %v7278_v47 = vld [vmem:[%s10358_s5 + $0x78] sm:$0xff]  }
 0x340   : > { %v1421_v35 = vmul.f32 %v7367_v13, %v6706_v3  ;;  %v1450_v25 = vpack.c.bf16 %v1423_v21, %v1422_v39  ;;  %1149 = vadd.xlane.f32.xlu1 %v1148_v43  ;;  %v7369_v3 = vpop.eup %7368  ;;  %v1132_v49 = vpop.xlane.xlu1 %1131  ;;  %v7277_v13 = vld [vmem:[%s10358_s5 + $0x60] sm:$0xff]  }
 0x341   : > { %6743 = vmatprep.mubr.msk.bf16.mxu1 %vm336_vm0, %v1448_v58  ;;  %v1303_v9 = vpop.f32.mrf.mxu1  ;;  %7386 = vrcp.f32 %v1132_v49 }
 0x342   : > { %6751 = vmatprep.mubr.msk.bf16.mxu0 %vm336_vm0, %v1450_v25  ;;  %v1449_v14 = vpack.c.bf16 %v1421_v35, %v1420_v2  ;;  %v7371_v31 = vpop.eup %7370  ;;  %v1426_v42 = vmul.f32 %v7369_v3, %v1303_v9  ;;  %7388 = vrcp.f32 %v1126_v8 }
 0x343   : > { %v6714_v11 = vpop.f32.mrf.mxu1  ;;  %6752 = vmatmul.mubr.msk.bf16.vlgmr.msra.gmra.mxu0 %vm336_vm0, %v1451_v10  ;;  %v7373_v54 = vpop.eup %7372  ;;  %7390 = vrcp.f32 %v1129_v63 }
 0x344   : > { %6764 = vmatpush3.bf16.msra.mxu0 %v8551_v6  ;;  %v7274_v6 = vld [vmem:[%s10358_s5 + $0x58] sm:$0xff]   ;;  %v1428_v33 = vmul.f32 %v7373_v54, %v6713_v61  ;;  %7392 = vrcp.f32 %v8526_v59 }
 0x345   : > { %6744 = vmatmul.mubr.msk.bf16.vlgmr.msra.gmra.mxu1 %vm336_vm0, %v1449_v14  ;;  %v1306_v17 = vpop.f32.mrf.mxu1  ;;  %6765 = vmatprep.subr.bf16.mxu0 %v7273_v15  ;;  %7394 = vrcp.f32 %v8532_v19 }
 0x346   : > { %v1427_v1 = vmul.f32 %v7371_v31, %v1306_v17  ;;  %6756 = vmatpush3.bf16.msra.mxu1 %v8515_v50  ;;  %v7375_v22 = vpop.eup %7374  ;;  %7396 = vrcp.f32 %v8530_v18 }
 0x347   : > { %v6717_v23 = vpop.f32.mrf.mxu1  ;;  %6757 = vmatprep.subr.bf16.mxu1 %v7271_v57  ;;  %v1429_v28 = vmul.f32 %v7375_v22, %v6714_v11  ;;  %v7377_v50 = vpop.eup %7376  ;;  %7398 = vrcp.f32 %v8528_v20 }
 0x348   : > { %v1452_v29 = vpack.c.bf16 %v1427_v1, %v1426_v42  ;;  %6766 = vmatpush3.bf16.msra.mxu0 %v7273_v15  ;;  %v7379_v60 = vpop.eup %7378  ;;  %v7279_v15 = vld [vmem:[%s10358_s5 + $0x70] sm:$0xff]  }
 0x349   : > { %v1319_v51 = vpop.f32.mrf.mxu1  ;;  %6779 = vmatprep.subr.bf16.mxu0 %v7275_v34  ;;  %v1453_v5 = vpack.c.bf16 %v1429_v28, %v1428_v33  ;;  %v7381_v62 = vpop.eup %7380  ;;  %v7793_v28 = vld [vmem:[%s10354_s1 + $0x8] sm:$0xff]   ;;  %v7796_v33 = vld [vmem:[%s10354_s1 + $0x20] sm:$0xff]  }
 0x34a   : > { %6758 = vmatpush3.bf16.msra.mxu1 %v7271_v57  ;;  %6759 = vmatprep.mubr.msk.bf16.mxu1 %vm336_vm0, %v1452_v29  ;;  %v7383_v52 = vpop.eup %7382  ;;  %v1430_v44 = vmul.f32 %v7377_v50, %v1319_v51  ;;  %v7795_v29 = vld [vmem:[%s10354_s1 + $0x18] sm:$0xff]   ;;  %v7800_v51 = vld [vmem:[%s10354_s1 + $0x40] sm:$0xff]   ;;  %v7801_v50 = vld [vmem:[%s10354_s1 + $0x48] sm:$0xff]  }
 0x34b   : > { %v6718_v37 = vpop.f32.mrf.mxu1  ;;  %6771 = vmatprep.subr.bf16.mxu1 %v7274_v6  ;;  %v1432_v56 = vmul.f32 %v7383_v52, %v6717_v23  ;;  %v7385_v59 = vpop.eup %7384  ;;  %v2075_v23 = vsel %vm336_vm0, %v8089_v12, 0 }
 0x34c   : > { %v1433_v24 = vmul.f32 %v7379_v60, %v6718_v37  ;;  %v7803_v37 = vld [vmem:[%s10354_s1 + $0x58] sm:$0xff]   ;;  %v7805_v60 = vld [vmem:[%s10354_s1 + $0x68] sm:$0xff]  }
 0x34d   : > { %6760 = vmatmul.mubr.msk.bf16.vlgmr.msra.gmra.mxu1 %vm336_vm0, %v1453_v5  ;;  %v1322_v41 = vpop.f32.mrf.mxu1  ;;  %v7802_v5 = vld [vmem:[%s10354_s1 + $0x50] sm:$0xff]  }
 0x34e   : > { %v1431_v7 = vmul.f32 %v7381_v62, %v1322_v41  ;;  %6772 = vmatpush3.bf16.msra.mxu1 %v7274_v6  ;;  %v1455_v8 = vpack.c.bf16 %v1433_v24, %v1432_v56  ;;  %v7387_v19 = vpop.eup %7386  ;;  %v7792_v6 = vld [vmem:[%s10354_s1] sm:$0xff]   ;;  %v7806_v62 = vld [vmem:[%s10354_s1 + $0x70] sm:$0xff]   ;;  %v7807_v24 = vld [vmem:[%s10354_s1 + $0x78] sm:$0xff]  }
 0x34f   : > { %v6721_v43 = vpop.f32.mrf.mxu1  ;;  %6773 = vmatprep.subr.bf16.mxu1 %v7276_v40  ;;  %v7389_v53 = vpop.eup %7388 }
 0x350   : > { %v1454_v39 = vpack.c.bf16 %v1431_v7, %v1430_v44  ;;  %v7391_v35 = vpop.eup %7390 }
 0x351   : > { %v1335_v21 = vpop.f32.mrf.mxu1  ;;  %v1436_v2 = vmul.f32 %v7391_v35, %v6721_v43  ;;  %v7393_v11 = vpop.eup %7392 }
 0x352   : > { %6767 = vmatprep.mubr.msk.bf16.mxu0 %vm336_vm0, %v1454_v39  ;;  %6774 = vmatpush3.bf16.msra.mxu1 %v7276_v40  ;;  %v1434_v46 = vmul.f32 %v7385_v59, %v1335_v21  ;;  %v7395_v3 = vpop.eup %7394  ;;  %v7804_v40 = vld [vmem:[%s10354_s1 + $0x60] sm:$0xff]  }
 0x353   : > { %v6722_v58 = vpop.f32.mrf.mxu1  ;;  %6768 = vmatmul.mubr.msk.bf16.vlgmr.msra.gmra.mxu0 %vm336_vm0, %v1455_v8  ;;  %6787 = vmatprep.subr.bf16.mxu1 %v7278_v47  ;;  %v7397_v49 = vpop.eup %7396 }
 0x354   : > { %6780 = vmatpush3.bf16.msra.mxu0 %v7275_v34  ;;  %v1437_v18 = vmul.f32 %v7387_v19, %v6722_v58  ;;  %v7399_v34 = vpop.eup %7398 }
 0x355   : > { %v1338_v61 = vpop.f32.mrf.mxu1  ;;  %6781 = vmatprep.subr.bf16.mxu0 %v7277_v13 }
 0x356   : > { %v1435_v25 = vmul.f32 %v7389_v53, %v1338_v61  ;;  %v1457_v9 = vpack.c.bf16 %v1437_v18, %v1436_v2 }
 0x358   : > { %v1456_v10 = vpack.c.bf16 %v1435_v25, %v1434_v46  ;;  %v6725_v20 = vpop.f32.mrf.mxu1  ;;  %6782 = vmatpush3.bf16.msra.mxu0 %v7277_v13 }
 0x359   : > { %7192 = vmatprep.subr.msk.bf16.mxu0 %vm336_vm0, %v8089_v12  ;;  %v1440_v42 = vmul.f32 %v7399_v34, %v6725_v20  ;;  %v7794_v12 = vld [vmem:[%s10354_s1 + $0x10] sm:$0xff]  }
 0x35a   : > { %v1351_v14 = vpop.f32.mrf.mxu1  ;;  %6775 = vmatprep.mubr.msk.bf16.mxu1 %vm336_vm0, %v1456_v10 }
 0x35b   : > { %6776 = vmatmul.mubr.msk.bf16.vlgmr.msra.gmra.mxu1 %vm336_vm0, %v1457_v9  ;;  %v1438_v54 = vmul.f32 %v7393_v11, %v1351_v14 }
 0x35c   : > { %v6726_v57 = vpop.f32.mrf.mxu1  ;;  %6788 = vmatpush3.bf16.msra.mxu1 %v7278_v47 }
 0x35d   : > { %6789 = vmatprep.subr.bf16.mxu1 %v7279_v15  ;;  %v1441_v31 = vmul.f32 %v7395_v3, %v6726_v57 }
 0x35e   : > { %v1354_v17 = vpop.f32.mrf.mxu1 }
 0x35f   : > { %v1439_v63 = vmul.f32 %v7397_v49, %v1354_v17  ;;  %v1459_v22 = vpack.c.bf16 %v1441_v31, %v1440_v42 }
 0x360   : > { %6790 = vmatpush3.bf16.msra.mxu1 %v7279_v15 }
 0x361   : > { %v1458_v1 = vpack.c.bf16 %v1439_v63, %v1438_v54  ;;  %6829 = vmatprep.subr.bf16.mxu1 %v8256_v26 }
 0x363   : > { %6783 = vmatprep.mubr.msk.bf16.mxu0 %vm336_vm0, %v1458_v1 }
 0x364   : > { %6784 = vmatmul.mubr.msk.bf16.vlgmr.msra.gmra.mxu0 %vm336_vm0, %v1459_v22 }
 0x365   : > { %6796 = vmatpush3.bf16.xpose.msra.mxu0 %v2075_v23  ;;  %6797 = vmatprep.mubr.msk.bf16.mxu0 %vm336_vm0, %v7792_v6 }
 0x366   : > { %6863 = vmatprep.subr.bf16.mxu0 %v8434_v27 }
 0x36c   : > { %6798 = vmatmul.mubr.msk.bf16.vlgmr.msra.gmra.mxu0 %vm336_vm0, %v7793_v28 }
 0x36d   : > { %6801 = vmatprep.mubr.msk.bf16.mxu0 %vm336_vm0, %v7794_v12  ;;  %6864 = vmatpush3.bf16.msra.mxu0 %v8434_v27  ;;  %v7797_v27 = vld [vmem:[%s10354_s1 + $0x28] sm:$0xff]  }
 0x36e   : > { %6865 = vmatprep.subr.bf16.mxu0 %v8483_v16 }
 0x371   : > { %6866 = vmatpush3.bf16.msra.mxu0 %v8483_v16  ;;  %v7798_v16 = vld [vmem:[%s10354_s1 + $0x30] sm:$0xff]  }
 0x372   : > { %6879 = vmatprep.subr.bf16.mxu0 %v8499_v48  ;;  %v7799_v48 = vld [vmem:[%s10354_s1 + $0x38] sm:$0xff]  }
 0x374   : > { %6802 = vmatmul.mubr.msk.bf16.gmra.mxu0 %vm336_vm0, %v7795_v29 }
 0x375   : > { %6805 = vmatprep.mubr.msk.bf16.mxu0 %vm336_vm0, %v7796_v33 }
 0x37c   : > { %6806 = vmatmul.mubr.msk.bf16.gmra.mxu0 %vm336_vm0, %v7797_v27 }
 0x37d   : > { %6809 = vmatprep.mubr.msk.bf16.mxu0 %vm336_vm0, %v7798_v16 }
 0x384   : > { %6810 = vmatmul.mubr.msk.bf16.gmra.mxu0 %vm336_vm0, %v7799_v48 }
 0x385   : > { %6813 = vmatprep.mubr.msk.bf16.mxu0 %vm336_vm0, %v7800_v51 }
 0x38c   : > { %6814 = vmatmul.mubr.msk.bf16.gmra.mxu0 %vm336_vm0, %v7801_v50 }
 0x38d   : > { %6817 = vmatprep.mubr.msk.bf16.mxu0 %vm336_vm0, %v7802_v5 }
 0x394   : > { %6818 = vmatmul.mubr.msk.bf16.gmra.mxu0 %vm336_vm0, %v7803_v37 }
 0x395   : > { %6821 = vmatprep.mubr.msk.bf16.mxu0 %vm336_vm0, %v7804_v40 }
 0x39c   : > { %6822 = vmatmul.mubr.msk.bf16.gmra.mxu0 %vm336_vm0, %v7805_v60 }
 0x39d   : > { %6825 = vmatprep.mubr.msk.bf16.mxu0 %vm336_vm0, %v7806_v62 }
 0x3a4   : > { %6826 = vmatmul.mubr.msk.bf16.gmra.mxu0 %vm336_vm0, %v7807_v24 }
 0x3c1   : > { %v1153_v41 = vpop.xlane.xlu0 %1152 }
 0x3c2   : > { %7400 = vrcp.f32 %v1153_v41 }
 0x3c5   : > { %v1156_v52 = vpop.xlane.xlu1 %1155  ;;  %v1147_v44 = vpop.xlane.xlu0 %1146 }
 0x3c6   : > { %7402 = vrcp.f32 %v1156_v52 }
 0x3c7   : > { %7404 = vrcp.f32 %v1147_v44 }
 0x3c9   : > { %v1150_v7 = vpop.xlane.xlu1 %1149 }
 0x3ca   : > { %7406 = vrcp.f32 %v1150_v7 }
 0x3cf   : > { %v7401_v47 = vpop.eup %7400 }
 0x3d3   : > { %v7403_v21 = vpop.eup %7402 }
 0x3d4   : > { %v7405_v13 = vpop.eup %7404 }
 0x3d7   : > { %v7407_v58 = vpop.eup %7406 }
 0x3f1   : > { %v6737_v56 = vpop.f32.mrf.mxu0 }
 0x3f2   : > { %v2028_v15 = vsel %vm336_vm0, %v6737_v56, 0.0 }
 0x3f3   : > { %v1514_v43 = vpop.f32.mrf.mxu0 }
 0x3f4   : > { %v1998_v49 = vsel %vm336_vm0, %v1514_v43, 0.0 }
 0x3f5   : > { %v6738_v39 = vpop.f32.mrf.mxu0 }
 0x3f6   : > { %v2043_v1 = vsel %vm336_vm0, %v6738_v39, 0.0 }
 0x3f7   : > { %v8681_v19 = vpop.f32.mrf.mxu0 }
 0x3fd   : > { %v6729_v8 = vpop.f32.mrf.mxu1 }
 0x3fe   : > { %v1444_v53 = vmul.f32 %v7401_v47, %v6729_v8 }
 0x3ff   : > { %v1367_v59 = vpop.f32.mrf.mxu1 }
 0x400   : > { %v1442_v61 = vmul.f32 %v7405_v13, %v1367_v59 }
 0x401   : > { %v6730_v18 = vpop.f32.mrf.mxu1 }
 0x402   : > { %v1445_v35 = vmul.f32 %v7403_v21, %v6730_v18 }
 0x403   : > { %v1370_v46 = vpop.f32.mrf.mxu1  ;;  %v6753_v25 = vpop.f32.mrf.mxu0 }
 0x404   : > { %v1443_v2 = vmul.f32 %v7407_v58, %v1370_v46  ;;  %v1461_v10 = vpack.c.bf16 %v1445_v35, %v1444_v53  ;;  %v2031_v31 = vsel %vm336_vm0, %v6753_v25, 0.0 }
 0x405   : > { %v6745_v20 = vpop.f32.mrf.mxu1  ;;  %v1648_v9 = vpop.f32.mrf.mxu0 }
 0x406   : > { %v1460_v14 = vpack.c.bf16 %v1443_v2, %v1442_v61  ;;  %v2029_v11 = vsel %vm336_vm0, %v6745_v20, 0.0  ;;  %v2001_v22 = vsel %vm336_vm0, %v1648_v9, 0.0 }
 0x407   : > { %v2030_v57 = vadd.f32 %v2029_v11, %v2028_v15  ;;  %v1581_v3 = vpop.f32.mrf.mxu1  ;;  %v6754_v54 = vpop.f32.mrf.mxu0 }
 0x408   : > { %v1999_v17 = vsel %vm336_vm0, %v1581_v3, 0.0  ;;  %6791 = vmatprep.mubr.msk.bf16.mxu1 %vm336_vm0, %v1460_v14  ;;  %v2046_v29 = vsel %vm336_vm0, %v6754_v54, 0.0  ;;  %v2238_v3 = vstv %s2073_s28  ;;  %s7965_s28 = smov 64  }
 0x409   : > { %v2000_v34 = vadd.f32 %v1999_v17, %v1998_v49  ;;  %v6746_v63 = vpop.f32.mrf.mxu1  ;;  %6792 = vmatmul.mubr.msk.bf16.vlgmr.msra.gmra.mxu1 %vm336_vm0, %v1461_v10  ;;  %v2032_v42 = vadd.f32 %v2031_v31, %v2030_v57  ;;  %v8699_v51 = vpop.f32.mrf.mxu0  ;;  %vm8726_vm3 = vcmp.lt.s32.totalorder %v8161_v36, %v2238_v3 }
 0x40a   : > { %v2044_v23 = vsel %vm336_vm0, %v6746_v63, 0.0  ;;  %6830 = vmatpush3.bf16.msra.mxu1 %v8256_v26 }
 0x40b   : > { %v2045_v6 = vadd.f32 %v2044_v23, %v2043_v1  ;;  %v8694_v28 = vpop.f32.mrf.mxu1  ;;  %v2002_v12 = vadd.f32 %v2001_v22, %v2000_v34  ;;  %6871 = vmatprep.subr.bf16.mxu1 %v8504_v0 }
 0x40d   : > { %v6761_v33 = vpop.f32.mrf.mxu1  ;;  %v2047_v27 = vadd.f32 %v2046_v29, %v2045_v6 }
 0x40e   : > { %v2033_v48 = vsel %vm336_vm0, %v6761_v33, 0.0 }
 0x40f   : > { %v1715_v16 = vpop.f32.mrf.mxu1  ;;  %v2034_v37 = vadd.f32 %v2033_v48, %v2032_v42 }
 0x410   : > { %v2003_v5 = vsel %vm336_vm0, %v1715_v16, 0.0 }
 0x411   : > { %v6762_v50 = vpop.f32.mrf.mxu1  ;;  %v2004_v0 = vadd.f32 %v2003_v5, %v2002_v12 }
 0x412   : > { %v2048_v40 = vsel %vm336_vm0, %v6762_v50, 0.0 }
 0x413   : > { %v6769_v26 = vpop.f32.mrf.mxu0  ;;  %v2049_v52 = vadd.f32 %v2048_v40, %v2047_v27  ;;  %v8706_v43 = vpop.f32.mrf.mxu1 }
 0x414   : > { %v2035_v60 = vsel %vm336_vm0, %v6769_v26, 0.0 }
 0x415   : > { %v2036_v62 = vadd.f32 %v2035_v60, %v2034_v37  ;;  %v1782_v24 = vpop.f32.mrf.mxu0 }
 0x416   : > { %v2005_v41 = vsel %vm336_vm0, %v1782_v24, 0.0 }
 0x417   : > { %v2006_v44 = vadd.f32 %v2005_v41, %v2004_v0  ;;  %v6770_v7 = vpop.f32.mrf.mxu0 }
 0x418   : > { %v2050_v56 = vsel %vm336_vm0, %v6770_v7, 0.0 }
 0x419   : > { %v2051_v47 = vadd.f32 %v2050_v56, %v2049_v52  ;;  %v8710_v13 = vpop.f32.mrf.mxu0 }
 0x41b   : > { %v6777_v39 = vpop.f32.mrf.mxu1 }
 0x41c   : > { %v2037_v21 = vsel %vm336_vm0, %v6777_v39, 0.0 }
 0x41d   : > { %v1849_v8 = vpop.f32.mrf.mxu1  ;;  %v2038_v53 = vadd.f32 %v2037_v21, %v2036_v62 }
 0x41e   : > { %v2007_v58 = vsel %vm336_vm0, %v1849_v8, 0.0 }
 0x41f   : > { %v6778_v59 = vpop.f32.mrf.mxu1  ;;  %v2008_v46 = vadd.f32 %v2007_v58, %v2006_v44 }
 0x420   : > { %v2052_v61 = vsel %vm336_vm0, %v6778_v59, 0.0 }
 0x421   : > { %v2053_v20 = vadd.f32 %v2052_v61, %v2051_v47 }
 0x424   : > { %v6785_v18 = vpop.f32.mrf.mxu0 }
 0x425   : > { %v2039_v35 = vsel %vm336_vm0, %v6785_v18, 0.0 }
 0x426   : > { %v8715_v25 = vadd.f32 %v2039_v35, %v2038_v53  ;;  %v1916_v2 = vpop.f32.mrf.mxu0 }
 0x427   : > { %v2009_v10 = vsel %vm336_vm0, %v1916_v2, 0.0 }
 0x428   : > { %v8718_v9 = vadd.f32 %v2009_v10, %v2008_v46  ;;  %v6786_v15 = vpop.f32.mrf.mxu0 }
 0x429   : > { %v2054_v14 = vsel %vm336_vm0, %v6786_v15, 0.0 }
 0x42a   : > { %v8721_v11 = vadd.f32 %v2054_v14, %v2053_v20  ;;  %v8723_v57 = vpop.f32.mrf.mxu0 }
 0x42c   : > { %v6799_v49 = vpop.f32.mrf.mxu0 }
 0x42d   : > { %v8738_v42 = vsel %vm8726_vm3, %v6799_v49, -1e+30 }
 0x42e   : > { %v2111_v17 = vpop.f32.mrf.mxu0  ;;  %v2280_v6 = vsel %vm868_vm2, %v8738_v42, -inf }
 0x42f   : > { %v8732_v34 = vsel %vm8726_vm3, %v2111_v17, -1e+30 }
 0x430   : > { %v6800_v54 = vpop.f32.mrf.mxu0  ;;  %v2274_v63 = vsel %vm868_vm2, %v8732_v34, -inf }
 0x431   : > { %2275 = vmax.xlane.f32.xlu0 %v2274_v63  ;;  %v8750_v29 = vsel %vm8726_vm3, %v6800_v54, -1e+30 }
 0x432   : > { %v2114_v1 = vpop.f32.mrf.mxu0  ;;  %v2283_v50 = vsel %vm868_vm2, %v8750_v29, -inf }
 0x433   : > { %v8742_v22 = vsel %vm8726_vm3, %v2114_v1, -1e+30 }
 0x434   : > { %v6803_v23 = vpop.f32.mrf.mxu0  ;;  %v2277_v12 = vsel %vm868_vm2, %v8742_v22, -inf }
 0x435   : > { %2281 = vmax.xlane.f32.xlu0 %v2280_v6  ;;  %2278 = vmax.xlane.f32.xlu1 %v2277_v12  ;;  %v8762_v5 = vsel %vm8726_vm3, %v6803_v23, -1e+30 }
 0x436   : > { %v2127_v33 = vpop.f32.mrf.mxu0  ;;  %v2292_v60 = vsel %vm868_vm2, %v8762_v5, -inf }
 0x437   : > { %v8754_v27 = vsel %vm8726_vm3, %v2127_v33, -1e+30 }
 0x438   : > { %v6804_v16 = vpop.f32.mrf.mxu0  ;;  %v2286_v48 = vsel %vm868_vm2, %v8754_v27, -inf }
 0x439   : > { %2287 = vmax.xlane.f32.xlu0 %v2286_v48  ;;  %2284 = vmax.xlane.f32.xlu1 %v2283_v50  ;;  %v8774_v62 = vsel %vm8726_vm3, %v6804_v16, -1e+30 }
 0x43a   : > { %v2130_v37 = vpop.f32.mrf.mxu0  ;;  %v2295_v7 = vsel %vm868_vm2, %v8774_v62, -inf }
 0x43b   : > { %v8766_v26 = vsel %vm8726_vm3, %v2130_v37, -1e+30 }
 0x43c   : > { %v6807_v40 = vpop.f32.mrf.mxu0  ;;  %v2289_v0 = vsel %vm868_vm2, %v8766_v26, -inf }
 0x43d   : > { %2293 = vmax.xlane.f32.xlu0 %v2292_v60  ;;  %2290 = vmax.xlane.f32.xlu1 %v2289_v0  ;;  %v8786_v56 = vsel %vm8726_vm3, %v6807_v40, -1e+30 }
 0x43e   : > { %v2143_v24 = vpop.f32.mrf.mxu0  ;;  %v2304_v21 = vsel %vm868_vm2, %v8786_v56, -inf }
 0x43f   : > { %v8778_v41 = vsel %vm8726_vm3, %v2143_v24, -1e+30 }
 0x440   : > { %v6808_v52 = vpop.f32.mrf.mxu0  ;;  %v2298_v44 = vsel %vm868_vm2, %v8778_v41, -inf }
 0x441   : > { %2299 = vmax.xlane.f32.xlu0 %v2298_v44  ;;  %2296 = vmax.xlane.f32.xlu1 %v2295_v7  ;;  %v8798_v58 = vsel %vm8726_vm3, %v6808_v52, -1e+30 }
 0x442   : > { %v2146_v47 = vpop.f32.mrf.mxu0  ;;  %v2307_v46 = vsel %vm868_vm2, %v8798_v58, -inf }
 0x443   : > { %v8790_v39 = vsel %vm8726_vm3, %v2146_v47, -1e+30 }
 0x444   : > { %v6811_v8 = vpop.f32.mrf.mxu0  ;;  %v2301_v59 = vsel %vm868_vm2, %v8790_v39, -inf }
 0x445   : > { %2305 = vmax.xlane.f32.xlu0 %v2304_v21  ;;  %2302 = vmax.xlane.f32.xlu1 %v2301_v59  ;;  %v8810_v2 = vsel %vm8726_vm3, %v6811_v8, -1e+30 }
 0x446   : > { %v2159_v53 = vpop.f32.mrf.mxu0  ;;  %v2316_v14 = vsel %vm868_vm2, %v8810_v2, -inf }
 0x447   : > { %v8802_v18 = vsel %vm8726_vm3, %v2159_v53, -1e+30 }
 0x448   : > { %v6812_v61 = vpop.f32.mrf.mxu0  ;;  %v2310_v35 = vsel %vm868_vm2, %v8802_v18, -inf }
 0x449   : > { %2311 = vmax.xlane.f32.xlu0 %v2310_v35  ;;  %2308 = vmax.xlane.f32.xlu1 %v2307_v46  ;;  %v8822_v49 = vsel %vm8726_vm3, %v6812_v61, -1e+30 }
 0x44a   : > { %v2162_v10 = vpop.f32.mrf.mxu0  ;;  %v2319_v23 = vsel %vm868_vm2, %v8822_v49, -inf }
 0x44b   : > { %v8814_v20 = vsel %vm8726_vm3, %v2162_v10, -1e+30 }
 0x44c   : > { %v6815_v15 = vpop.f32.mrf.mxu0  ;;  %v2313_v3 = vsel %vm868_vm2, %v8814_v20, -inf }
 0x44d   : > { %2317 = vmax.xlane.f32.xlu0 %v2316_v14  ;;  %2314 = vmax.xlane.f32.xlu1 %v2313_v3  ;;  %v8834_v6 = vsel %vm8726_vm3, %v6815_v15, -1e+30 }
 0x44e   : > { %v2175_v17 = vpop.f32.mrf.mxu0  ;;  %v2328_v48 = vsel %vm868_vm2, %v8834_v6, -inf }
 0x44f   : > { %v8826_v54 = vsel %vm8726_vm3, %v2175_v17, -1e+30 }
 0x450   : > { %v6816_v63 = vpop.f32.mrf.mxu0  ;;  %v2322_v1 = vsel %vm868_vm2, %v8826_v54, -inf }
 0x451   : > { %2323 = vmax.xlane.f32.xlu0 %v2322_v1  ;;  %2320 = vmax.xlane.f32.xlu1 %v2319_v23  ;;  %v8846_v37 = vsel %vm8726_vm3, %v6816_v63, -1e+30 }
 0x452   : > { %v2178_v12 = vpop.f32.mrf.mxu0  ;;  %v2331_v52 = vsel %vm868_vm2, %v8846_v37, -inf }
 0x453   : > { %v8838_v33 = vsel %vm8726_vm3, %v2178_v12, -1e+30 }
 0x454   : > { %v6819_v16 = vpop.f32.mrf.mxu0  ;;  %v2325_v50 = vsel %vm868_vm2, %v8838_v33, -inf }
 0x455   : > { %2329 = vmax.xlane.f32.xlu0 %v2328_v48  ;;  %2326 = vmax.xlane.f32.xlu1 %v2325_v50  ;;  %v8858_v44 = vsel %vm8726_vm3, %v6819_v16, -1e+30 }
 0x456   : > { %v2191_v40 = vpop.f32.mrf.mxu0  ;;  %v2340_v21 = vsel %vm868_vm2, %v8858_v44, -inf }
 0x457   : > { %v8850_v60 = vsel %vm8726_vm3, %v2191_v40, -1e+30 }
 0x458   : > { %v6820_v0 = vpop.f32.mrf.mxu0  ;;  %v2334_v24 = vsel %vm868_vm2, %v8850_v60, -inf }
 0x459   : > { %2335 = vmax.xlane.f32.xlu0 %v2334_v24  ;;  %2332 = vmax.xlane.f32.xlu1 %v2331_v52  ;;  %v8870_v53 = vsel %vm8726_vm3, %v6820_v0, -1e+30  ;;  %v2014_v24 = vsel %vm336_vm0, %v8694_v28, 0.0  ;;  %v2016_v28 = vsel %vm336_vm0, %v8699_v51, 0.0 }
 0x45a   : > { %v2194_v7 = vpop.f32.mrf.mxu0  ;;  %v2343_v15 = vsel %vm868_vm2, %v8870_v53, -inf }
 0x45b   : > { %v8862_v47 = vsel %vm8726_vm3, %v2194_v7, -1e+30 }
 0x45c   : > { %v6823_v8 = vpop.f32.mrf.mxu0  ;;  %v2337_v59 = vsel %vm868_vm2, %v8862_v47, -inf }
 0x45d   : > { %2341 = vmax.xlane.f32.xlu0 %v2340_v21  ;;  %2338 = vmax.xlane.f32.xlu1 %v2337_v59  ;;  %v8882_v14 = vsel %vm8726_vm3, %v6823_v8, -1e+30  ;;  %v2013_v8 = vsel %vm336_vm0, %v8681_v19, 0.0  ;;  %v1852_v19 = vpop.f32.mrf.mxu1 }
 0x45e   : > { %v2207_v61 = vpop.f32.mrf.mxu0  ;;  %v2352_v63 = vsel %vm868_vm2, %v8882_v14, -inf  ;;  %v2022_v51 = vsel %vm336_vm0, %v1852_v19, 0.0 }
 0x45f   : > { %v8874_v35 = vsel %vm8726_vm3, %v2207_v61, -1e+30  ;;  %v2015_v61 = vadd.f32 %v2014_v24, %v2013_v8 }
 0x460   : > { %v6824_v46 = vpop.f32.mrf.mxu0  ;;  %v2346_v10 = vsel %vm868_vm2, %v8874_v35, -inf }
 0x461   : > { %2347 = vmax.xlane.f32.xlu0 %v2346_v10  ;;  %2344 = vmax.xlane.f32.xlu1 %v2343_v15  ;;  %v8894_v23 = vsel %vm8726_vm3, %v6824_v46, -1e+30 }
 0x462   : > { %v2210_v3 = vpop.f32.mrf.mxu0  ;;  %v2355_v12 = vsel %vm868_vm2, %v8894_v23, -inf }
 0x463   : > { %v8886_v17 = vsel %vm8726_vm3, %v2210_v3, -1e+30  ;;  %v2017_v3 = vadd.f32 %v2016_v28, %v2015_v61 }
 0x464   : > { %v2349_v1 = vsel %vm868_vm2, %v8886_v17, -inf }
 0x465   : > { %2353 = vmax.xlane.f32.xlu0 %v2352_v63  ;;  %2350 = vmax.xlane.f32.xlu1 %v2349_v1 }
 0x469   : > { %2356 = vmax.xlane.f32.xlu1 %v2355_v12  ;;  %v2020_v12 = vsel %vm336_vm0, %v8710_v13, 0.0  ;;  %v6212_v13 = vld [vmem:[%s10359_s6] ss:$0 sm:$0xff] }
 0x4ba   : > { %v2276_v16 = vpop.xlane.xlu0 %2275 }
 0x4bb   : > { %v2370_v48 = vsub.f32 %v8732_v34, %v2276_v16 }
 0x4bd   : > { %v2402_v50 = vmul.f32 1.442695, %v2370_v48 }
 0x4be   : > { %v2282_v40 = vpop.xlane.xlu0 %2281  ;;  %v2279_v0 = vpop.xlane.xlu1 %2278 }
 0x4bf   : > { %7408 = vpow2.f32 %v2402_v50  ;;  %v2372_v52 = vsub.f32 %v8738_v42, %v2282_v40  ;;  %v2371_v7 = vsub.f32 %v8742_v22, %v2279_v0  ;;  %v2018_v42 = vsel %vm336_vm0, %v8706_v43, 0.0 }
 0x4c0   : > { %v2019_v48 = vadd.f32 %v2018_v42, %v2017_v3  ;;  %v2024_v0 = vsel %vm336_vm0, %v8723_v57, 0.0 }
 0x4c1   : > { %v2406_v21 = vmul.f32 1.442695, %v2372_v52  ;;  %v2404_v59 = vmul.f32 1.442695, %v2371_v7 }
 0x4c2   : > { %v2288_v46 = vpop.xlane.xlu0 %2287  ;;  %v2285_v34 = vpop.xlane.xlu1 %2284  ;;  %v2021_v40 = vadd.f32 %v2020_v12, %v2019_v48 }
 0x4c3   : > { %7410 = vpow2.f32 %v2406_v21  ;;  %v2374_v10 = vsub.f32 %v8754_v27, %v2288_v46  ;;  %v2373_v15 = vsub.f32 %v8750_v29, %v2285_v34 }
 0x4c4   : > { %7412 = vpow2.f32 %v2404_v59  ;;  %v2023_v46 = vadd.f32 %v2022_v51, %v2021_v40 }
 0x4c5   : > { %v2408_v22 = vmul.f32 1.442695, %v2373_v15  ;;  %v2410_v27 = vmul.f32 1.442695, %v2374_v10 }
 0x4c6   : > { %v2294_v63 = vpop.xlane.xlu0 %2293  ;;  %v2291_v1 = vpop.xlane.xlu1 %2290  ;;  %v2025_v19 = vadd.f32 %v2024_v0, %v2023_v46 }
 0x4c7   : > { %v2376_v29 = vsub.f32 %v8762_v5, %v2294_v63  ;;  %v2375_v16 = vsub.f32 %v8766_v26, %v2291_v1  ;;  %7414 = vpow2.f32 %v2408_v22 }
 0x4c8   : > { %7416 = vpow2.f32 %v2410_v27 }
 0x4c9   : > { %v2412_v43 = vmul.f32 1.442695, %v2375_v16  ;;  %v6793_v50 = vpop.f32.mrf.mxu1  ;;  %v2414_v24 = vmul.f32 1.442695, %v2376_v29 }
 0x4ca   : > { %v2041_v5 = vsel %vm336_vm0, %v6793_v50, 0.0  ;;  %v2300_v26 = vpop.xlane.xlu0 %2299  ;;  %v2297_v52 = vpop.xlane.xlu1 %2296 }
 0x4cb   : > { %v2042_v7 = vadd.f32 %v2041_v5, %v8715_v25  ;;  %v2378_v8 = vsub.f32 %v8778_v41, %v2300_v26  ;;  %v2377_v21 = vsub.f32 %v8774_v62, %v2297_v52  ;;  %v1983_v59 = vpop.f32.mrf.mxu1  ;;  %7418 = vpow2.f32 %v2412_v43 }
 0x4cc   : > { %v7409_v61 = vpop.eup %7408  ;;  %v2011_v57 = vsel %vm336_vm0, %v1983_v59, 0.0  ;;  %7420 = vpow2.f32 %v2414_v24 }
 0x4cd   : > { %v2066_v34 = vadd.f32 %v6212_v13, %v2042_v7  ;;  %v2418_v10 = vmul.f32 1.442695, %v2378_v8  ;;  %v2416_v15 = vmul.f32 1.442695, %v2377_v21  ;;  %v2012_v28 = vadd.f32 %v2011_v57, %v8718_v9  ;;  %v6794_v42 = vpop.f32.mrf.mxu1 }
 0x4ce   : > { %v2056_v25 = vsel %vm336_vm0, %v6794_v42, 0.0  ;;  %v2306_v41 = vpop.xlane.xlu0 %2305  ;;  %v2466_v62 = vsel %vm868_vm2, %v7409_v61, 0.0  ;;  %v2303_v22 = vpop.xlane.xlu1 %2302  ;;  %v7809_v42 = vld [vmem:[%s10358_s5 + $0x10] sm:$0xff]  }
 0x4cf   : > { %7422 = vpow2.f32 %v2418_v10  ;;  %v2064_v3 = vadd.f32 %v6212_v13, %v2012_v28  ;;  %v2057_v63 = vadd.f32 %v2056_v25, %v8721_v11  ;;  %v2380_v1 = vsub.f32 %v8786_v56, %v2306_v41  ;;  %2467 = vadd.xlane.f32.xlu0 %v2466_v62  ;;  %v1986_v12 = vpop.f32.mrf.mxu1  ;;  %2070 = vst.msk [vmem:[%s8937_s19 + $0x10] sm:$0xff] %vm336_vm0, %v2066_v34  ;;  %v8965_v10 = vld [vmem:[%s10358_s5 + $0x18] sm:$0xff]  }
 0x4d0   : > { %v7411_v9 = vpop.eup %7410  ;;  %7424 = vpow2.f32 %v2416_v15  ;;  %v2379_v27 = vsub.f32 %v8790_v39, %v2303_v22  ;;  %v2026_v29 = vsel %vm336_vm0, %v1986_v12, 0.0 }
 0x4d1   : > { %v7413_v16 = vpop.eup %7412  ;;  %v2067_v48 = vadd.f32 %v6212_v13, %v2057_v63  ;;  %v2422_v11 = vmul.f32 1.442695, %v2380_v1  ;;  %v2027_v51 = vadd.f32 %v2026_v29, %v2025_v19  ;;  %v2472_v56 = vsel %vm868_vm2, %v7411_v9, 0.0  ;;  %2068 = vst.msk [vmem:[%s8937_s19] sm:$0xff] %vm336_vm0, %v2064_v3 }
 0x4d2   : > { %v2420_v43 = vmul.f32 1.442695, %v2379_v27  ;;  %v2312_v50 = vpop.xlane.xlu0 %2311  ;;  %v2469_v40 = vsel %vm868_vm2, %v7413_v16, 0.0  ;;  %v2309_v0 = vpop.xlane.xlu1 %2308  ;;  %v2562_v24 = vpack.c.bf16 %v7413_v16, %v7409_v61 }
 0x4d3   : > { %7426 = vpow2.f32 %v2422_v11  ;;  %v2065_v39 = vadd.f32 %v6212_v13, %v2027_v51  ;;  %v2382_v5 = vsub.f32 %v8802_v18, %v2312_v50  ;;  %2473 = vadd.xlane.f32.xlu0 %v2472_v56  ;;  %2470 = vadd.xlane.f32.xlu1 %v2469_v40  ;;  %v2381_v26 = vsub.f32 %v8798_v58, %v2309_v0 }
 0x4d4   : > { %2071 = vst.msk [vmem:[%s8937_s19 + $0x18] sm:$0xff] %vm336_vm0, %v2067_v48  ;;  %7428 = vpow2.f32 %v2420_v43  ;;  %6831 = vmatprep.mubr.msk.bf16.mxu1 %vm868_vm2, %v2562_v24  ;;  %v7415_v52 = vpop.eup %7414 }
 0x4d5   : > { %v2424_v7 = vmul.f32 1.442695, %v2381_v26  ;;  %2069 = vst.msk [vmem:[%s8937_s19 + $0x8] sm:$0xff] %vm336_vm0, %v2065_v39  ;;  %v2475_v21 = vsel %vm868_vm2, %v7415_v52, 0.0  ;;  %v2563_v13 = vpack.c.bf16 %v7415_v52, %v7411_v9  ;;  %v2426_v61 = vmul.f32 1.442695, %v2382_v5  ;;  %v8957_v46 = vpop.eup %7416 }
 0x4d6   : > { %v2318_v8 = vpop.xlane.xlu0 %2317  ;;  %v2315_v59 = vpop.xlane.xlu1 %2314 }
 0x4d7   : > { %v2384_v18 = vsub.f32 %v8810_v2, %v2318_v8  ;;  %2476 = vadd.xlane.f32.xlu1 %v2475_v21  ;;  %v2383_v58 = vsub.f32 %v8814_v20, %v2315_v59  ;;  %7430 = vpow2.f32 %v2424_v7  ;;  %6832 = vmatmul.mubr.msk.bf16.vlgmr.msra.gmra.mxu1 %vm868_vm2, %v2563_v13 }
 0x4d8   : > { %v8960_v57 = vpop.eup %7418  ;;  %6872 = vmatpush3.bf16.msra.mxu1 %v8965_v10  ;;  %7432 = vpow2.f32 %v2426_v61 }
 0x4d9   : > { %v2428_v34 = vmul.f32 1.442695, %v2383_v58  ;;  %v2430_v15 = vmul.f32 1.442695, %v2384_v18  ;;  %v2564_v20 = vpack.c.bf16 %v8960_v57, %v8957_v46  ;;  %6873 = vmatprep.subr.bf16.mxu1 %v7809_v42  ;;  %v8973_v19 = vpop.eup %7420 }
 0x4da   : > { %v2324_v2 = vpop.xlane.xlu0 %2323  ;;  %v2321_v28 = vpop.xlane.xlu1 %2320 }
 0x4db   : > { %v2386_v25 = vsub.f32 %v8826_v54, %v2324_v2  ;;  %v2385_v41 = vsub.f32 %v8822_v49, %v2321_v28  ;;  %7434 = vpow2.f32 %v2428_v34  ;;  %6835 = vmatprep.mubr.msk.bf16.mxu1 %vm868_vm2, %v2564_v20  ;;  %v8986_v49 = vld [vmem:[%s10358_s5 + $0x38] sm:$0xff]  }
 0x4dc   : > { %v7423_v62 = vpop.eup %7422  ;;  %6874 = vmatpush3.bf16.msra.mxu1 %v7809_v42  ;;  %7436 = vpow2.f32 %v2430_v15 }
 0x4dd   : > { %v8978_v22 = vpop.eup %7424  ;;  %v2434_v3 = vmul.f32 1.442695, %v2386_v25  ;;  %v2432_v63 = vmul.f32 1.442695, %v2385_v41  ;;  %v2490_v1 = vsel %vm868_vm2, %v7423_v62, 0.0  ;;  %6887 = vmatprep.subr.bf16.mxu1 %v8986_v49 }
 0x4de   : > { %v2330_v12 = vpop.xlane.xlu0 %2329  ;;  %2491 = vadd.xlane.f32.xlu0 %v2490_v1  ;;  %v2327_v9 = vpop.xlane.xlu1 %2326  ;;  %v2565_v54 = vpack.c.bf16 %v8978_v22, %v8973_v19 }
 0x4df   : > { %7438 = vpow2.f32 %v2434_v3  ;;  %v2388_v27 = vsub.f32 %v8834_v6, %v2330_v12  ;;  %v2387_v29 = vsub.f32 %v8838_v33, %v2327_v9 }
 0x4e0   : > { %v7427_v16 = vpop.eup %7426  ;;  %7440 = vpow2.f32 %v2432_v63  ;;  %6836 = vmatmul.mubr.msk.bf16.gmra.mxu1 %vm868_vm2, %v2565_v54 }
 0x4e1   : > { %v7429_v48 = vpop.eup %7428  ;;  %v2438_v11 = vmul.f32 1.442695, %v2388_v27  ;;  %v2436_v51 = vmul.f32 1.442695, %v2387_v29  ;;  %v2496_v56 = vsel %vm868_vm2, %v7427_v16, 0.0 }
 0x4e2   : > { %v2336_v43 = vpop.xlane.xlu0 %2335  ;;  %2497 = vadd.xlane.f32.xlu0 %v2496_v56  ;;  %v2493_v50 = vsel %vm868_vm2, %v7429_v48, 0.0  ;;  %v2333_v40 = vpop.xlane.xlu1 %2332  ;;  %v2566_v0 = vpack.c.bf16 %v7429_v48, %v7423_v62 }
 0x4e3   : > { %7442 = vpow2.f32 %v2438_v11  ;;  %v2390_v6 = vsub.f32 %v8850_v60, %v2336_v43  ;;  %2494 = vadd.xlane.f32.xlu1 %v2493_v50  ;;  %v2389_v33 = vsub.f32 %v8846_v37, %v2333_v40  ;;  %v6827_v56 = vpop.f32.mrf.mxu0 }
 0x4e4   : > { %7444 = vpow2.f32 %v2436_v51  ;;  %6839 = vmatprep.mubr.msk.bf16.mxu1 %vm868_vm2, %v2566_v0  ;;  %v7431_v24 = vpop.eup %7430 }
 0x4e5   : > { %v2440_v39 = vmul.f32 1.442695, %v2389_v33  ;;  %v2499_v26 = vsel %vm868_vm2, %v7431_v24, 0.0  ;;  %v2567_v7 = vpack.c.bf16 %v7431_v24, %v7427_v16  ;;  %v2442_v8 = vmul.f32 1.442695, %v2390_v6  ;;  %v9000_v60 = vpop.eup %7432  ;;  %v2223_v0 = vpop.f32.mrf.mxu0 }
 0x4e6   : > { %v2342_v5 = vpop.xlane.xlu0 %2341  ;;  %v2339_v52 = vpop.xlane.xlu1 %2338  ;;  %v2502_v31 = vsel %vm868_vm2, %v9000_v60, 0.0 }
 0x4e7   : > { %v2392_v21 = vsub.f32 %v8858_v44, %v2342_v5  ;;  %2500 = vadd.xlane.f32.xlu1 %v2499_v26  ;;  %v2391_v59 = vsub.f32 %v8862_v47, %v2339_v52  ;;  %7446 = vpow2.f32 %v2440_v39  ;;  %v6828_v5 = vpop.f32.mrf.mxu0  ;;  %v9031_v52 = vsel %vm8726_vm3, %v2223_v0, -1e+30 }
 0x4e8   : > { %6840 = vmatmul.mubr.msk.bf16.gmra.mxu1 %vm868_vm2, %v2567_v7  ;;  %v9003_v37 = vpop.eup %7434  ;;  %7448 = vpow2.f32 %v2442_v8 }
 0x4e9   : > { %v2444_v13 = vmul.f32 1.442695, %v2391_v59  ;;  %v2446_v61 = vmul.f32 1.442695, %v2392_v21  ;;  %v2568_v34 = vpack.c.bf16 %v9003_v37, %v9000_v60  ;;  %v9007_v15 = vpop.eup %7436 }
 0x4ea   : > { %v2348_v18 = vpop.xlane.xlu0 %2347  ;;  %v2345_v58 = vpop.xlane.xlu1 %2344 }
 0x4eb   : > { %v2394_v44 = vsub.f32 %v8874_v35, %v2348_v18  ;;  %v2393_v47 = vsub.f32 %v8870_v53, %v2345_v58  ;;  %7450 = vpow2.f32 %v2444_v13  ;;  %6843 = vmatprep.mubr.msk.bf16.mxu1 %vm868_vm2, %v2568_v34  ;;  %v2226_v13 = vpop.f32.mrf.mxu0  ;;  %v9039_v58 = vsel %vm8726_vm3, %v6827_v56, -1e+30 }
 0x4ec   : > { %v7439_v2 = vpop.eup %7438  ;;  %7452 = vpow2.f32 %v2446_v61  ;;  %v2358_v61 = vsel %vm868_vm2, %v9031_v52, -inf }
 0x4ed   : > { %v9012_v28 = vpop.eup %7440  ;;  %v2450_v20 = vmul.f32 1.442695, %v2394_v44  ;;  %v2448_v42 = vmul.f32 1.442695, %v2393_v47  ;;  %v2514_v25 = vsel %vm868_vm2, %v7439_v2, 0.0 }
 0x4ee   : > { %2515 = vadd.xlane.f32.xlu0 %v2514_v25  ;;  %v2354_v41 = vpop.xlane.xlu0 %2353  ;;  %v2351_v62 = vpop.xlane.xlu1 %2350  ;;  %v2569_v3 = vpack.c.bf16 %v9012_v28, %v9007_v15  ;;  %v9045_v44 = vsel %vm8726_vm3, %v2226_v13, -1e+30 }
 0x4ef   : > { %7454 = vpow2.f32 %v2450_v20  ;;  %v2396_v53 = vsub.f32 %v8882_v14, %v2354_v41  ;;  %v2395_v35 = vsub.f32 %v8886_v17, %v2351_v62  ;;  %v2361_v20 = vsel %vm868_vm2, %v9045_v44, -inf }
 0x4f0   : > { %v7443_v63 = vpop.eup %7442  ;;  %7456 = vpow2.f32 %v2448_v42  ;;  %6844 = vmatmul.mubr.msk.bf16.gmra.mxu1 %vm868_vm2, %v2569_v3  ;;  %v9054_v42 = vsel %vm8726_vm3, %v6828_v5, -1e+30  ;;  %v2478_v41 = vsel %vm868_vm2, %v8957_v46, 0.0  ;;  %v2484_v62 = vsel %vm868_vm2, %v8973_v19, 0.0 }
 0x4f1   : > { %v7445_v1 = vpop.eup %7444  ;;  %v2454_v12 = vmul.f32 1.442695, %v2396_v53  ;;  %v2452_v9 = vmul.f32 1.442695, %v2395_v35  ;;  %v2520_v54 = vsel %vm868_vm2, %v7443_v63, 0.0  ;;  %v2367_v25 = vsel %vm868_vm2, %v9054_v42, -inf }
 0x4f2   : > { %2521 = vadd.xlane.f32.xlu0 %v2520_v54  ;;  %v2517_v27 = vsel %vm868_vm2, %v7445_v1, 0.0  ;;  %v2357_v29 = vpop.xlane.xlu1 %2356  ;;  %v2570_v16 = vpack.c.bf16 %v7445_v1, %v7439_v2  ;;  %v2364_v2 = vsel %vm868_vm2, %v9039_v58, -inf  ;;  %v2481_v3 = vsel %vm868_vm2, %v8960_v57, 0.0 }
 0x4f3   : > { %7458 = vpow2.f32 %v2454_v12  ;;  %2518 = vadd.xlane.f32.xlu1 %v2517_v27  ;;  %v2397_v14 = vsub.f32 %v8894_v23, %v2357_v29  ;;  %v2487_v53 = vsel %vm868_vm2, %v8978_v22, 0.0  ;;  %v2508_v46 = vsel %vm868_vm2, %v9007_v15, 0.0 }
 0x4f4   : > { %7460 = vpow2.f32 %v2452_v9  ;;  %6847 = vmatprep.mubr.msk.bf16.mxu1 %vm868_vm2, %v2570_v16  ;;  %v7447_v17 = vpop.eup %7446  ;;  %v2505_v19 = vsel %vm868_vm2, %v9003_v37, 0.0  ;;  %v2511_v57 = vsel %vm868_vm2, %v9012_v28, 0.0 }
 0x4f5   : > { %v2456_v48 = vmul.f32 1.442695, %v2397_v14  ;;  %v2523_v11 = vsel %vm868_vm2, %v7447_v17, 0.0  ;;  %v2571_v51 = vpack.c.bf16 %v7447_v17, %v7443_v63  ;;  %v7449_v43 = vpop.eup %7448 }
 0x4f6   : > { %v2526_v35 = vsel %vm868_vm2, %v7449_v43, 0.0 }
 0x4f7   : > { %7462 = vpow2.f32 %v2456_v48  ;;  %2524 = vadd.xlane.f32.xlu1 %v2523_v11 }
 0x4f8   : > { %6848 = vmatmul.mubr.msk.bf16.gmra.mxu1 %vm868_vm2, %v2571_v51  ;;  %v7451_v50 = vpop.eup %7450 }
 0x4f9   : > { %v2572_v40 = vpack.c.bf16 %v7451_v50, %v7449_v43  ;;  %v7453_v6 = vpop.eup %7452  ;;  %v2529_v22 = vsel %vm868_vm2, %v7451_v50, 0.0 }
 0x4fa   : > { %v2532_v60 = vsel %vm868_vm2, %v7453_v6, 0.0 }
 0x4fb   : > { %6851 = vmatprep.mubr.msk.bf16.mxu1 %vm868_vm2, %v2572_v40 }
 0x4fc   : > { %v7455_v33 = vpop.eup %7454 }
 0x4fd   : > { %v7457_v23 = vpop.eup %7456  ;;  %v2538_v24 = vsel %vm868_vm2, %v7455_v33, 0.0 }
 0x4fe   : > { %2539 = vadd.xlane.f32.xlu0 %v2538_v24  ;;  %v2573_v39 = vpack.c.bf16 %v7457_v23, %v7453_v6  ;;  %v2535_v15 = vsel %vm868_vm2, %v7457_v23, 0.0 }
 0x500   : > { %v7459_v26 = vpop.eup %7458  ;;  %6852 = vmatmul.mubr.msk.bf16.gmra.mxu1 %vm868_vm2, %v2573_v39 }
 0x501   : > { %v7461_v7 = vpop.eup %7460  ;;  %v2544_v8 = vsel %vm868_vm2, %v7459_v26, 0.0 }
 0x502   : > { %2545 = vadd.xlane.f32.xlu0 %v2544_v8  ;;  %v2541_v21 = vsel %vm868_vm2, %v7461_v7, 0.0  ;;  %v2574_v59 = vpack.c.bf16 %v7461_v7, %v7455_v33 }
 0x503   : > { %2542 = vadd.xlane.f32.xlu1 %v2541_v21 }
 0x504   : > { %v7463_v18 = vpop.eup %7462  ;;  %6855 = vmatprep.mubr.msk.bf16.mxu1 %vm868_vm2, %v2574_v59 }
 0x505   : > { %v2547_v34 = vsel %vm868_vm2, %v7463_v18, 0.0  ;;  %v2575_v47 = vpack.c.bf16 %v7463_v18, %v7459_v26 }
 0x506   : > { %2359 = vmax.xlane.f32.xlu0 %v2358_v61 }
 0x507   : > { %2548 = vadd.xlane.f32.xlu1 %v2547_v34 }
 0x508   : > { %6856 = vmatmul.mubr.msk.bf16.gmra.mxu1 %vm868_vm2, %v2575_v47 }
 0x50a   : > { %2365 = vmax.xlane.f32.xlu0 %v2364_v2 }
 0x50b   : > { %2362 = vmax.xlane.f32.xlu1 %v2361_v20 }
 0x50e   : > { %2479 = vadd.xlane.f32.xlu0 %v2478_v41 }
 0x50f   : > { %2368 = vmax.xlane.f32.xlu1 %v2367_v25 }
 0x512   : > { %2485 = vadd.xlane.f32.xlu0 %v2484_v62 }
 0x513   : > { %2482 = vadd.xlane.f32.xlu1 %v2481_v3 }
 0x516   : > { %2503 = vadd.xlane.f32.xlu0 %v2502_v31 }
 0x517   : > { %2488 = vadd.xlane.f32.xlu1 %v2487_v53 }
 0x51a   : > { %2509 = vadd.xlane.f32.xlu0 %v2508_v46 }
 0x51b   : > { %2506 = vadd.xlane.f32.xlu1 %v2505_v19 }
 0x51e   : > { %2527 = vadd.xlane.f32.xlu0 %v2526_v35 }
 0x51f   : > { %2512 = vadd.xlane.f32.xlu1 %v2511_v57 }
 0x522   : > { %2533 = vadd.xlane.f32.xlu0 %v2532_v60 }
 0x523   : > { %2530 = vadd.xlane.f32.xlu1 %v2529_v22 }
 0x527   : > { %2536 = vadd.xlane.f32.xlu1 %v2535_v15  ;;  %v9105_v15 = vld [vmem:[%s10358_s5 + $0x28] sm:$0xff]  }
 0x558   : > { %v2468_v63 = vpop.xlane.xlu0 %2467 }
 0x559   : > { %7464 = vrcp.f32 %v2468_v63 }
 0x55c   : > { %v2471_v1 = vpop.xlane.xlu1 %2470  ;;  %v2474_v37 = vpop.xlane.xlu0 %2473 }
 0x560   : > { %v2477_v9 = vpop.xlane.xlu1 %2476 }
 0x561   : > { %7466 = vrcp.f32 %v2477_v9 }
 0x562   : > { %7468 = vrcp.f32 %v2471_v1 }
 0x563   : > { %7470 = vrcp.f32 %v2474_v37  ;;  %v7812_v37 = vld [vmem:[%s10358_s5 + $0x20] sm:$0xff]  }
 0x566   : > { %v7465_v13 = vpop.eup %7464 }
 0x567   : > { %v2492_v12 = vpop.xlane.xlu0 %2491 }
 0x56b   : > { %v2498_v27 = vpop.xlane.xlu0 %2497 }
 0x56c   : > { %v2495_v54 = vpop.xlane.xlu1 %2494 }
 0x570   : > { %v2501_v28 = vpop.xlane.xlu1 %2500 }
 0x577   : > { %v9078_v29 = vpop.xlane.xlu0 %2515 }
 0x57b   : > { %v9082_v14 = vpop.xlane.xlu0 %2521 }
 0x57c   : > { %v9080_v16 = vpop.xlane.xlu1 %2518 }
 0x580   : > { %v9086_v48 = vpop.xlane.xlu1 %2524 }
 0x587   : > { %v9084_v17 = vpop.xlane.xlu0 %2539 }
 0x58b   : > { %v9088_v11 = vpop.xlane.xlu0 %2545 }
 0x58c   : > { %v9090_v51 = vpop.xlane.xlu1 %2542 }
 0x58f   : > { %v2360_v56 = vpop.xlane.xlu0 %2359 }
 0x590   : > { %v2398_v43 = vsub.f32 %v9031_v52, %v2360_v56  ;;  %v9093_v50 = vpop.xlane.xlu1 %2548 }
 0x592   : > { %v2458_v40 = vmul.f32 1.442695, %v2398_v43 }
 0x593   : > { %v2366_v0 = vpop.xlane.xlu0 %2365 }
 0x594   : > { %v2400_v6 = vsub.f32 %v9039_v58, %v2366_v0  ;;  %v2363_v33 = vpop.xlane.xlu1 %2362  ;;  %7472 = vpow2.f32 %v2458_v40  ;;  %v7467_v58 = vpop.eup %7466 }
 0x595   : > { %v2399_v23 = vsub.f32 %v9045_v44, %v2363_v33  ;;  %v7469_v34 = vpop.eup %7468  ;;  %v7813_v33 = vld [vmem:[%s10358_s5 + $0x48] sm:$0xff]  }
 0x596   : > { %v2462_v24 = vmul.f32 1.442695, %v2400_v6  ;;  %v7471_v2 = vpop.eup %7470 }
 0x597   : > { %v2460_v39 = vmul.f32 1.442695, %v2399_v23  ;;  %v2480_v5 = vpop.xlane.xlu0 %2479  ;;  %v6833_v26 = vpop.f32.mrf.mxu1 }
 0x598   : > { %7474 = vpow2.f32 %v2462_v24  ;;  %v2369_v7 = vpop.xlane.xlu1 %2368  ;;  %v2821_v41 = vmul.f32 %v7471_v2, %v6833_v26 }
 0x599   : > { %7476 = vpow2.f32 %v2460_v39  ;;  %v2401_v52 = vsub.f32 %v9054_v42, %v2369_v7  ;;  %v2660_v8 = vpop.f32.mrf.mxu1 }
 0x59a   : > { %7478 = vrcp.f32 %v2492_v12  ;;  %v2819_v20 = vmul.f32 %v7465_v13, %v2660_v8 }
 0x59b   : > { %7480 = vrcp.f32 %v2495_v54  ;;  %v2464_v21 = vmul.f32 1.442695, %v2401_v52  ;;  %v2486_v59 = vpop.xlane.xlu0 %2485  ;;  %v6834_v61 = vpop.f32.mrf.mxu1 }
 0x59c   : > { %7482 = vrcp.f32 %v2480_v5  ;;  %v2483_v18 = vpop.xlane.xlu1 %2482  ;;  %v2822_v44 = vmul.f32 %v7467_v58, %v6834_v61 }
 0x59d   : > { %7484 = vpow2.f32 %v2464_v21  ;;  %v2663_v47 = vpop.f32.mrf.mxu1 }
 0x59e   : > { %7486 = vrcp.f32 %v2483_v18  ;;  %v2820_v25 = vmul.f32 %v7469_v34, %v2663_v47  ;;  %v2852_v53 = vpack.c.bf16 %v2822_v44, %v2821_v41 }
 0x59f   : > { %7488 = vrcp.f32 %v2501_v28  ;;  %v2504_v42 = vpop.xlane.xlu0 %2503 }
 0x5a0   : > { %7490 = vrcp.f32 %v2486_v59  ;;  %v9098_v62 = vpop.f32.mrf.mxu1  ;;  %v2489_v3 = vpop.xlane.xlu1 %2488  ;;  %v2851_v31 = vpack.c.bf16 %v2820_v25, %v2819_v20 }
 0x5a1   : > { %7492 = vrcp.f32 %v2489_v3  ;;  %v7473_v35 = vpop.eup %7472 }
 0x5a2   : > { %7494 = vrcp.f32 %v2498_v27  ;;  %v2676_v46 = vpop.f32.mrf.mxu1  ;;  %6867 = vmatprep.mubr.msk.bf16.mxu0 %vm336_vm0, %v2851_v31  ;;  %v2550_v43 = vsel %vm868_vm2, %v7473_v35, 0.0 }
 0x5a3   : > { %v2510_v19 = vpop.xlane.xlu0 %2509  ;;  %6868 = vmatmul.mubr.msk.bf16.vlgmr.msra.gmra.mxu0 %vm336_vm0, %v2852_v53  ;;  %7496 = vrcp.f32 %v2504_v42 }
 0x5a4   : > { %v6838_v57 = vpop.f32.mrf.mxu1  ;;  %v2507_v60 = vpop.xlane.xlu1 %2506  ;;  %6880 = vmatpush3.bf16.msra.mxu0 %v9105_v15  ;;  %7498 = vrcp.f32 %v2510_v19 }
 0x5a5   : > { %v7475_v22 = vpop.eup %7474  ;;  %6881 = vmatprep.subr.bf16.mxu0 %v7812_v37  ;;  %7500 = vrcp.f32 %v2507_v60 }
 0x5a6   : > { %v7477_v63 = vpop.eup %7476  ;;  %v2679_v1 = vpop.f32.mrf.mxu1  ;;  %v2556_v12 = vsel %vm868_vm2, %v7475_v22, 0.0 }
 0x5a7   : > { %v7479_v9 = vpop.eup %7478  ;;  %v2576_v54 = vpack.c.bf16 %v7477_v63, %v7473_v35  ;;  %2557 = vadd.xlane.f32.xlu0 %v2556_v12  ;;  %v2553_v21 = vsel %vm868_vm2, %v7477_v63, 0.0  ;;  %v2528_v41 = vpop.xlane.xlu0 %2527 }
 0x5a8   : > { %v7481_v27 = vpop.eup %7480  ;;  %v6841_v28 = vpop.f32.mrf.mxu1  ;;  %6882 = vmatpush3.bf16.msra.mxu0 %v7812_v37  ;;  %v7815_v37 = vld [vmem:[%s10358_s5 + $0x30] sm:$0xff]  }
 0x5a9   : > { %v2513_v56 = vpop.xlane.xlu1 %2512  ;;  %v7483_v40 = vpop.eup %7482  ;;  %6859 = vmatprep.mubr.msk.bf16.mxu1 %vm868_vm2, %v2576_v54  ;;  %6895 = vmatprep.subr.bf16.mxu0 %v7813_v33 }
 0x5aa   : > { %7502 = vrcp.f32 %v2513_v56  ;;  %v7485_v0 = vpop.eup %7484  ;;  %v2692_v6 = vpop.f32.mrf.mxu1  ;;  %v2823_v26 = vmul.f32 %v7483_v40, %v2676_v46  ;;  %v7817_v56 = vld [vmem:[%s10358_s5 + $0x58] sm:$0xff]  }
 0x5ab   : > { %v7487_v23 = vpop.eup %7486  ;;  %v2577_v24 = vpack.c.bf16 %v7485_v0, %v7475_v22  ;;  %v2559_v39 = vsel %vm868_vm2, %v7485_v0, 0.0  ;;  %2551 = vadd.xlane.f32.xlu0 %v2550_v43  ;;  %7504 = vrcp.f32 %v9078_v29  ;;  %v2827_v44 = vmul.f32 %v7479_v9, %v2692_v6  ;;  %v2534_v60 = vpop.xlane.xlu0 %2533 }
 0x5ac   : > { %v7489_v5 = vpop.eup %7488  ;;  %v2824_v7 = vmul.f32 %v7487_v23, %v2679_v1  ;;  %v6842_v52 = vpop.f32.mrf.mxu1  ;;  %2560 = vadd.xlane.f32.xlu1 %v2559_v39  ;;  %7506 = vrcp.f32 %v9086_v48 }
 0x5ad   : > { %v7491_v8 = vpop.eup %7490  ;;  %6860 = vmatmul.mubr.msk.bf16.gmra.mxu1 %vm868_vm2, %v2577_v24  ;;  %v2830_v61 = vmul.f32 %v7489_v5, %v6842_v52  ;;  %v2531_v47 = vpop.xlane.xlu1 %2530  ;;  %7508 = vrcp.f32 %v9080_v16 }
 0x5ae   : > { %v7493_v59 = vpop.eup %7492  ;;  %v2853_v13 = vpack.c.bf16 %v2824_v7, %v2823_v26  ;;  %v2695_v18 = vpop.f32.mrf.mxu1  ;;  %v2825_v42 = vmul.f32 %v7491_v8, %v9098_v62  ;;  %7510 = vrcp.f32 %v9082_v14  ;;  %v7814_v14 = vld [vmem:[%s10358_s5 + $0x40] sm:$0xff]   ;;  %v7818_v26 = vld [vmem:[%s10358_s5 + $0x50] sm:$0xff]  }
 0x5af   : > { %v7495_v58 = vpop.eup %7494  ;;  %v2826_v34 = vmul.f32 %v7493_v59, %v6838_v57  ;;  %v2828_v2 = vmul.f32 %v7481_v27, %v2695_v18  ;;  %7512 = vrcp.f32 %v2528_v41  ;;  %v7816_v27 = vld [vmem:[%s10358_s5 + $0x68] sm:$0xff]  }
 0x5b0   : > { %v2829_v20 = vmul.f32 %v7495_v58, %v6841_v28  ;;  %6875 = vmatprep.mubr.msk.bf16.mxu1 %vm336_vm0, %v2853_v13  ;;  %v6845_v25 = vpop.f32.mrf.mxu1  ;;  %2554 = vadd.xlane.f32.xlu1 %v2553_v21  ;;  %v7497_v53 = vpop.eup %7496 }
 0x5b1   : > { %v2855_v3 = vpack.c.bf16 %v2828_v2, %v2827_v44  ;;  %v2854_v46 = vpack.c.bf16 %v2826_v34, %v2825_v42  ;;  %v7499_v48 = vpop.eup %7498  ;;  %v2537_v57 = vpop.xlane.xlu1 %2536  ;;  %v416_v2 = vpack.c.bf16 %v8163_v38, %v8145_v30  ;;  %v7821_v30 = vld [vmem:[%s10358_s5 + $0x70] sm:$0xff]  }
 0x5b2   : > { %v2856_v29 = vpack.c.bf16 %v2830_v61, %v2829_v20  ;;  %v2708_v31 = vpop.f32.mrf.mxu1  ;;  %v7501_v35 = vpop.eup %7500  ;;  %7514 = vrcp.f32 %v2537_v57  ;;  %v2833_v9 = vmul.f32 %v7499_v48, %v6845_v25 }
 0x5b3   : > { %6883 = vmatprep.mubr.msk.bf16.mxu0 %vm336_vm0, %v2855_v3  ;;  %v2831_v22 = vmul.f32 %v7497_v53, %v2708_v31  ;;  %7516 = vrcp.f32 %v2531_v47 }
 0x5b4   : > { %v6846_v19 = vpop.f32.mrf.mxu1  ;;  %6884 = vmatmul.mubr.msk.bf16.vlgmr.msra.gmra.mxu0 %vm336_vm0, %v2856_v29  ;;  %7518 = vrcp.f32 %v2534_v60 }
 0x5b5   : > { %6876 = vmatmul.mubr.msk.bf16.vlgmr.msra.gmra.mxu1 %vm336_vm0, %v2854_v46  ;;  %6896 = vmatpush3.bf16.msra.mxu0 %v7813_v33  ;;  %7520 = vrcp.f32 %v9084_v17  ;;  %v7819_v17 = vld [vmem:[%s10358_s5 + $0x78] sm:$0xff]  }
 0x5b6   : > { %v2711_v62 = vpop.f32.mrf.mxu1  ;;  %6888 = vmatpush3.bf16.msra.mxu1 %v8986_v49  ;;  %6897 = vmatprep.subr.bf16.mxu0 %v7814_v14  ;;  %7522 = vrcp.f32 %v9093_v50 }
 0x5b7   : > { %v7503_v16 = vpop.eup %7502  ;;  %v2832_v1 = vmul.f32 %v7501_v35, %v2711_v62  ;;  %6889 = vmatprep.subr.bf16.mxu1 %v7815_v37  ;;  %7524 = vrcp.f32 %v9090_v51 }
 0x5b8   : > { %v2834_v63 = vmul.f32 %v7503_v16, %v6846_v19  ;;  %v6849_v12 = vpop.f32.mrf.mxu1  ;;  %v7505_v43 = vpop.eup %7504  ;;  %7526 = vrcp.f32 %v9088_v11  ;;  %v7820_v11 = vld [vmem:[%s10358_s5 + $0x60] sm:$0xff]   ;;  %v9169_v16 = vpack.c.bf16 %v8535_v45, %v8462_v55  ;;  %v7823_v55 = vld [vmem:[%s10358_s5 + $0x8] sm:$0xff]  }
 0x5b9   : > { %v2857_v49 = vpack.c.bf16 %v2832_v1, %v2831_v22  ;;  %6898 = vmatpush3.bf16.msra.mxu0 %v7814_v14  ;;  %v7507_v0 = vpop.eup %7506  ;;  %v3395_v22 = vsel %vm336_vm0, %v416_v2, 0  ;;  %v7824_v45 = vld [vmem:[%s10354_s1 + $0x8] sm:$0xff]   ;;  %v7825_v1 = vld [vmem:[%s10354_s1 + $0x10] sm:$0xff]  }
 0x5ba   : > { %v2724_v54 = vpop.f32.mrf.mxu1  ;;  %6890 = vmatpush3.bf16.msra.mxu1 %v7815_v37  ;;  %6911 = vmatprep.subr.bf16.mxu0 %v7816_v27  ;;  %v2858_v28 = vpack.c.bf16 %v2834_v63, %v2833_v9  ;;  %v7509_v6 = vpop.eup %7508  ;;  %v7822_v63 = vld [vmem:[%s10354_s1] sm:$0xff]  }
 0x5bb   : > { %6891 = vmatprep.mubr.msk.bf16.mxu1 %vm336_vm0, %v2857_v49  ;;  %6903 = vmatprep.subr.bf16.mxu1 %v7817_v56  ;;  %v7511_v24 = vpop.eup %7510  ;;  %v2835_v39 = vmul.f32 %v7505_v43, %v2724_v54  ;;  %v7826_v37 = vld [vmem:[%s10358_s5] sm:$0xff]   ;;  %v7829_v49 = vld [vmem:[%s10354_s1 + $0x28] sm:$0xff]   ;;  %v7831_v54 = vld [vmem:[%s10354_s1 + $0x38] sm:$0xff]  }
 0x5bc   : > { %v6850_v40 = vpop.f32.mrf.mxu1  ;;  %v2837_v7 = vmul.f32 %v7511_v24, %v6849_v12  ;;  %v7513_v13 = vpop.eup %7512  ;;  %v7827_v12 = vld [vmem:[%s10354_s1 + $0x18] sm:$0xff]   ;;  %v7828_v9 = vld [vmem:[%s10354_s1 + $0x20] sm:$0xff]  }
 0x5bd   : > { %6892 = vmatmul.mubr.msk.bf16.vlgmr.msra.gmra.mxu1 %vm336_vm0, %v2858_v28  ;;  %v2838_v33 = vmul.f32 %v7507_v0, %v6850_v40  ;;  %v7833_v28 = vld [vmem:[%s10354_s1 + $0x48] sm:$0xff]   ;;  %v7835_v43 = vld [vmem:[%s10354_s1 + $0x58] sm:$0xff]   ;;  %v7836_v40 = vld [vmem:[%s10354_s1 + $0x60] sm:$0xff]  }
 0x5be   : > { %v2727_v23 = vpop.f32.mrf.mxu1  ;;  %6904 = vmatpush3.bf16.msra.mxu1 %v7817_v56  ;;  %v7834_v56 = vld [vmem:[%s10354_s1 + $0x50] sm:$0xff]   ;;  %v7837_v0 = vld [vmem:[%s10354_s1 + $0x68] sm:$0xff]  }
 0x5bf   : > { %v2836_v5 = vmul.f32 %v7509_v6, %v2727_v23  ;;  %6905 = vmatprep.subr.bf16.mxu1 %v7818_v26  ;;  %v2860_v21 = vpack.c.bf16 %v2838_v33, %v2837_v7  ;;  %v7515_v50 = vpop.eup %7514  ;;  %v7838_v6 = vld [vmem:[%s10354_s1 + $0x70] sm:$0xff]   ;;  %v7839_v33 = vld [vmem:[%s10354_s1 + $0x78] sm:$0xff]  }
 0x5c0   : > { %v6853_v52 = vpop.f32.mrf.mxu1  ;;  %v7517_v51 = vpop.eup %7516 }
 0x5c1   : > { %v2859_v8 = vpack.c.bf16 %v2836_v5, %v2835_v39  ;;  %v7519_v34 = vpop.eup %7518 }
 0x5c2   : > { %v2740_v59 = vpop.f32.mrf.mxu1  ;;  %6906 = vmatpush3.bf16.msra.mxu1 %v7818_v26  ;;  %v2841_v20 = vmul.f32 %v7519_v34, %v6853_v52  ;;  %v7521_v29 = vpop.eup %7520 }
 0x5c3   : > { %6899 = vmatprep.mubr.msk.bf16.mxu0 %vm336_vm0, %v2859_v8  ;;  %6919 = vmatprep.subr.bf16.mxu1 %v7819_v17  ;;  %v2839_v44 = vmul.f32 %v7513_v13, %v2740_v59  ;;  %v7523_v53 = vpop.eup %7522 }
 0x5c4   : > { %v6854_v61 = vpop.f32.mrf.mxu1  ;;  %6900 = vmatmul.mubr.msk.bf16.vlgmr.msra.gmra.mxu0 %vm336_vm0, %v2860_v21  ;;  %v7525_v46 = vpop.eup %7524 }
 0x5c5   : > { %6912 = vmatpush3.bf16.msra.mxu0 %v7816_v27  ;;  %v2842_v18 = vmul.f32 %v7515_v50, %v6854_v61  ;;  %v7527_v38 = vpop.eup %7526  ;;  %v7832_v27 = vld [vmem:[%s10354_s1 + $0x40] sm:$0xff]  }
 0x5c6   : > { %v2743_v58 = vpop.f32.mrf.mxu1  ;;  %6913 = vmatprep.subr.bf16.mxu0 %v7820_v11 }
 0x5c7   : > { %v2840_v47 = vmul.f32 %v7517_v51, %v2743_v58  ;;  %v2862_v41 = vpack.c.bf16 %v2842_v18, %v2841_v20 }
 0x5c8   : > { %v6857_v25 = vpop.f32.mrf.mxu1 }
 0x5c9   : > { %v2861_v42 = vpack.c.bf16 %v2840_v47, %v2839_v44  ;;  %6914 = vmatpush3.bf16.msra.mxu0 %v7820_v11  ;;  %v2845_v62 = vmul.f32 %v7527_v38, %v6857_v25 }
 0x5ca   : > { %7193 = vmatprep.subr.msk.bf16.mxu0 %vm336_vm0, %v416_v2  ;;  %v2756_v3 = vpop.f32.mrf.mxu1 }
 0x5cb   : > { %6907 = vmatprep.mubr.msk.bf16.mxu1 %vm336_vm0, %v2861_v42  ;;  %v2843_v35 = vmul.f32 %v7521_v29, %v2756_v3 }
 0x5cc   : > { %v6858_v31 = vpop.f32.mrf.mxu1  ;;  %6908 = vmatmul.mubr.msk.bf16.vlgmr.msra.gmra.mxu1 %vm336_vm0, %v2862_v41 }
 0x5cd   : > { %6920 = vmatpush3.bf16.msra.mxu1 %v7819_v17  ;;  %v2846_v48 = vmul.f32 %v7523_v53, %v6858_v31 }
 0x5ce   : > { %v2759_v19 = vpop.f32.mrf.mxu1  ;;  %6921 = vmatprep.subr.bf16.mxu1 %v7821_v30 }
 0x5cf   : > { %v2844_v57 = vmul.f32 %v7525_v46, %v2759_v19  ;;  %v2864_v60 = vpack.c.bf16 %v2846_v48, %v2845_v62 }
 0x5d1   : > { %v2863_v14 = vpack.c.bf16 %v2844_v57, %v2843_v35  ;;  %6922 = vmatpush3.bf16.msra.mxu1 %v7821_v30 }
 0x5d2   : > { %6961 = vmatprep.subr.bf16.mxu1 %v9169_v16 }
 0x5d3   : > { %6915 = vmatprep.mubr.msk.bf16.mxu0 %vm336_vm0, %v2863_v14 }
 0x5d4   : > { %6916 = vmatmul.mubr.msk.bf16.vlgmr.msra.gmra.mxu0 %vm336_vm0, %v2864_v60 }
 0x5d5   : > { %6928 = vmatpush3.bf16.xpose.msra.mxu0 %v3395_v22  ;;  %6929 = vmatprep.mubr.msk.bf16.mxu0 %vm336_vm0, %v7822_v63 }
 0x5d6   : > { %6995 = vmatprep.subr.bf16.mxu0 %v7823_v55 }
 0x5dc   : > { %6930 = vmatmul.mubr.msk.bf16.vlgmr.msra.gmra.mxu0 %vm336_vm0, %v7824_v45 }
 0x5dd   : > { %6933 = vmatprep.mubr.msk.bf16.mxu0 %vm336_vm0, %v7825_v1  ;;  %6996 = vmatpush3.bf16.msra.mxu0 %v7823_v55 }
 0x5de   : > { %6997 = vmatprep.subr.bf16.mxu0 %v7826_v37 }
 0x5e1   : > { %6998 = vmatpush3.bf16.msra.mxu0 %v7826_v37 }
 0x5e2   : > { %7011 = vmatprep.subr.bf16.mxu0 %v9105_v15  ;;  %v7830_v15 = vld [vmem:[%s10354_s1 + $0x30] sm:$0xff]  }
 0x5e4   : > { %6934 = vmatmul.mubr.msk.bf16.gmra.mxu0 %vm336_vm0, %v7827_v12 }
 0x5e5   : > { %6937 = vmatprep.mubr.msk.bf16.mxu0 %vm336_vm0, %v7828_v9 }
 0x5ec   : > { %6938 = vmatmul.mubr.msk.bf16.gmra.mxu0 %vm336_vm0, %v7829_v49 }
 0x5ed   : > { %6941 = vmatprep.mubr.msk.bf16.mxu0 %vm336_vm0, %v7830_v15 }
 0x5f4   : > { %6942 = vmatmul.mubr.msk.bf16.gmra.mxu0 %vm336_vm0, %v7831_v54 }
 0x5f5   : > { %6945 = vmatprep.mubr.msk.bf16.mxu0 %vm336_vm0, %v7832_v27 }
 0x5fc   : > { %6946 = vmatmul.mubr.msk.bf16.gmra.mxu0 %vm336_vm0, %v7833_v28 }
 0x5fd   : > { %6949 = vmatprep.mubr.msk.bf16.mxu0 %vm336_vm0, %v7834_v56 }
 0x604   : > { %6950 = vmatmul.mubr.msk.bf16.gmra.mxu0 %vm336_vm0, %v7835_v43 }
 0x605   : > { %6953 = vmatprep.mubr.msk.bf16.mxu0 %vm336_vm0, %v7836_v40 }
 0x60c   : > { %6954 = vmatmul.mubr.msk.bf16.gmra.mxu0 %vm336_vm0, %v7837_v0 }
 0x60d   : > { %6957 = vmatprep.mubr.msk.bf16.mxu0 %vm336_vm0, %v7838_v6 }
 0x614   : > { %6958 = vmatmul.mubr.msk.bf16.gmra.mxu0 %vm336_vm0, %v7839_v33 }
 0x630   : > { %v2558_v23 = vpop.xlane.xlu0 %2557 }
 0x631   : > { %7528 = vrcp.f32 %v2558_v23 }
 0x634   : > { %v2552_v39 = vpop.xlane.xlu0 %2551 }
 0x635   : > { %v2561_v24 = vpop.xlane.xlu1 %2560  ;;  %7530 = vrcp.f32 %v2552_v39 }
 0x636   : > { %7532 = vrcp.f32 %v2561_v24 }
 0x639   : > { %v2555_v5 = vpop.xlane.xlu1 %2554 }
 0x63a   : > { %7534 = vrcp.f32 %v2555_v5 }
 0x63e   : > { %v7529_v52 = vpop.eup %7528 }
 0x642   : > { %v7531_v21 = vpop.eup %7530 }
 0x643   : > { %v7533_v17 = vpop.eup %7532 }
 0x647   : > { %v7535_v61 = vpop.eup %7534 }
 0x663   : > { %v6869_v26 = vpop.f32.mrf.mxu0 }
 0x664   : > { %v3337_v25 = vsel %vm336_vm0, %v6869_v26, 0.0 }
 0x665   : > { %v2907_v7 = vpop.f32.mrf.mxu0 }
 0x666   : > { %v3307_v53 = vsel %vm336_vm0, %v2907_v7, 0.0 }
 0x667   : > { %v6870_v59 = vpop.f32.mrf.mxu0 }
 0x668   : > { %v3352_v57 = vsel %vm336_vm0, %v6870_v59, 0.0 }
 0x669   : > { %v2910_v18 = vpop.f32.mrf.mxu0 }
 0x66a   : > { %v3322_v45 = vsel %vm336_vm0, %v2910_v18, 0.0 }
 0x66d   : > { %v6861_v8 = vpop.f32.mrf.mxu1 }
 0x66e   : > { %v2849_v50 = vmul.f32 %v7529_v52, %v6861_v8 }
 0x66f   : > { %v2772_v13 = vpop.f32.mrf.mxu1 }
 0x670   : > { %v2847_v58 = vmul.f32 %v7531_v21, %v2772_v13 }
 0x671   : > { %v6862_v51 = vpop.f32.mrf.mxu1 }
 0x672   : > { %v2850_v11 = vmul.f32 %v7533_v17, %v6862_v51 }
 0x673   : > { %v2775_v34 = vpop.f32.mrf.mxu1 }
 0x674   : > { %v2848_v44 = vmul.f32 %v7535_v61, %v2775_v34  ;;  %v6885_v47 = vpop.f32.mrf.mxu0  ;;  %v2866_v2 = vpack.c.bf16 %v2850_v11, %v2849_v50 }
 0x675   : > { %v6877_v20 = vpop.f32.mrf.mxu1  ;;  %v3340_v46 = vsel %vm336_vm0, %v6885_v47, 0.0 }
 0x676   : > { %v2865_v42 = vpack.c.bf16 %v2848_v44, %v2847_v58  ;;  %v3338_v41 = vsel %vm336_vm0, %v6877_v20, 0.0  ;;  %v3017_v3 = vpop.f32.mrf.mxu0 }
 0x677   : > { %v3339_v29 = vadd.f32 %v3338_v41, %v3337_v25  ;;  %v2962_v31 = vpop.f32.mrf.mxu1  ;;  %v3310_v62 = vsel %vm336_vm0, %v3017_v3, 0.0 }
 0x678   : > { %v3308_v48 = vsel %vm336_vm0, %v2962_v31, 0.0  ;;  %v6886_v19 = vpop.f32.mrf.mxu0  ;;  %6923 = vmatprep.mubr.msk.bf16.mxu1 %vm336_vm0, %v2865_v42 }
 0x679   : > { %v3309_v30 = vadd.f32 %v3308_v48, %v3307_v53  ;;  %v6878_v38 = vpop.f32.mrf.mxu1  ;;  %6924 = vmatmul.mubr.msk.bf16.vlgmr.msra.gmra.mxu1 %vm336_vm0, %v2866_v2  ;;  %v3341_v35 = vadd.f32 %v3340_v46, %v3339_v29  ;;  %v3355_v1 = vsel %vm336_vm0, %v6886_v19, 0.0 }
 0x67a   : > { %v3353_v14 = vsel %vm336_vm0, %v6878_v38, 0.0  ;;  %6962 = vmatpush3.bf16.msra.mxu1 %v9169_v16  ;;  %v3020_v22 = vpop.f32.mrf.mxu0 }
 0x67b   : > { %v3354_v60 = vadd.f32 %v3353_v14, %v3352_v57  ;;  %v2965_v63 = vpop.f32.mrf.mxu1  ;;  %v3311_v55 = vadd.f32 %v3310_v62, %v3309_v30  ;;  %7003 = vmatprep.subr.bf16.mxu1 %v8965_v10  ;;  %v3325_v15 = vsel %vm336_vm0, %v3020_v22, 0.0  ;;  %v3558_v57 = vstv %s3393_s25  ;;  %s7966_s25 = smov 96  }
 0x67c   : > { %v3323_v37 = vsel %vm336_vm0, %v2965_v63, 0.0  ;;  %vm9288_vm4 = vcmp.lt.s32.totalorder %v8161_v36, %v3558_v57 }
 0x67d   : > { %v3324_v12 = vadd.f32 %v3323_v37, %v3322_v45  ;;  %v6893_v9 = vpop.f32.mrf.mxu1  ;;  %v3356_v49 = vadd.f32 %v3355_v1, %v3354_v60 }
 0x67e   : > { %v3342_v54 = vsel %vm336_vm0, %v6893_v9, 0.0 }
 0x67f   : > { %v3343_v16 = vadd.f32 %v3342_v54, %v3341_v35  ;;  %v3072_v27 = vpop.f32.mrf.mxu1  ;;  %v3326_v28 = vadd.f32 %v3325_v15, %v3324_v12 }
 0x680   : > { %v3312_v56 = vsel %vm336_vm0, %v3072_v27, 0.0 }
 0x681   : > { %v3313_v43 = vadd.f32 %v3312_v56, %v3311_v55  ;;  %v6894_v10 = vpop.f32.mrf.mxu1 }
 0x682   : > { %v3357_v40 = vsel %vm336_vm0, %v6894_v10, 0.0 }
 0x683   : > { %v3358_v0 = vadd.f32 %v3357_v40, %v3356_v49  ;;  %v3075_v6 = vpop.f32.mrf.mxu1 }
 0x684   : > { %v3327_v33 = vsel %vm336_vm0, %v3075_v6, 0.0  ;;  %v6901_v23 = vpop.f32.mrf.mxu0 }
 0x685   : > { %v3328_v24 = vadd.f32 %v3327_v33, %v3326_v28  ;;  %v3344_v39 = vsel %vm336_vm0, %v6901_v23, 0.0 }
 0x686   : > { %v3345_v5 = vadd.f32 %v3344_v39, %v3343_v16  ;;  %v3127_v26 = vpop.f32.mrf.mxu0 }
 0x687   : > { %v3314_v7 = vsel %vm336_vm0, %v3127_v26, 0.0 }
 0x688   : > { %v3315_v52 = vadd.f32 %v3314_v7, %v3313_v43  ;;  %v6902_v8 = vpop.f32.mrf.mxu0 }
 0x689   : > { %v3359_v21 = vsel %vm336_vm0, %v6902_v8, 0.0 }
 0x68a   : > { %v3360_v59 = vadd.f32 %v3359_v21, %v3358_v0  ;;  %v3130_v17 = vpop.f32.mrf.mxu0 }
 0x68b   : > { %v3329_v13 = vsel %vm336_vm0, %v3130_v17, 0.0 }
 0x68c   : > { %v3330_v61 = vadd.f32 %v3329_v13, %v3328_v24  ;;  %v6909_v50 = vpop.f32.mrf.mxu1 }
 0x68d   : > { %v3346_v51 = vsel %vm336_vm0, %v6909_v50, 0.0 }
 0x68e   : > { %v3347_v18 = vadd.f32 %v3346_v51, %v3345_v5  ;;  %v3182_v58 = vpop.f32.mrf.mxu1 }
 0x68f   : > { %v3316_v11 = vsel %vm336_vm0, %v3182_v58, 0.0 }
 0x690   : > { %v3317_v34 = vadd.f32 %v3316_v11, %v3315_v52  ;;  %v6910_v44 = vpop.f32.mrf.mxu1 }
 0x691   : > { %v3361_v47 = vsel %vm336_vm0, %v6910_v44, 0.0 }
 0x692   : > { %v3362_v2 = vadd.f32 %v3361_v47, %v3360_v59  ;;  %v3185_v20 = vpop.f32.mrf.mxu1 }
 0x693   : > { %v3331_v29 = vsel %vm336_vm0, %v3185_v20, 0.0 }
 0x694   : > { %v6917_v25 = vpop.f32.mrf.mxu0  ;;  %v3332_v19 = vadd.f32 %v3331_v29, %v3330_v61 }
 0x695   : > { %v3348_v42 = vsel %vm336_vm0, %v6917_v25, 0.0 }
 0x696   : > { %v9275_v41 = vadd.f32 %v3348_v42, %v3347_v18  ;;  %v3237_v3 = vpop.f32.mrf.mxu0 }
 0x697   : > { %v3318_v31 = vsel %vm336_vm0, %v3237_v3, 0.0 }
 0x698   : > { %v9279_v53 = vadd.f32 %v3318_v31, %v3317_v34  ;;  %v6918_v46 = vpop.f32.mrf.mxu0 }
 0x699   : > { %v3363_v48 = vsel %vm336_vm0, %v6918_v46, 0.0 }
 0x69a   : > { %v9282_v30 = vadd.f32 %v3363_v48, %v3362_v2  ;;  %v3240_v38 = vpop.f32.mrf.mxu0 }
 0x69b   : > { %v3333_v35 = vsel %vm336_vm0, %v3240_v38, 0.0 }
 0x69c   : > { %v9285_v62 = vadd.f32 %v3333_v35, %v3332_v19  ;;  %v6931_v14 = vpop.f32.mrf.mxu0 }
 0x69d   : > { %v9300_v1 = vsel %vm9288_vm4, %v6931_v14, -1e+30 }
 0x69e   : > { %v3431_v22 = vpop.f32.mrf.mxu0  ;;  %v3600_v9 = vsel %vm868_vm2, %v9300_v1, -inf }
 0x69f   : > { %v9294_v63 = vsel %vm9288_vm4, %v3431_v22, -1e+30 }
 0x6a0   : > { %v3594_v55 = vsel %vm868_vm2, %v9294_v63, -inf  ;;  %v6932_v45 = vpop.f32.mrf.mxu0 }
 0x6a1   : > { %3595 = vmax.xlane.f32.xlu0 %v3594_v55  ;;  %v9312_v54 = vsel %vm9288_vm4, %v6932_v45, -1e+30 }
 0x6a2   : > { %v3434_v37 = vpop.f32.mrf.mxu0  ;;  %v3603_v28 = vsel %vm868_vm2, %v9312_v54, -inf }
 0x6a3   : > { %v9304_v12 = vsel %vm9288_vm4, %v3434_v37, -1e+30 }
 0x6a4   : > { %v3597_v49 = vsel %vm868_vm2, %v9304_v12, -inf  ;;  %v6935_v15 = vpop.f32.mrf.mxu0 }
 0x6a5   : > { %3601 = vmax.xlane.f32.xlu0 %v3600_v9  ;;  %3598 = vmax.xlane.f32.xlu1 %v3597_v49  ;;  %v9324_v10 = vsel %vm9288_vm4, %v6935_v15, -1e+30 }
 0x6a6   : > { %v3447_v16 = vpop.f32.mrf.mxu0  ;;  %v3612_v6 = vsel %vm868_vm2, %v9324_v10, -inf }
 0x6a7   : > { %v9316_v27 = vsel %vm9288_vm4, %v3447_v16, -1e+30 }
 0x6a8   : > { %v3606_v56 = vsel %vm868_vm2, %v9316_v27, -inf  ;;  %v6936_v43 = vpop.f32.mrf.mxu0 }
 0x6a9   : > { %3604 = vmax.xlane.f32.xlu1 %v3603_v28  ;;  %3607 = vmax.xlane.f32.xlu0 %v3606_v56  ;;  %v9336_v24 = vsel %vm9288_vm4, %v6936_v43, -1e+30 }
 0x6aa   : > { %v3450_v40 = vpop.f32.mrf.mxu0  ;;  %v3615_v26 = vsel %vm868_vm2, %v9336_v24, -inf }
 0x6ab   : > { %v9328_v0 = vsel %vm9288_vm4, %v3450_v40, -1e+30 }
 0x6ac   : > { %v3609_v33 = vsel %vm868_vm2, %v9328_v0, -inf  ;;  %v6939_v23 = vpop.f32.mrf.mxu0 }
 0x6ad   : > { %3613 = vmax.xlane.f32.xlu0 %v3612_v6  ;;  %3610 = vmax.xlane.f32.xlu1 %v3609_v33  ;;  %v9348_v8 = vsel %vm9288_vm4, %v6939_v23, -1e+30 }
 0x6ae   : > { %v3463_v39 = vpop.f32.mrf.mxu0  ;;  %v3624_v17 = vsel %vm868_vm2, %v9348_v8, -inf }
 0x6af   : > { %v9340_v5 = vsel %vm9288_vm4, %v3463_v39, -1e+30 }
 0x6b0   : > { %v3618_v7 = vsel %vm868_vm2, %v9340_v5, -inf  ;;  %v6940_v52 = vpop.f32.mrf.mxu0 }
 0x6b1   : > { %3616 = vmax.xlane.f32.xlu1 %v3615_v26  ;;  %3619 = vmax.xlane.f32.xlu0 %v3618_v7  ;;  %v9360_v50 = vsel %vm9288_vm4, %v6940_v52, -1e+30 }
 0x6b2   : > { %v3466_v21 = vpop.f32.mrf.mxu0  ;;  %v3627_v58 = vsel %vm868_vm2, %v9360_v50, -inf }
 0x6b3   : > { %v9352_v59 = vsel %vm9288_vm4, %v3466_v21, -1e+30 }
 0x6b4   : > { %v3621_v13 = vsel %vm868_vm2, %v9352_v59, -inf  ;;  %v6943_v61 = vpop.f32.mrf.mxu0 }
 0x6b5   : > { %3625 = vmax.xlane.f32.xlu0 %v3624_v17  ;;  %3622 = vmax.xlane.f32.xlu1 %v3621_v13  ;;  %v9372_v44 = vsel %vm9288_vm4, %v6943_v61, -1e+30 }
 0x6b6   : > { %v3479_v51 = vpop.f32.mrf.mxu0  ;;  %v3636_v20 = vsel %vm868_vm2, %v9372_v44, -inf }
 0x6b7   : > { %v9364_v18 = vsel %vm9288_vm4, %v3479_v51, -1e+30 }
 0x6b8   : > { %v3630_v11 = vsel %vm868_vm2, %v9364_v18, -inf  ;;  %v6944_v34 = vpop.f32.mrf.mxu0 }
 0x6b9   : > { %3628 = vmax.xlane.f32.xlu1 %v3627_v58  ;;  %3631 = vmax.xlane.f32.xlu0 %v3630_v11  ;;  %v9384_v3 = vsel %vm9288_vm4, %v6944_v34, -1e+30 }
 0x6ba   : > { %v3482_v47 = vpop.f32.mrf.mxu0  ;;  %v3639_v46 = vsel %vm868_vm2, %v9384_v3, -inf }
 0x6bb   : > { %v9376_v2 = vsel %vm9288_vm4, %v3482_v47, -1e+30 }
 0x6bc   : > { %v3633_v25 = vsel %vm868_vm2, %v9376_v2, -inf  ;;  %v6947_v42 = vpop.f32.mrf.mxu0 }
 0x6bd   : > { %3637 = vmax.xlane.f32.xlu0 %v3636_v20  ;;  %3634 = vmax.xlane.f32.xlu1 %v3633_v25  ;;  %v9396_v38 = vsel %vm9288_vm4, %v6947_v42, -1e+30 }
 0x6be   : > { %v3495_v29 = vpop.f32.mrf.mxu0  ;;  %v3648_v14 = vsel %vm868_vm2, %v9396_v38, -inf }
 0x6bf   : > { %v9388_v31 = vsel %vm9288_vm4, %v3495_v29, -1e+30 }
 0x6c0   : > { %v3642_v48 = vsel %vm868_vm2, %v9388_v31, -inf  ;;  %v6948_v19 = vpop.f32.mrf.mxu0 }
 0x6c1   : > { %3640 = vmax.xlane.f32.xlu1 %v3639_v46  ;;  %3643 = vmax.xlane.f32.xlu0 %v3642_v48  ;;  %v9408_v45 = vsel %vm9288_vm4, %v6948_v19, -1e+30 }
 0x6c2   : > { %v3498_v35 = vpop.f32.mrf.mxu0  ;;  %v3651_v49 = vsel %vm868_vm2, %v9408_v45, -inf }
 0x6c3   : > { %v9400_v57 = vsel %vm9288_vm4, %v3498_v35, -1e+30 }
 0x6c4   : > { %v3645_v22 = vsel %vm868_vm2, %v9400_v57, -inf  ;;  %v6951_v55 = vpop.f32.mrf.mxu0 }
 0x6c5   : > { %3649 = vmax.xlane.f32.xlu0 %v3648_v14  ;;  %3646 = vmax.xlane.f32.xlu1 %v3645_v22  ;;  %v9420_v28 = vsel %vm9288_vm4, %v6951_v55, -1e+30 }
 0x6c6   : > { %v3511_v37 = vpop.f32.mrf.mxu0  ;;  %v3660_v40 = vsel %vm868_vm2, %v9420_v28, -inf }
 0x6c7   : > { %v9412_v9 = vsel %vm9288_vm4, %v3511_v37, -1e+30 }
 0x6c8   : > { %v3654_v15 = vsel %vm868_vm2, %v9412_v9, -inf  ;;  %v6952_v16 = vpop.f32.mrf.mxu0 }
 0x6c9   : > { %3652 = vmax.xlane.f32.xlu1 %v3651_v49  ;;  %3655 = vmax.xlane.f32.xlu0 %v3654_v15  ;;  %v9432_v23 = vsel %vm9288_vm4, %v6952_v16, -1e+30 }
 0x6ca   : > { %v3514_v56 = vpop.f32.mrf.mxu0  ;;  %v3663_v7 = vsel %vm868_vm2, %v9432_v23, -inf }
 0x6cb   : > { %v9424_v43 = vsel %vm9288_vm4, %v3514_v56, -1e+30 }
 0x6cc   : > { %v3657_v6 = vsel %vm868_vm2, %v9424_v43, -inf  ;;  %v6955_v33 = vpop.f32.mrf.mxu0 }
 0x6cd   : > { %3661 = vmax.xlane.f32.xlu0 %v3660_v40  ;;  %3658 = vmax.xlane.f32.xlu1 %v3657_v6  ;;  %v9444_v17 = vsel %vm9288_vm4, %v6955_v33, -1e+30 }
 0x6ce   : > { %v3527_v39 = vpop.f32.mrf.mxu0  ;;  %v3672_v51 = vsel %vm868_vm2, %v9444_v17, -inf }
 0x6cf   : > { %v9436_v26 = vsel %vm9288_vm4, %v3527_v39, -1e+30 }
 0x6d0   : > { %v3666_v52 = vsel %vm868_vm2, %v9436_v26, -inf  ;;  %v6956_v21 = vpop.f32.mrf.mxu0 }
 0x6d1   : > { %3664 = vmax.xlane.f32.xlu1 %v3663_v7  ;;  %3667 = vmax.xlane.f32.xlu0 %v3666_v52  ;;  %v9456_v11 = vsel %vm9288_vm4, %v6956_v21, -1e+30 }
 0x6d2   : > { %v3530_v13 = vpop.f32.mrf.mxu0  ;;  %v3675_v34 = vsel %vm868_vm2, %v9456_v11, -inf }
 0x6d3   : > { %v9448_v61 = vsel %vm9288_vm4, %v3530_v13, -1e+30 }
 0x6d4   : > { %v3669_v58 = vsel %vm868_vm2, %v9448_v61, -inf }
 0x6d5   : > { %3673 = vmax.xlane.f32.xlu0 %v3672_v51  ;;  %3670 = vmax.xlane.f32.xlu1 %v3669_v58 }
 0x6d9   : > { %3676 = vmax.xlane.f32.xlu1 %v3675_v34 }
 0x72a   : > { %v3596_v47 = vpop.xlane.xlu0 %3595 }
 0x72b   : > { %v3690_v20 = vsub.f32 %v9294_v63, %v3596_v47 }
 0x72d   : > { %v3722_v25 = vmul.f32 1.442695, %v3690_v20 }
 0x72e   : > { %v3602_v42 = vpop.xlane.xlu0 %3601  ;;  %v3599_v29 = vpop.xlane.xlu1 %3598 }
 0x72f   : > { %7536 = vpow2.f32 %v3722_v25  ;;  %v3692_v46 = vsub.f32 %v9300_v1, %v3602_v42  ;;  %v3691_v48 = vsub.f32 %v9304_v12, %v3599_v29 }
 0x731   : > { %v3726_v19 = vmul.f32 1.442695, %v3692_v46  ;;  %v3724_v35 = vmul.f32 1.442695, %v3691_v48 }
 0x732   : > { %v3605_v14 = vpop.xlane.xlu1 %3604  ;;  %v3608_v22 = vpop.xlane.xlu0 %3607 }
 0x733   : > { %7538 = vpow2.f32 %v3726_v19  ;;  %v3693_v55 = vsub.f32 %v9312_v54, %v3605_v14  ;;  %v3694_v37 = vsub.f32 %v9316_v27, %v3608_v22 }
 0x734   : > { %7540 = vpow2.f32 %v3724_v35 }
 0x735   : > { %v3728_v49 = vmul.f32 1.442695, %v3693_v55  ;;  %v3730_v16 = vmul.f32 1.442695, %v3694_v37 }
 0x736   : > { %v3614_v63 = vpop.xlane.xlu0 %3613  ;;  %v3611_v15 = vpop.xlane.xlu1 %3610 }
 0x737   : > { %7542 = vpow2.f32 %v3728_v49  ;;  %v3696_v56 = vsub.f32 %v9324_v10, %v3614_v63  ;;  %v3695_v1 = vsub.f32 %v9328_v0, %v3611_v15 }
 0x738   : > { %7544 = vpow2.f32 %v3730_v16 }
 0x739   : > { %v3732_v12 = vmul.f32 1.442695, %v3695_v1  ;;  %v6925_v40 = vpop.f32.mrf.mxu1  ;;  %v3734_v6 = vmul.f32 1.442695, %v3696_v56 }
 0x73a   : > { %v3350_v33 = vsel %vm336_vm0, %v6925_v40, 0.0  ;;  %v3617_v39 = vpop.xlane.xlu1 %3616  ;;  %v3620_v7 = vpop.xlane.xlu0 %3619 }
 0x73b   : > { %v9469_v54 = vadd.f32 %v3350_v33, %v9275_v41  ;;  %v3697_v27 = vsub.f32 %v9336_v24, %v3617_v39  ;;  %v3698_v52 = vsub.f32 %v9340_v5, %v3620_v7  ;;  %v3292_v21 = vpop.f32.mrf.mxu1  ;;  %7546 = vpow2.f32 %v3732_v12  ;;  %v9498_v12 = vld [vmem:[%s10358_s5 + $0x18] sm:$0xff]  }
 0x73c   : > { %v7537_v13 = vpop.eup %7536  ;;  %v3320_v10 = vsel %vm336_vm0, %v3292_v21, 0.0  ;;  %7548 = vpow2.f32 %v3734_v6 }
 0x73d   : > { %v3736_v0 = vmul.f32 1.442695, %v3697_v27  ;;  %v3738_v51 = vmul.f32 1.442695, %v3698_v52  ;;  %v9475_v58 = vadd.f32 %v3320_v10, %v9279_v53  ;;  %v6926_v34 = vpop.f32.mrf.mxu1  ;;  %v3786_v24 = vsel %vm868_vm2, %v7537_v13, 0.0 }
 0x73e   : > { %v3365_v47 = vsel %vm336_vm0, %v6926_v34, 0.0  ;;  %v3626_v41 = vpop.xlane.xlu0 %3625  ;;  %v3623_v20 = vpop.xlane.xlu1 %3622  ;;  %3787 = vadd.xlane.f32.xlu0 %v3786_v24 }
 0x73f   : > { %7550 = vpow2.f32 %v3736_v0  ;;  %v9480_v5 = vadd.f32 %v3365_v47, %v9282_v30  ;;  %v3700_v25 = vsub.f32 %v9348_v8, %v3626_v41  ;;  %v3699_v53 = vsub.f32 %v9352_v59, %v3623_v20  ;;  %v9520_v47 = vld [vmem:[%s10358_s5 + $0x38] sm:$0xff]  }
 0x740   : > { %v7539_v42 = vpop.eup %7538  ;;  %7552 = vpow2.f32 %v3738_v51 }
 0x741   : > { %v7541_v29 = vpop.eup %7540  ;;  %v3742_v46 = vmul.f32 1.442695, %v3700_v25  ;;  %v3792_v48 = vsel %vm868_vm2, %v7539_v42, 0.0  ;;  %v3740_v19 = vmul.f32 1.442695, %v3699_v53 }
 0x742   : > { %v3629_v35 = vpop.xlane.xlu1 %3628  ;;  %v3632_v14 = vpop.xlane.xlu0 %3631  ;;  %v3789_v22 = vsel %vm868_vm2, %v7541_v29, 0.0  ;;  %v3882_v55 = vpack.c.bf16 %v7541_v29, %v7537_v13  ;;  %3793 = vadd.xlane.f32.xlu0 %v3792_v48 }
 0x743   : > { %7554 = vpow2.f32 %v3742_v46  ;;  %v3701_v30 = vsub.f32 %v9360_v50, %v3629_v35  ;;  %v3702_v8 = vsub.f32 %v9364_v18, %v3632_v14  ;;  %3790 = vadd.xlane.f32.xlu1 %v3789_v22 }
 0x744   : > { %v7543_v37 = vpop.eup %7542  ;;  %7556 = vpow2.f32 %v3740_v19  ;;  %6963 = vmatprep.mubr.msk.bf16.mxu1 %vm868_vm2, %v3882_v55 }
 0x745   : > { %v3744_v59 = vmul.f32 1.442695, %v3701_v30  ;;  %v3795_v49 = vsel %vm868_vm2, %v7543_v37, 0.0  ;;  %v3883_v63 = vpack.c.bf16 %v7543_v37, %v7539_v42  ;;  %v3746_v56 = vmul.f32 1.442695, %v3702_v8  ;;  %v9493_v18 = vpop.eup %7544 }
 0x746   : > { %v3638_v15 = vpop.xlane.xlu0 %3637  ;;  %v3635_v16 = vpop.xlane.xlu1 %3634 }
 0x747   : > { %7558 = vpow2.f32 %v3744_v59  ;;  %v3704_v1 = vsub.f32 %v9372_v44, %v3638_v15  ;;  %v3703_v50 = vsub.f32 %v9376_v2, %v3635_v16  ;;  %3796 = vadd.xlane.f32.xlu1 %v3795_v49  ;;  %6964 = vmatmul.mubr.msk.bf16.vlgmr.msra.gmra.mxu1 %vm868_vm2, %v3883_v63  ;;  %v7841_v44 = vld [vmem:[%s10358_s5 + $0x10] sm:$0xff]  }
 0x748   : > { %7004 = vmatpush3.bf16.msra.mxu1 %v9498_v12  ;;  %v9501_v40 = vpop.eup %7546  ;;  %7560 = vpow2.f32 %v3746_v56 }
 0x749   : > { %v3748_v6 = vmul.f32 1.442695, %v3703_v50  ;;  %7005 = vmatprep.subr.bf16.mxu1 %v7841_v44  ;;  %v3750_v2 = vmul.f32 1.442695, %v3704_v1  ;;  %v3884_v7 = vpack.c.bf16 %v9501_v40, %v9493_v18  ;;  %v9508_v27 = vpop.eup %7548 }
 0x74a   : > { %v3641_v33 = vpop.xlane.xlu1 %3640  ;;  %v3644_v39 = vpop.xlane.xlu0 %3643 }
 0x74b   : > { %v3705_v52 = vsub.f32 %v9384_v3, %v3641_v33  ;;  %v3706_v21 = vsub.f32 %v9388_v31, %v3644_v39  ;;  %7562 = vpow2.f32 %v3748_v6  ;;  %6967 = vmatprep.mubr.msk.bf16.mxu1 %vm868_vm2, %v3884_v7 }
 0x74c   : > { %v9512_v13 = vpop.eup %7550  ;;  %7006 = vmatpush3.bf16.msra.mxu1 %v7841_v44  ;;  %7564 = vpow2.f32 %v3750_v2 }
 0x74d   : > { %v7553_v10 = vpop.eup %7552  ;;  %v3752_v0 = vmul.f32 1.442695, %v3705_v52  ;;  %v3754_v51 = vmul.f32 1.442695, %v3706_v21  ;;  %v3885_v34 = vpack.c.bf16 %v9512_v13, %v9508_v27  ;;  %7019 = vmatprep.subr.bf16.mxu1 %v9520_v47 }
 0x74e   : > { %v3650_v3 = vpop.xlane.xlu0 %3649  ;;  %v3647_v31 = vpop.xlane.xlu1 %3646  ;;  %v3810_v41 = vsel %vm868_vm2, %v7553_v10, 0.0 }
 0x74f   : > { %7566 = vpow2.f32 %v3752_v0  ;;  %v3708_v20 = vsub.f32 %v9396_v38, %v3650_v3  ;;  %v3707_v24 = vsub.f32 %v9400_v57, %v3647_v31  ;;  %3811 = vadd.xlane.f32.xlu0 %v3810_v41  ;;  %6968 = vmatmul.mubr.msk.bf16.gmra.mxu1 %vm868_vm2, %v3885_v34 }
 0x750   : > { %v7555_v25 = vpop.eup %7554  ;;  %7568 = vpow2.f32 %v3754_v51 }
 0x751   : > { %v7557_v42 = vpop.eup %7556  ;;  %v3758_v53 = vmul.f32 1.442695, %v3708_v20  ;;  %v3756_v29 = vmul.f32 1.442695, %v3707_v24  ;;  %v3816_v46 = vsel %vm868_vm2, %v7555_v25, 0.0 }
 0x752   : > { %v3653_v48 = vpop.xlane.xlu1 %3652  ;;  %v3656_v19 = vpop.xlane.xlu0 %3655  ;;  %v3813_v35 = vsel %vm868_vm2, %v7557_v42, 0.0  ;;  %v3886_v14 = vpack.c.bf16 %v7557_v42, %v7553_v10 }
 0x753   : > { %7570 = vpow2.f32 %v3758_v53  ;;  %v3709_v38 = vsub.f32 %v9408_v45, %v3653_v48  ;;  %v3710_v57 = vsub.f32 %v9412_v9, %v3656_v19  ;;  %3817 = vadd.xlane.f32.xlu0 %v3816_v46  ;;  %3814 = vadd.xlane.f32.xlu1 %v3813_v35  ;;  %v6959_v46 = vpop.f32.mrf.mxu0 }
 0x754   : > { %v7559_v22 = vpop.eup %7558  ;;  %7572 = vpow2.f32 %v3756_v29  ;;  %6971 = vmatprep.mubr.msk.bf16.mxu1 %vm868_vm2, %v3886_v14 }
 0x755   : > { %v3760_v55 = vmul.f32 1.442695, %v3709_v38  ;;  %v3819_v30 = vsel %vm868_vm2, %v7559_v22, 0.0  ;;  %v3887_v8 = vpack.c.bf16 %v7559_v22, %v7555_v25  ;;  %v3762_v49 = vmul.f32 1.442695, %v3710_v57  ;;  %v9536_v9 = vpop.eup %7560  ;;  %v3543_v14 = vpop.f32.mrf.mxu0 }
 0x756   : > { %v3662_v37 = vpop.xlane.xlu0 %3661  ;;  %v3659_v59 = vpop.xlane.xlu1 %3658  ;;  %v3822_v60 = vsel %vm868_vm2, %v9536_v9, 0.0 }
 0x757   : > { %7574 = vpow2.f32 %v3760_v55  ;;  %v3712_v63 = vsub.f32 %v9420_v28, %v3662_v37  ;;  %v3711_v45 = vsub.f32 %v9424_v43, %v3659_v59  ;;  %3820 = vadd.xlane.f32.xlu1 %v3819_v30  ;;  %6972 = vmatmul.mubr.msk.bf16.gmra.mxu1 %vm868_vm2, %v3887_v8  ;;  %v6960_v30 = vpop.f32.mrf.mxu0 }
 0x758   : > { %v9538_v15 = vpop.eup %7562  ;;  %7576 = vpow2.f32 %v3762_v49  ;;  %v9567_v49 = vsel %vm9288_vm4, %v3543_v14, -1e+30 }
 0x759   : > { %v3764_v16 = vmul.f32 1.442695, %v3711_v45  ;;  %v3766_v56 = vmul.f32 1.442695, %v3712_v63  ;;  %v3888_v6 = vpack.c.bf16 %v9538_v15, %v9536_v9  ;;  %v9542_v44 = vpop.eup %7564 }
 0x75a   : > { %v3665_v1 = vpop.xlane.xlu1 %3664  ;;  %v3668_v50 = vpop.xlane.xlu0 %3667 }
 0x75b   : > { %v3713_v28 = vsub.f32 %v9432_v23, %v3665_v1  ;;  %v3714_v43 = vsub.f32 %v9436_v26, %v3668_v50  ;;  %7578 = vpow2.f32 %v3764_v16  ;;  %6975 = vmatprep.mubr.msk.bf16.mxu1 %vm868_vm2, %v3888_v6  ;;  %v3546_v16 = vpop.f32.mrf.mxu0  ;;  %v3678_v1 = vsel %vm868_vm2, %v9567_v49, -inf }
 0x75c   : > { %v9546_v2 = vpop.eup %7566  ;;  %7580 = vpow2.f32 %v3766_v56  ;;  %v9575_v50 = vsel %vm9288_vm4, %v6959_v46, -1e+30 }
 0x75d   : > { %v7569_v33 = vpop.eup %7568  ;;  %v3768_v39 = vmul.f32 1.442695, %v3713_v28  ;;  %v3770_v7 = vmul.f32 1.442695, %v3714_v43  ;;  %v3889_v52 = vpack.c.bf16 %v9546_v2, %v9542_v44  ;;  %v9580_v28 = vsel %vm9288_vm4, %v3546_v16, -1e+30 }
 0x75e   : > { %v3834_v21 = vsel %vm868_vm2, %v7569_v33, 0.0  ;;  %v3674_v10 = vpop.xlane.xlu0 %3673  ;;  %v3671_v0 = vpop.xlane.xlu1 %3670 }
 0x75f   : > { %7582 = vpow2.f32 %v3768_v39  ;;  %3835 = vadd.xlane.f32.xlu0 %v3834_v21  ;;  %v3716_v23 = vsub.f32 %v9444_v17, %v3674_v10  ;;  %v3715_v26 = vsub.f32 %v9448_v61, %v3671_v0  ;;  %6976 = vmatmul.mubr.msk.bf16.gmra.mxu1 %vm868_vm2, %v3889_v52  ;;  %v3681_v39 = vsel %vm868_vm2, %v9580_v28, -inf }
 0x760   : > { %v7571_v51 = vpop.eup %7570  ;;  %7584 = vpow2.f32 %v3770_v7  ;;  %v9589_v7 = vsel %vm9288_vm4, %v6960_v30, -1e+30  ;;  %v3798_v21 = vsel %vm868_vm2, %v9493_v18, 0.0  ;;  %v3804_v10 = vsel %vm868_vm2, %v9508_v27, 0.0 }
 0x761   : > { %v7573_v34 = vpop.eup %7572  ;;  %v3774_v3 = vmul.f32 1.442695, %v3716_v23  ;;  %v3772_v31 = vmul.f32 1.442695, %v3715_v26  ;;  %v3840_v41 = vsel %vm868_vm2, %v7571_v51, 0.0  ;;  %v3687_v52 = vsel %vm868_vm2, %v9589_v7, -inf }
 0x762   : > { %v3837_v20 = vsel %vm868_vm2, %v7573_v34, 0.0  ;;  %v3677_v24 = vpop.xlane.xlu1 %3676  ;;  %v3890_v25 = vpack.c.bf16 %v7573_v34, %v7569_v33  ;;  %v3684_v33 = vsel %vm868_vm2, %v9575_v50, -inf  ;;  %v3801_v0 = vsel %vm868_vm2, %v9501_v40, 0.0 }
 0x763   : > { %7586 = vpow2.f32 %v3774_v3  ;;  %3841 = vadd.xlane.f32.xlu0 %v3840_v41  ;;  %3838 = vadd.xlane.f32.xlu1 %v3837_v20  ;;  %v3717_v17 = vsub.f32 %v9456_v11, %v3677_v24  ;;  %v3807_v23 = vsel %vm868_vm2, %v9512_v13, 0.0  ;;  %v3828_v18 = vsel %vm868_vm2, %v9542_v44, 0.0 }
 0x764   : > { %v7575_v42 = vpop.eup %7574  ;;  %7588 = vpow2.f32 %v3772_v31  ;;  %6979 = vmatprep.mubr.msk.bf16.mxu1 %vm868_vm2, %v3890_v25  ;;  %v3825_v26 = vsel %vm868_vm2, %v9538_v15, 0.0  ;;  %v3831_v27 = vsel %vm868_vm2, %v9546_v2, 0.0 }
 0x765   : > { %v3776_v61 = vmul.f32 1.442695, %v3717_v17  ;;  %v3843_v53 = vsel %vm868_vm2, %v7575_v42, 0.0  ;;  %v3891_v29 = vpack.c.bf16 %v7575_v42, %v7571_v51  ;;  %v7577_v48 = vpop.eup %7576 }
 0x766   : > { %v3846_v40 = vsel %vm868_vm2, %v7577_v48, 0.0 }
 0x767   : > { %7590 = vpow2.f32 %v3776_v61  ;;  %3844 = vadd.xlane.f32.xlu1 %v3843_v53  ;;  %6980 = vmatmul.mubr.msk.bf16.gmra.mxu1 %vm868_vm2, %v3891_v29 }
 0x768   : > { %v7579_v19 = vpop.eup %7578 }
 0x769   : > { %v3892_v35 = vpack.c.bf16 %v7579_v19, %v7577_v48  ;;  %v7581_v38 = vpop.eup %7580  ;;  %v3849_v13 = vsel %vm868_vm2, %v7579_v19, 0.0 }
 0x76a   : > { %v3852_v9 = vsel %vm868_vm2, %v7581_v38, 0.0 }
 0x76b   : > { %6983 = vmatprep.mubr.msk.bf16.mxu1 %vm868_vm2, %v3892_v35 }
 0x76c   : > { %v7583_v57 = vpop.eup %7582 }
 0x76d   : > { %v7585_v11 = vpop.eup %7584  ;;  %v3893_v22 = vpack.c.bf16 %v7583_v57, %v7581_v38  ;;  %v3855_v44 = vsel %vm868_vm2, %v7583_v57, 0.0  ;;  %v9630_v57 = vpop.f32.mrf.mxu1 }
 0x76e   : > { %v3858_v55 = vsel %vm868_vm2, %v7585_v11, 0.0 }
 0x76f   : > { %3859 = vadd.xlane.f32.xlu0 %v3858_v55  ;;  %6984 = vmatmul.mubr.msk.bf16.gmra.mxu1 %vm868_vm2, %v3893_v22 }
 0x770   : > { %v7587_v8 = vpop.eup %7586 }
 0x771   : > { %v7589_v37 = vpop.eup %7588  ;;  %v3864_v59 = vsel %vm868_vm2, %v7587_v8, 0.0 }
 0x772   : > { %v3861_v63 = vsel %vm868_vm2, %v7589_v37, 0.0  ;;  %v3894_v45 = vpack.c.bf16 %v7589_v37, %v7585_v11 }
 0x773   : > { %3865 = vadd.xlane.f32.xlu0 %v3864_v59  ;;  %3862 = vadd.xlane.f32.xlu1 %v3861_v63 }
 0x774   : > { %v7591_v56 = vpop.eup %7590  ;;  %6987 = vmatprep.mubr.msk.bf16.mxu1 %vm868_vm2, %v3894_v45 }
 0x775   : > { %v3867_v6 = vsel %vm868_vm2, %v7591_v56, 0.0  ;;  %v3895_v43 = vpack.c.bf16 %v7591_v56, %v7587_v8 }
 0x777   : > { %3868 = vadd.xlane.f32.xlu1 %v3867_v6  ;;  %3679 = vmax.xlane.f32.xlu0 %v3678_v1 }
 0x778   : > { %6988 = vmatmul.mubr.msk.bf16.gmra.mxu1 %vm868_vm2, %v3895_v43 }
 0x77b   : > { %3685 = vmax.xlane.f32.xlu0 %v3684_v33  ;;  %3682 = vmax.xlane.f32.xlu1 %v3681_v39 }
 0x77f   : > { %3799 = vadd.xlane.f32.xlu0 %v3798_v21  ;;  %3688 = vmax.xlane.f32.xlu1 %v3687_v52 }
 0x783   : > { %3805 = vadd.xlane.f32.xlu0 %v3804_v10  ;;  %3802 = vadd.xlane.f32.xlu1 %v3801_v0 }
 0x787   : > { %3823 = vadd.xlane.f32.xlu0 %v3822_v60  ;;  %3808 = vadd.xlane.f32.xlu1 %v3807_v23 }
 0x78b   : > { %3829 = vadd.xlane.f32.xlu0 %v3828_v18  ;;  %3826 = vadd.xlane.f32.xlu1 %v3825_v26 }
 0x78f   : > { %3847 = vadd.xlane.f32.xlu0 %v3846_v40  ;;  %3832 = vadd.xlane.f32.xlu1 %v3831_v27 }
 0x793   : > { %3853 = vadd.xlane.f32.xlu0 %v3852_v9  ;;  %3850 = vadd.xlane.f32.xlu1 %v3849_v13  ;;  %v9642_v13 = vld [vmem:[%s10358_s5 + $0x28] sm:$0xff]  }
 0x797   : > { %3856 = vadd.xlane.f32.xlu1 %v3855_v44 }
 0x7c7   : > { %v3788_v51 = vpop.xlane.xlu0 %3787 }
 0x7c8   : > { %7592 = vrcp.f32 %v3788_v51 }
 0x7cb   : > { %v3794_v34 = vpop.xlane.xlu0 %3793 }
 0x7cc   : > { %v3791_v15 = vpop.xlane.xlu1 %3790 }
 0x7d0   : > { %v3797_v3 = vpop.xlane.xlu1 %3796 }
 0x7d1   : > { %7594 = vrcp.f32 %v3797_v3 }
 0x7d2   : > { %7596 = vrcp.f32 %v3791_v15  ;;  %v7844_v15 = vld [vmem:[%s10358_s5 + $0x20] sm:$0xff]  }
 0x7d3   : > { %7598 = vrcp.f32 %v3794_v34 }
 0x7d5   : > { %v7593_v45 = vpop.eup %7592 }
 0x7d8   : > { %v3812_v31 = vpop.xlane.xlu0 %3811 }
 0x7d9   : > { %7600 = vrcp.f32 %v3812_v31 }
 0x7dc   : > { %v3815_v41 = vpop.xlane.xlu1 %3814  ;;  %v3818_v20 = vpop.xlane.xlu0 %3817 }
 0x7de   : > { %v7595_v1 = vpop.eup %7594 }
 0x7e0   : > { %v3821_v24 = vpop.xlane.xlu1 %3820 }
 0x7e8   : > { %v9613_v2 = vpop.xlane.xlu0 %3835 }
 0x7ec   : > { %v9615_v25 = vpop.xlane.xlu1 %3838  ;;  %v9617_v17 = vpop.xlane.xlu0 %3841 }
 0x7f0   : > { %v9619_v42 = vpop.xlane.xlu1 %3844 }
 0x7f8   : > { %v9621_v61 = vpop.xlane.xlu0 %3859 }
 0x7fc   : > { %v9623_v53 = vpop.xlane.xlu0 %3865  ;;  %v9625_v29 = vpop.xlane.xlu1 %3862 }
 0x800   : > { %v9627_v46 = vpop.xlane.xlu1 %3868  ;;  %v3680_v48 = vpop.xlane.xlu0 %3679 }
 0x801   : > { %v3718_v19 = vsub.f32 %v9567_v49, %v3680_v48 }
 0x803   : > { %v3778_v35 = vmul.f32 1.442695, %v3718_v19 }
 0x804   : > { %v3686_v14 = vpop.xlane.xlu0 %3685  ;;  %v3683_v38 = vpop.xlane.xlu1 %3682 }
 0x805   : > { %v3720_v11 = vsub.f32 %v9575_v50, %v3686_v14  ;;  %v3719_v22 = vsub.f32 %v9580_v28, %v3683_v38  ;;  %7602 = vpow2.f32 %v3778_v35  ;;  %v7597_v28 = vpop.eup %7596  ;;  %v7845_v38 = vld [vmem:[%s10358_s5 + $0x48] sm:$0xff]  }
 0x806   : > { %v7599_v39 = vpop.eup %7598 }
 0x807   : > { %v3782_v55 = vmul.f32 1.442695, %v3720_v11  ;;  %v3780_v30 = vmul.f32 1.442695, %v3719_v22  ;;  %v6965_v8 = vpop.f32.mrf.mxu1  ;;  %v7601_v27 = vpop.eup %7600 }
 0x808   : > { %v3800_v37 = vpop.xlane.xlu0 %3799  ;;  %v3689_v59 = vpop.xlane.xlu1 %3688  ;;  %v4141_v10 = vmul.f32 %v7599_v39, %v6965_v8 }
 0x809   : > { %7604 = vpow2.f32 %v3782_v55  ;;  %v3721_v63 = vsub.f32 %v9589_v7, %v3689_v59  ;;  %v3980_v49 = vpop.f32.mrf.mxu1 }
 0x80a   : > { %7606 = vpow2.f32 %v3780_v30  ;;  %v4139_v52 = vmul.f32 %v7593_v45, %v3980_v49 }
 0x80b   : > { %7608 = vrcp.f32 %v3818_v20  ;;  %v3784_v16 = vmul.f32 1.442695, %v3721_v63  ;;  %v6966_v56 = vpop.f32.mrf.mxu1 }
 0x80c   : > { %7610 = vrcp.f32 %v3800_v37  ;;  %v3806_v50 = vpop.xlane.xlu0 %3805  ;;  %v3803_v6 = vpop.xlane.xlu1 %3802  ;;  %v4142_v43 = vmul.f32 %v7595_v1, %v6966_v56 }
 0x80d   : > { %7612 = vpow2.f32 %v3784_v16  ;;  %v3983_v33 = vpop.f32.mrf.mxu1 }
 0x80e   : > { %7614 = vrcp.f32 %v3821_v24  ;;  %v4140_v21 = vmul.f32 %v7597_v28, %v3983_v33  ;;  %v4172_v18 = vpack.c.bf16 %v4142_v43, %v4141_v10 }
 0x80f   : > { %7616 = vrcp.f32 %v3803_v6  ;;  %v9635_v7 = vpop.f32.mrf.mxu1 }
 0x810   : > { %7618 = vrcp.f32 %v3815_v41  ;;  %v4171_v0 = vpack.c.bf16 %v4140_v21, %v4139_v52  ;;  %v3824_v60 = vpop.xlane.xlu0 %3823  ;;  %v3809_v23 = vpop.xlane.xlu1 %3808 }
 0x811   : > { %7620 = vrcp.f32 %v3806_v50  ;;  %v3996_v26 = vpop.f32.mrf.mxu1 }
 0x812   : > { %7622 = vrcp.f32 %v3809_v23  ;;  %6999 = vmatprep.mubr.msk.bf16.mxu0 %vm336_vm0, %v4171_v0  ;;  %v7603_v44 = vpop.eup %7602 }
 0x813   : > { %v6970_v40 = vpop.f32.mrf.mxu1  ;;  %7000 = vmatmul.mubr.msk.bf16.vlgmr.msra.gmra.mxu0 %vm336_vm0, %v4172_v18  ;;  %7624 = vrcp.f32 %v3824_v60  ;;  %v3870_v11 = vsel %vm868_vm2, %v7603_v44, 0.0 }
 0x814   : > { %v3827_v9 = vpop.xlane.xlu1 %3826  ;;  %7012 = vmatpush3.bf16.msra.mxu0 %v9642_v13  ;;  %v3830_v3 = vpop.xlane.xlu0 %3829 }
 0x815   : > { %v3999_v51 = vpop.f32.mrf.mxu1  ;;  %7013 = vmatprep.subr.bf16.mxu0 %v7844_v15  ;;  %7626 = vrcp.f32 %v3827_v9 }
 0x816   : > { %v7605_v34 = vpop.eup %7604  ;;  %7628 = vrcp.f32 %v3830_v3 }
 0x817   : > { %v7607_v31 = vpop.eup %7606  ;;  %v6973_v41 = vpop.f32.mrf.mxu1  ;;  %v3876_v20 = vsel %vm868_vm2, %v7605_v34, 0.0 }
 0x818   : > { %v7609_v24 = vpop.eup %7608  ;;  %v3833_v48 = vpop.xlane.xlu1 %3832  ;;  %v3896_v19 = vpack.c.bf16 %v7607_v31, %v7603_v44  ;;  %7014 = vmatpush3.bf16.msra.mxu0 %v7844_v15  ;;  %3877 = vadd.xlane.f32.xlu0 %v3876_v20  ;;  %v3873_v1 = vsel %vm868_vm2, %v7607_v31, 0.0  ;;  %v7847_v31 = vld [vmem:[%s10358_s5 + $0x30] sm:$0xff]  }
 0x819   : > { %v7611_v35 = vpop.eup %7610  ;;  %v4012_v14 = vpop.f32.mrf.mxu1  ;;  %7027 = vmatprep.subr.bf16.mxu0 %v7845_v38  ;;  %7630 = vrcp.f32 %v3833_v48  ;;  %v4149_v52 = vmul.f32 %v7609_v24, %v6973_v41 }
 0x81a   : > { %v7613_v22 = vpop.eup %7612  ;;  %6991 = vmatprep.mubr.msk.bf16.mxu1 %vm868_vm2, %v3896_v19  ;;  %v4143_v49 = vmul.f32 %v7611_v35, %v3996_v26  ;;  %7632 = vrcp.f32 %v9613_v2  ;;  %v4147_v6 = vmul.f32 %v7601_v27, %v4012_v14  ;;  %v3848_v0 = vpop.xlane.xlu0 %3847  ;;  %v7848_v19 = vld [vmem:[%s10358_s5 + $0x68] sm:$0xff]  }
 0x81b   : > { %v7615_v55 = vpop.eup %7614  ;;  %v6974_v30 = vpop.f32.mrf.mxu1  ;;  %v3897_v8 = vpack.c.bf16 %v7613_v22, %v7605_v34  ;;  %v3879_v37 = vsel %vm868_vm2, %v7613_v22, 0.0  ;;  %7634 = vrcp.f32 %v9619_v42 }
 0x81c   : > { %v7617_v59 = vpop.eup %7616  ;;  %3880 = vadd.xlane.f32.xlu1 %v3879_v37  ;;  %3871 = vadd.xlane.f32.xlu0 %v3870_v11  ;;  %v4150_v16 = vmul.f32 %v7615_v55, %v6974_v30  ;;  %v3851_v28 = vpop.xlane.xlu1 %3850  ;;  %7636 = vrcp.f32 %v9615_v25 }
 0x81d   : > { %v7619_v63 = vpop.eup %7618  ;;  %v4144_v45 = vmul.f32 %v7617_v59, %v3999_v51  ;;  %6992 = vmatmul.mubr.msk.bf16.gmra.mxu1 %vm868_vm2, %v3897_v8  ;;  %v4015_v56 = vpop.f32.mrf.mxu1  ;;  %7638 = vrcp.f32 %v9617_v17  ;;  %v7846_v17 = vld [vmem:[%s10358_s5 + $0x40] sm:$0xff]  }
 0x81e   : > { %v7621_v50 = vpop.eup %7620  ;;  %v4148_v43 = vmul.f32 %v7619_v63, %v4015_v56  ;;  %v4176_v2 = vpack.c.bf16 %v4150_v16, %v4149_v52  ;;  %7640 = vrcp.f32 %v3848_v0  ;;  %v3854_v44 = vpop.xlane.xlu0 %3853 }
 0x81f   : > { %v7623_v33 = vpop.eup %7622  ;;  %v4173_v39 = vpack.c.bf16 %v4144_v45, %v4143_v49  ;;  %v6977_v21 = vpop.f32.mrf.mxu1  ;;  %v4145_v23 = vmul.f32 %v7621_v50, %v9635_v7  ;;  %v7850_v45 = vld [vmem:[%s10358_s5 + $0x50] sm:$0xff]  }
 0x820   : > { %v4146_v10 = vmul.f32 %v7623_v33, %v6970_v40  ;;  %v4175_v60 = vpack.c.bf16 %v4148_v43, %v4147_v6  ;;  %3874 = vadd.xlane.f32.xlu1 %v3873_v1  ;;  %v7625_v27 = vpop.eup %7624  ;;  %v3857_v25 = vpop.xlane.xlu1 %3856  ;;  %v7851_v6 = vld [vmem:[%s10358_s5 + $0x78] sm:$0xff]  }
 0x821   : > { %7007 = vmatprep.mubr.msk.bf16.mxu1 %vm336_vm0, %v4173_v39  ;;  %v4028_v18 = vpop.f32.mrf.mxu1  ;;  %7642 = vrcp.f32 %v3857_v25 }
 0x822   : > { %7015 = vmatprep.mubr.msk.bf16.mxu0 %vm336_vm0, %v4175_v60  ;;  %v4174_v42 = vpack.c.bf16 %v4146_v10, %v4145_v23  ;;  %v7627_v40 = vpop.eup %7626  ;;  %v4151_v51 = vmul.f32 %v7625_v27, %v4028_v18  ;;  %7644 = vrcp.f32 %v3851_v28 }
 0x823   : > { %v6978_v26 = vpop.f32.mrf.mxu1  ;;  %7016 = vmatmul.mubr.msk.bf16.vlgmr.msra.gmra.mxu0 %vm336_vm0, %v4176_v2  ;;  %v7629_v7 = vpop.eup %7628  ;;  %7646 = vrcp.f32 %v3854_v44 }
 0x824   : > { %7028 = vmatpush3.bf16.msra.mxu0 %v7845_v38  ;;  %v4153_v24 = vmul.f32 %v7629_v7, %v6977_v21  ;;  %v7849_v38 = vld [vmem:[%s10358_s5 + $0x58] sm:$0xff]   ;;  %7648 = vrcp.f32 %v9621_v61 }
 0x825   : > { %7008 = vmatmul.mubr.msk.bf16.vlgmr.msra.gmra.mxu1 %vm336_vm0, %v4174_v42  ;;  %v4031_v9 = vpop.f32.mrf.mxu1  ;;  %7029 = vmatprep.subr.bf16.mxu0 %v7846_v17  ;;  %7650 = vrcp.f32 %v9627_v46 }
 0x826   : > { %v4152_v15 = vmul.f32 %v7627_v40, %v4031_v9  ;;  %7020 = vmatpush3.bf16.msra.mxu1 %v9520_v47  ;;  %v7631_v34 = vpop.eup %7630  ;;  %7652 = vrcp.f32 %v9625_v29 }
 0x827   : > { %v6981_v3 = vpop.f32.mrf.mxu1  ;;  %7021 = vmatprep.subr.bf16.mxu1 %v7847_v31  ;;  %v4154_v41 = vmul.f32 %v7631_v34, %v6978_v26  ;;  %v7633_v47 = vpop.eup %7632  ;;  %7654 = vrcp.f32 %v9623_v53  ;;  %v7852_v53 = vld [vmem:[%s10358_s5 + $0x60] sm:$0xff]   ;;  %v7853_v26 = vld [vmem:[%s10358_s5 + $0x70] sm:$0xff]   ;;  %v4715_v34 = vsel %vm336_vm0, %v8147_v32, 0 }
 0x828   : > { %v4177_v20 = vpack.c.bf16 %v4152_v15, %v4151_v51  ;;  %7030 = vmatpush3.bf16.msra.mxu0 %v7846_v17  ;;  %v7635_v11 = vpop.eup %7634 }
 0x829   : > { %v4044_v48 = vpop.f32.mrf.mxu1  ;;  %7043 = vmatprep.subr.bf16.mxu0 %v7848_v19  ;;  %v4178_v35 = vpack.c.bf16 %v4154_v41, %v4153_v24  ;;  %v7637_v22 = vpop.eup %7636  ;;  %v7856_v41 = vld [vmem:[%s10354_s1 + $0x8] sm:$0xff]   ;;  %v7859_v24 = vld [vmem:[%s10354_s1 + $0x18] sm:$0xff]  }
 0x82a   : > { %7022 = vmatpush3.bf16.msra.mxu1 %v7847_v31  ;;  %7023 = vmatprep.mubr.msk.bf16.mxu1 %vm336_vm0, %v4177_v20  ;;  %v7639_v8 = vpop.eup %7638  ;;  %v4155_v37 = vmul.f32 %v7633_v47, %v4044_v48  ;;  %v7855_v31 = vld [vmem:[%s10358_s5 + $0x8] sm:$0xff]   ;;  %v7858_v20 = vld [vmem:[%s10358_s5] sm:$0xff]   ;;  %v7863_v47 = vld [vmem:[%s10354_s1 + $0x38] sm:$0xff]  }
 0x82b   : > { %v6982_v14 = vpop.f32.mrf.mxu1  ;;  %7035 = vmatprep.subr.bf16.mxu1 %v7849_v38  ;;  %v4157_v63 = vmul.f32 %v7639_v8, %v6981_v3  ;;  %v7641_v61 = vpop.eup %7640  ;;  %v7854_v3 = vld [vmem:[%s10354_s1] sm:$0xff]   ;;  %v7871_v8 = vld [vmem:[%s10354_s1 + $0x78] sm:$0xff]  }
 0x82c   : > { %v4158_v55 = vmul.f32 %v7635_v11, %v6982_v14  ;;  %v7860_v48 = vld [vmem:[%s10354_s1 + $0x20] sm:$0xff]   ;;  %v7865_v14 = vld [vmem:[%s10354_s1 + $0x48] sm:$0xff]   ;;  %v7867_v11 = vld [vmem:[%s10354_s1 + $0x58] sm:$0xff]  }
 0x82d   : > { %7024 = vmatmul.mubr.msk.bf16.vlgmr.msra.gmra.mxu1 %vm336_vm0, %v4178_v35  ;;  %v4047_v30 = vpop.f32.mrf.mxu1  ;;  %v7864_v35 = vld [vmem:[%s10354_s1 + $0x40] sm:$0xff]  }
 0x82e   : > { %v4156_v59 = vmul.f32 %v7637_v22, %v4047_v30  ;;  %7036 = vmatpush3.bf16.msra.mxu1 %v7849_v38  ;;  %v4180_v56 = vpack.c.bf16 %v4158_v55, %v4157_v63  ;;  %v7643_v46 = vpop.eup %7642  ;;  %v7866_v38 = vld [vmem:[%s10354_s1 + $0x50] sm:$0xff]   ;;  %v7868_v22 = vld [vmem:[%s10354_s1 + $0x60] sm:$0xff]   ;;  %v7869_v55 = vld [vmem:[%s10354_s1 + $0x68] sm:$0xff]  }
 0x82f   : > { %v6985_v49 = vpop.f32.mrf.mxu1  ;;  %7037 = vmatprep.subr.bf16.mxu1 %v7850_v45  ;;  %v7645_v28 = vpop.eup %7644  ;;  %v7870_v30 = vld [vmem:[%s10354_s1 + $0x70] sm:$0xff]  }
 0x830   : > { %v4179_v16 = vpack.c.bf16 %v4156_v59, %v4155_v37  ;;  %v7647_v33 = vpop.eup %7646 }
 0x831   : > { %v4060_v1 = vpop.f32.mrf.mxu1  ;;  %v4161_v21 = vmul.f32 %v7647_v33, %v6985_v49  ;;  %v7649_v2 = vpop.eup %7648 }
 0x832   : > { %7031 = vmatprep.mubr.msk.bf16.mxu0 %vm336_vm0, %v4179_v16  ;;  %7038 = vmatpush3.bf16.msra.mxu1 %v7850_v45  ;;  %v4159_v39 = vmul.f32 %v7641_v61, %v4060_v1  ;;  %v7651_v42 = vpop.eup %7650 }
 0x833   : > { %v6986_v50 = vpop.f32.mrf.mxu1  ;;  %7032 = vmatmul.mubr.msk.bf16.vlgmr.msra.gmra.mxu0 %vm336_vm0, %v4180_v56  ;;  %7051 = vmatprep.subr.bf16.mxu1 %v7851_v6  ;;  %v7653_v27 = vpop.eup %7652 }
 0x834   : > { %7044 = vmatpush3.bf16.msra.mxu0 %v7848_v19  ;;  %v4162_v29 = vmul.f32 %v7643_v46, %v6986_v50  ;;  %v7655_v9 = vpop.eup %7654  ;;  %v7861_v19 = vld [vmem:[%s10354_s1 + $0x28] sm:$0xff]  }
 0x835   : > { %v4063_v43 = vpop.f32.mrf.mxu1  ;;  %7045 = vmatprep.subr.bf16.mxu0 %v7852_v53 }
 0x836   : > { %v4160_v52 = vmul.f32 %v7645_v28, %v4063_v43  ;;  %v4182_v60 = vpack.c.bf16 %v4162_v29, %v4161_v21 }
 0x838   : > { %v4181_v10 = vpack.c.bf16 %v4160_v52, %v4159_v39  ;;  %v6989_v0 = vpop.f32.mrf.mxu1  ;;  %7046 = vmatpush3.bf16.msra.mxu0 %v7852_v53 }
 0x839   : > { %7194 = vmatprep.subr.msk.bf16.mxu0 %vm336_vm0, %v8147_v32  ;;  %v4165_v44 = vmul.f32 %v7655_v9, %v6989_v0  ;;  %v7857_v32 = vld [vmem:[%s10354_s1 + $0x10] sm:$0xff]  }
 0x83a   : > { %v4076_v23 = vpop.f32.mrf.mxu1  ;;  %7039 = vmatprep.mubr.msk.bf16.mxu1 %vm336_vm0, %v4181_v10 }
 0x83b   : > { %7040 = vmatmul.mubr.msk.bf16.vlgmr.msra.gmra.mxu1 %vm336_vm0, %v4182_v60  ;;  %v4163_v17 = vmul.f32 %v7649_v2, %v4076_v23 }
 0x83c   : > { %v6990_v18 = vpop.f32.mrf.mxu1  ;;  %7052 = vmatpush3.bf16.msra.mxu1 %v7851_v6 }
 0x83d   : > { %7053 = vmatprep.subr.bf16.mxu1 %v7853_v26  ;;  %v4166_v25 = vmul.f32 %v7651_v42, %v6990_v18 }
 0x83e   : > { %v4079_v40 = vpop.f32.mrf.mxu1 }
 0x83f   : > { %v4164_v7 = vmul.f32 %v7653_v27, %v4079_v40  ;;  %v4184_v15 = vpack.c.bf16 %v4166_v25, %v4165_v44 }
 0x840   : > { %7054 = vmatpush3.bf16.msra.mxu1 %v7853_v26 }
 0x841   : > { %v4183_v51 = vpack.c.bf16 %v4164_v7, %v4163_v17  ;;  %7093 = vmatprep.subr.bf16.mxu1 %v8470_v4 }
 0x843   : > { %7047 = vmatprep.mubr.msk.bf16.mxu0 %vm336_vm0, %v4183_v51 }
 0x844   : > { %7048 = vmatmul.mubr.msk.bf16.vlgmr.msra.gmra.mxu0 %vm336_vm0, %v4184_v15 }
 0x845   : > { %7060 = vmatpush3.bf16.xpose.msra.mxu0 %v4715_v34  ;;  %7061 = vmatprep.mubr.msk.bf16.mxu0 %vm336_vm0, %v7854_v3 }
 0x846   : > { %7127 = vmatprep.subr.bf16.mxu0 %v7855_v31 }
 0x84c   : > { %7062 = vmatmul.mubr.msk.bf16.vlgmr.msra.gmra.mxu0 %vm336_vm0, %v7856_v41 }
 0x84d   : > { %7065 = vmatprep.mubr.msk.bf16.mxu0 %vm336_vm0, %v7857_v32  ;;  %7128 = vmatpush3.bf16.msra.mxu0 %v7855_v31 }
 0x84e   : > { %7129 = vmatprep.subr.bf16.mxu0 %v7858_v20 }
 0x851   : > { %7130 = vmatpush3.bf16.msra.mxu0 %v7858_v20 }
 0x852   : > { %7143 = vmatprep.subr.bf16.mxu0 %v9642_v13  ;;  %v7862_v13 = vld [vmem:[%s10354_s1 + $0x30] sm:$0xff]  }
 0x854   : > { %7066 = vmatmul.mubr.msk.bf16.gmra.mxu0 %vm336_vm0, %v7859_v24 }
 0x855   : > { %7069 = vmatprep.mubr.msk.bf16.mxu0 %vm336_vm0, %v7860_v48 }
 0x85c   : > { %7070 = vmatmul.mubr.msk.bf16.gmra.mxu0 %vm336_vm0, %v7861_v19 }
 0x85d   : > { %7073 = vmatprep.mubr.msk.bf16.mxu0 %vm336_vm0, %v7862_v13 }
 0x864   : > { %7074 = vmatmul.mubr.msk.bf16.gmra.mxu0 %vm336_vm0, %v7863_v47 }
 0x865   : > { %7077 = vmatprep.mubr.msk.bf16.mxu0 %vm336_vm0, %v7864_v35 }
 0x86c   : > { %7078 = vmatmul.mubr.msk.bf16.gmra.mxu0 %vm336_vm0, %v7865_v14 }
 0x86d   : > { %7081 = vmatprep.mubr.msk.bf16.mxu0 %vm336_vm0, %v7866_v38 }
 0x874   : > { %7082 = vmatmul.mubr.msk.bf16.gmra.mxu0 %vm336_vm0, %v7867_v11 }
 0x875   : > { %7085 = vmatprep.mubr.msk.bf16.mxu0 %vm336_vm0, %v7868_v22 }
 0x87c   : > { %7086 = vmatmul.mubr.msk.bf16.gmra.mxu0 %vm336_vm0, %v7869_v55 }
 0x87d   : > { %7089 = vmatprep.mubr.msk.bf16.mxu0 %vm336_vm0, %v7870_v30 }
 0x884   : > { %7090 = vmatmul.mubr.msk.bf16.gmra.mxu0 %vm336_vm0, %v7871_v8 }
 0x8a1   : > { %v3878_v37 = vpop.xlane.xlu0 %3877 }
 0x8a2   : > { %7656 = vrcp.f32 %v3878_v37 }
 0x8a5   : > { %v3881_v59 = vpop.xlane.xlu1 %3880  ;;  %v3872_v63 = vpop.xlane.xlu0 %3871 }
 0x8a6   : > { %7658 = vrcp.f32 %v3881_v59 }
 0x8a7   : > { %7660 = vrcp.f32 %v3872_v63 }
 0x8a9   : > { %v3875_v49 = vpop.xlane.xlu1 %3874 }
 0x8aa   : > { %7662 = vrcp.f32 %v3875_v49 }
 0x8af   : > { %v7657_v56 = vpop.eup %7656 }
 0x8b3   : > { %v7659_v50 = vpop.eup %7658 }
 0x8b4   : > { %v7661_v6 = vpop.eup %7660 }
 0x8b7   : > { %v7663_v28 = vpop.eup %7662 }
 0x8d3   : > { %v7001_v45 = vpop.f32.mrf.mxu0 }
 0x8d4   : > { %v4657_v2 = vsel %vm336_vm0, %v7001_v45, 0.0 }
 0x8d5   : > { %v4227_v16 = vpop.f32.mrf.mxu0 }
 0x8d6   : > { %v4627_v40 = vsel %vm336_vm0, %v4227_v16, 0.0 }
 0x8d7   : > { %v7002_v1 = vpop.f32.mrf.mxu0 }
 0x8d8   : > { %v4672_v15 = vsel %vm336_vm0, %v7002_v1, 0.0 }
 0x8d9   : > { %v4230_v29 = vpop.f32.mrf.mxu0 }
 0x8da   : > { %v4642_v24 = vsel %vm336_vm0, %v4230_v29, 0.0 }
 0x8dd   : > { %v6993_v61 = vpop.f32.mrf.mxu1 }
 0x8de   : > { %v4169_v43 = vmul.f32 %v7657_v56, %v6993_v61 }
 0x8df   : > { %v4092_v46 = vpop.f32.mrf.mxu1 }
 0x8e0   : > { %v4167_v33 = vmul.f32 %v7661_v6, %v4092_v46 }
 0x8e1   : > { %v6994_v53 = vpop.f32.mrf.mxu1 }
 0x8e2   : > { %v4170_v39 = vmul.f32 %v7659_v50, %v6994_v53 }
 0x8e3   : > { %v4095_v52 = vpop.f32.mrf.mxu1  ;;  %v7017_v21 = vpop.f32.mrf.mxu0 }
 0x8e4   : > { %v4168_v10 = vmul.f32 %v7663_v28, %v4095_v52  ;;  %v4186_v0 = vpack.c.bf16 %v4170_v39, %v4169_v43  ;;  %v4660_v9 = vsel %vm336_vm0, %v7017_v21, 0.0 }
 0x8e5   : > { %v7009_v60 = vpop.f32.mrf.mxu1  ;;  %v4337_v23 = vpop.f32.mrf.mxu0 }
 0x8e6   : > { %v4185_v18 = vpack.c.bf16 %v4168_v10, %v4167_v33  ;;  %v4658_v42 = vsel %vm336_vm0, %v7009_v60, 0.0  ;;  %v4630_v34 = vsel %vm336_vm0, %v4337_v23, 0.0 }
 0x8e7   : > { %v4659_v26 = vadd.f32 %v4658_v42, %v4657_v2  ;;  %v4282_v27 = vpop.f32.mrf.mxu1  ;;  %v7018_v25 = vpop.f32.mrf.mxu0 }
 0x8e8   : > { %v4628_v17 = vsel %vm336_vm0, %v4282_v27, 0.0  ;;  %7055 = vmatprep.mubr.msk.bf16.mxu1 %vm336_vm0, %v4185_v18  ;;  %v4675_v48 = vsel %vm336_vm0, %v7018_v25, 0.0 }
 0x8e9   : > { %v4629_v7 = vadd.f32 %v4628_v17, %v4627_v40  ;;  %v7010_v44 = vpop.f32.mrf.mxu1  ;;  %7056 = vmatmul.mubr.msk.bf16.vlgmr.msra.gmra.mxu1 %vm336_vm0, %v4186_v0  ;;  %v4661_v51 = vadd.f32 %v4660_v9, %v4659_v26  ;;  %v4340_v41 = vpop.f32.mrf.mxu0 }
 0x8ea   : > { %v4673_v3 = vsel %vm336_vm0, %v7010_v44, 0.0  ;;  %7094 = vmatpush3.bf16.msra.mxu1 %v8470_v4  ;;  %v4645_v14 = vsel %vm336_vm0, %v4340_v41, 0.0 }
 0x8eb   : > { %v4674_v31 = vadd.f32 %v4673_v3, %v4672_v15  ;;  %v4285_v32 = vpop.f32.mrf.mxu1  ;;  %v4631_v20 = vadd.f32 %v4630_v34, %v4629_v7  ;;  %7135 = vmatprep.subr.bf16.mxu1 %v9498_v12 }
 0x8ec   : > { %v4643_v19 = vsel %vm336_vm0, %v4285_v32, 0.0 }
 0x8ed   : > { %v4644_v13 = vadd.f32 %v4643_v19, %v4642_v24  ;;  %v7025_v47 = vpop.f32.mrf.mxu1  ;;  %v4676_v35 = vadd.f32 %v4675_v48, %v4674_v31  ;;  %v4878_v31 = vstv %s4713_s18  ;;  %s10313_s18 = scalar_lea.sflag [#allocation5], %s250_s10 }
 0x8ee   : > { %v4662_v4 = vsel %vm336_vm0, %v7025_v47, 0.0  ;;  %vm9821_vm5 = vcmp.lt.s32.totalorder %v8161_v36, %v4878_v31 }
 0x8ef   : > { %v4392_v38 = vpop.f32.mrf.mxu1  ;;  %v4646_v11 = vadd.f32 %v4645_v14, %v4644_v13  ;;  %v4663_v30 = vadd.f32 %v4662_v4, %v4661_v51 }
 0x8f0   : > { %v4632_v55 = vsel %vm336_vm0, %v4392_v38, 0.0 }
 0x8f1   : > { %v7026_v22 = vpop.f32.mrf.mxu1  ;;  %v4633_v63 = vadd.f32 %v4632_v55, %v4631_v20 }
 0x8f2   : > { %v4677_v37 = vsel %vm336_vm0, %v7026_v22, 0.0 }
 0x8f3   : > { %v4395_v12 = vpop.f32.mrf.mxu1  ;;  %v7033_v8 = vpop.f32.mrf.mxu0  ;;  %v4678_v1 = vadd.f32 %v4677_v37, %v4676_v35 }
 0x8f4   : > { %v4664_v59 = vsel %vm336_vm0, %v7033_v8, 0.0  ;;  %v4647_v16 = vsel %vm336_vm0, %v4395_v12, 0.0 }
 0x8f5   : > { %v4665_v49 = vadd.f32 %v4664_v59, %v4663_v30  ;;  %v4447_v45 = vpop.f32.mrf.mxu0  ;;  %v4648_v46 = vadd.f32 %v4647_v16, %v4646_v11 }
 0x8f6   : > { %v4634_v56 = vsel %vm336_vm0, %v4447_v45, 0.0 }
 0x8f7   : > { %v4635_v61 = vadd.f32 %v4634_v56, %v4633_v63  ;;  %v7034_v50 = vpop.f32.mrf.mxu0 }
 0x8f8   : > { %v4679_v6 = vsel %vm336_vm0, %v7034_v50, 0.0 }
 0x8f9   : > { %v4680_v28 = vadd.f32 %v4679_v6, %v4678_v1  ;;  %v4450_v29 = vpop.f32.mrf.mxu0 }
 0x8fa   : > { %v4649_v43 = vsel %vm336_vm0, %v4450_v29, 0.0 }
 0x8fb   : > { %v4650_v53 = vadd.f32 %v4649_v43, %v4648_v46  ;;  %v7041_v33 = vpop.f32.mrf.mxu1 }
 0x8fc   : > { %v4666_v21 = vsel %vm336_vm0, %v7041_v33, 0.0 }
 0x8fd   : > { %v4502_v39 = vpop.f32.mrf.mxu1  ;;  %v4667_v0 = vadd.f32 %v4666_v21, %v4665_v49 }
 0x8fe   : > { %v4636_v10 = vsel %vm336_vm0, %v4502_v39, 0.0 }
 0x8ff   : > { %v7042_v52 = vpop.f32.mrf.mxu1  ;;  %v4637_v42 = vadd.f32 %v4636_v10, %v4635_v61 }
 0x900   : > { %v4681_v2 = vsel %vm336_vm0, %v7042_v52, 0.0 }
 0x901   : > { %v4505_v60 = vpop.f32.mrf.mxu1  ;;  %v4682_v9 = vadd.f32 %v4681_v2, %v4680_v28 }
 0x902   : > { %v4651_v25 = vsel %vm336_vm0, %v4505_v60, 0.0 }
 0x903   : > { %v4652_v51 = vadd.f32 %v4651_v25, %v4650_v53 }
 0x904   : > { %v7049_v23 = vpop.f32.mrf.mxu0 }
 0x905   : > { %v4668_v18 = vsel %vm336_vm0, %v7049_v23, 0.0 }
 0x906   : > { %v9808_v26 = vadd.f32 %v4668_v18, %v4667_v0  ;;  %v4557_v27 = vpop.f32.mrf.mxu0 }
 0x907   : > { %v4638_v40 = vsel %vm336_vm0, %v4557_v27, 0.0 }
 0x908   : > { %v9812_v17 = vadd.f32 %v4638_v40, %v4637_v42  ;;  %v7050_v7 = vpop.f32.mrf.mxu0 }
 0x909   : > { %v4683_v44 = vsel %vm336_vm0, %v7050_v7, 0.0 }
 0x90a   : > { %v9815_v15 = vadd.f32 %v4683_v44, %v4682_v9  ;;  %v4560_v34 = vpop.f32.mrf.mxu0 }
 0x90b   : > { %v4653_v3 = vsel %vm336_vm0, %v4560_v34, 0.0 }
 0x90c   : > { %v9818_v41 = vadd.f32 %v4653_v3, %v4652_v51  ;;  %v7063_v32 = vpop.f32.mrf.mxu0 }
 0x90d   : > { %v9833_v47 = vsel %vm9821_vm5, %v7063_v32, -1e+30 }
 0x90e   : > { %v4751_v24 = vpop.f32.mrf.mxu0  ;;  %v4920_v14 = vsel %vm868_vm2, %v9833_v47, -inf }
 0x90f   : > { %v9827_v48 = vsel %vm9821_vm5, %v4751_v24, -1e+30 }
 0x910   : > { %v4914_v19 = vsel %vm868_vm2, %v9827_v48, -inf  ;;  %v7064_v13 = vpop.f32.mrf.mxu0 }
 0x911   : > { %4915 = vmax.xlane.f32.xlu0 %v4914_v19  ;;  %v9845_v4 = vsel %vm9821_vm5, %v7064_v13, -1e+30 }
 0x912   : > { %v4754_v35 = vpop.f32.mrf.mxu0  ;;  %v4923_v30 = vsel %vm868_vm2, %v9845_v4, -inf }
 0x913   : > { %v9837_v36 = vsel %vm9821_vm5, %v4754_v35, -1e+30 }
 0x914   : > { %v4917_v38 = vsel %vm868_vm2, %v9837_v36, -inf  ;;  %v7067_v11 = vpop.f32.mrf.mxu0 }
 0x915   : > { %4921 = vmax.xlane.f32.xlu0 %v4920_v14  ;;  %4918 = vmax.xlane.f32.xlu1 %v4917_v38  ;;  %v9857_v37 = vsel %vm9821_vm5, %v7067_v11, -1e+30 }
 0x916   : > { %v4767_v22 = vpop.f32.mrf.mxu0  ;;  %v4932_v49 = vsel %vm868_vm2, %v9857_v37, -inf }
 0x917   : > { %v9849_v55 = vsel %vm9821_vm5, %v4767_v22, -1e+30 }
 0x918   : > { %v4926_v12 = vsel %vm868_vm2, %v9849_v55, -inf  ;;  %v7068_v8 = vpop.f32.mrf.mxu0 }
 0x919   : > { %4927 = vmax.xlane.f32.xlu0 %v4926_v12  ;;  %4924 = vmax.xlane.f32.xlu1 %v4923_v30  ;;  %v9869_v56 = vsel %vm9821_vm5, %v7068_v8, -1e+30 }
 0x91a   : > { %v4770_v59 = vpop.f32.mrf.mxu0  ;;  %v4935_v50 = vsel %vm868_vm2, %v9869_v56, -inf }
 0x91b   : > { %v9861_v63 = vsel %vm9821_vm5, %v4770_v59, -1e+30 }
 0x91c   : > { %v4929_v45 = vsel %vm868_vm2, %v9861_v63, -inf  ;;  %v7071_v16 = vpop.f32.mrf.mxu0 }
 0x91d   : > { %4933 = vmax.xlane.f32.xlu0 %v4932_v49  ;;  %4930 = vmax.xlane.f32.xlu1 %v4929_v45  ;;  %v9881_v28 = vsel %vm9821_vm5, %v7071_v16, -1e+30 }
 0x91e   : > { %v4783_v1 = vpop.f32.mrf.mxu0  ;;  %v4944_v53 = vsel %vm868_vm2, %v9881_v28, -inf }
 0x91f   : > { %v9873_v61 = vsel %vm9821_vm5, %v4783_v1, -1e+30 }
 0x920   : > { %v4938_v6 = vsel %vm868_vm2, %v9873_v61, -inf  ;;  %v7072_v46 = vpop.f32.mrf.mxu0 }
 0x921   : > { %4939 = vmax.xlane.f32.xlu0 %v4938_v6  ;;  %4936 = vmax.xlane.f32.xlu1 %v4935_v50  ;;  %v9893_v52 = vsel %vm9821_vm5, %v7072_v46, -1e+30 }
 0x922   : > { %v4786_v29 = vpop.f32.mrf.mxu0  ;;  %v4947_v0 = vsel %vm868_vm2, %v9893_v52, -inf }
 0x923   : > { %v9885_v43 = vsel %vm9821_vm5, %v4786_v29, -1e+30 }
 0x924   : > { %v4941_v33 = vsel %vm868_vm2, %v9885_v43, -inf  ;;  %v7075_v39 = vpop.f32.mrf.mxu0 }
 0x925   : > { %4945 = vmax.xlane.f32.xlu0 %v4944_v53  ;;  %4942 = vmax.xlane.f32.xlu1 %v4941_v33  ;;  %v9905_v2 = vsel %vm9821_vm5, %v7075_v39, -1e+30 }
 0x926   : > { %v4799_v21 = vpop.f32.mrf.mxu0  ;;  %v4956_v27 = vsel %vm868_vm2, %v9905_v2, -inf }
 0x927   : > { %v9897_v10 = vsel %vm9821_vm5, %v4799_v21, -1e+30 }
 0x928   : > { %v4950_v60 = vsel %vm868_vm2, %v9897_v10, -inf  ;;  %v7076_v23 = vpop.f32.mrf.mxu0 }
 0x929   : > { %4951 = vmax.xlane.f32.xlu0 %v4950_v60  ;;  %4948 = vmax.xlane.f32.xlu1 %v4947_v0  ;;  %v9917_v9 = vsel %vm9821_vm5, %v7076_v23, -1e+30 }
 0x92a   : > { %v4802_v18 = vpop.f32.mrf.mxu0  ;;  %v4959_v51 = vsel %vm868_vm2, %v9917_v9, -inf }
 0x92b   : > { %v9909_v42 = vsel %vm9821_vm5, %v4802_v18, -1e+30 }
 0x92c   : > { %v4953_v25 = vsel %vm868_vm2, %v9909_v42, -inf  ;;  %v7079_v40 = vpop.f32.mrf.mxu0 }
 0x92d   : > { %4957 = vmax.xlane.f32.xlu0 %v4956_v27  ;;  %4954 = vmax.xlane.f32.xlu1 %v4953_v25  ;;  %v9929_v31 = vsel %vm9821_vm5, %v7079_v40, -1e+30 }
 0x92e   : > { %v4815_v7 = vpop.f32.mrf.mxu0  ;;  %v4968_v19 = vsel %vm868_vm2, %v9929_v31, -inf }
 0x92f   : > { %v9921_v44 = vsel %vm9821_vm5, %v4815_v7, -1e+30 }
 0x930   : > { %v4962_v34 = vsel %vm868_vm2, %v9921_v44, -inf  ;;  %v7080_v3 = vpop.f32.mrf.mxu0 }
 0x931   : > { %4963 = vmax.xlane.f32.xlu0 %v4962_v34  ;;  %4960 = vmax.xlane.f32.xlu1 %v4959_v51  ;;  %v9941_v14 = vsel %vm9821_vm5, %v7080_v3, -1e+30 }
 0x932   : > { %v4818_v32 = vpop.f32.mrf.mxu0  ;;  %v4971_v22 = vsel %vm868_vm2, %v9941_v14, -inf }
 0x933   : > { %v9933_v24 = vsel %vm9821_vm5, %v4818_v32, -1e+30 }
 0x934   : > { %v4965_v13 = vsel %vm868_vm2, %v9933_v24, -inf  ;;  %v7083_v35 = vpop.f32.mrf.mxu0 }
 0x935   : > { %4969 = vmax.xlane.f32.xlu0 %v4968_v19  ;;  %4966 = vmax.xlane.f32.xlu1 %v4965_v13  ;;  %v9953_v8 = vsel %vm9821_vm5, %v7083_v35, -1e+30 }
 0x936   : > { %v4831_v38 = vpop.f32.mrf.mxu0  ;;  %v4980_v45 = vsel %vm868_vm2, %v9953_v8, -inf }
 0x937   : > { %v9945_v11 = vsel %vm9821_vm5, %v4831_v38, -1e+30 }
 0x938   : > { %v4974_v30 = vsel %vm868_vm2, %v9945_v11, -inf  ;;  %v7084_v12 = vpop.f32.mrf.mxu0 }
 0x939   : > { %4975 = vmax.xlane.f32.xlu0 %v4974_v30  ;;  %4972 = vmax.xlane.f32.xlu1 %v4971_v22  ;;  %v9965_v50 = vsel %vm9821_vm5, %v7084_v12, -1e+30 }
 0x93a   : > { %v4834_v59 = vpop.f32.mrf.mxu0  ;;  %v4983_v29 = vsel %vm868_vm2, %v9965_v50, -inf }
 0x93b   : > { %v9957_v49 = vsel %vm9821_vm5, %v4834_v59, -1e+30 }
 0x93c   : > { %v4977_v16 = vsel %vm868_vm2, %v9957_v49, -inf  ;;  %v7087_v1 = vpop.f32.mrf.mxu0 }
 0x93d   : > { %4981 = vmax.xlane.f32.xlu0 %v4980_v45  ;;  %4978 = vmax.xlane.f32.xlu1 %v4977_v16  ;;  %v9977_v39 = vsel %vm9821_vm5, %v7087_v1, -1e+30 }
 0x93e   : > { %v4847_v6 = vpop.f32.mrf.mxu0  ;;  %v4992_v60 = vsel %vm868_vm2, %v9977_v39, -inf }
 0x93f   : > { %v9969_v46 = vsel %vm9821_vm5, %v4847_v6, -1e+30 }
 0x940   : > { %v4986_v53 = vsel %vm868_vm2, %v9969_v46, -inf  ;;  %v7088_v33 = vpop.f32.mrf.mxu0 }
 0x941   : > { %4987 = vmax.xlane.f32.xlu0 %v4986_v53  ;;  %4984 = vmax.xlane.f32.xlu1 %v4983_v29  ;;  %v9989_v27 = vsel %vm9821_vm5, %v7088_v33, -1e+30 }
 0x942   : > { %v4850_v21 = vpop.f32.mrf.mxu0  ;;  %v4995_v7 = vsel %vm868_vm2, %v9989_v27, -inf }
 0x943   : > { %v9981_v0 = vsel %vm9821_vm5, %v4850_v21, -1e+30 }
 0x944   : > { %v4989_v23 = vsel %vm868_vm2, %v9981_v0, -inf  ;;  %v7091_v18 = vpop.f32.mrf.mxu0 }
 0x945   : > { %4993 = vmax.xlane.f32.xlu0 %v4992_v60  ;;  %4990 = vmax.xlane.f32.xlu1 %v4989_v23  ;;  %v10001_v3 = vsel %vm9821_vm5, %v7091_v18, -1e+30 }
 0x946   : > { %v4863_v25 = vpop.f32.mrf.mxu0  ;;  %v5004_v13 = vsel %vm868_vm2, %v10001_v3, -inf }
 0x947   : > { %v9993_v40 = vsel %vm9821_vm5, %v4863_v25, -1e+30 }
 0x948   : > { %v4998_v51 = vsel %vm868_vm2, %v9993_v40, -inf  ;;  %v7092_v34 = vpop.f32.mrf.mxu0 }
 0x949   : > { %4999 = vmax.xlane.f32.xlu0 %v4998_v51  ;;  %4996 = vmax.xlane.f32.xlu1 %v4995_v7  ;;  %v10013_v38 = vsel %vm9821_vm5, %v7092_v34, -1e+30 }
 0x94a   : > { %v4866_v32 = vpop.f32.mrf.mxu0  ;;  %v5007_v22 = vsel %vm868_vm2, %v10013_v38, -inf }
 0x94b   : > { %v10005_v19 = vsel %vm9821_vm5, %v4866_v32, -1e+30 }
 0x94c   : > { %v5001_v35 = vsel %vm868_vm2, %v10005_v19, -inf }
 0x94d   : > { %5005 = vmax.xlane.f32.xlu0 %v5004_v13  ;;  %5002 = vmax.xlane.f32.xlu1 %v5001_v35 }
 0x951   : > { %5008 = vmax.xlane.f32.xlu1 %v5007_v22 }
 0x99a   : > { %v4916_v30 = vpop.xlane.xlu0 %4915 }
 0x99b   : > { %v5010_v12 = vsub.f32 %v9827_v48, %v4916_v30 }
 0x99d   : > { %v5042_v59 = vmul.f32 1.442695, %v5010_v12 }
 0x99e   : > { %v4922_v45 = vpop.xlane.xlu0 %4921  ;;  %v4919_v16 = vpop.xlane.xlu1 %4918 }
 0x99f   : > { %v5012_v1 = vsub.f32 %v9833_v47, %v4922_v45  ;;  %v5011_v6 = vsub.f32 %v9837_v36, %v4919_v16  ;;  %7664 = vpow2.f32 %v5042_v59 }
 0x9a1   : > { %v5046_v29 = vmul.f32 1.442695, %v5012_v1  ;;  %v5044_v20 = vmul.f32 1.442695, %v5011_v6 }
 0x9a2   : > { %v4928_v53 = vpop.xlane.xlu0 %4927  ;;  %v4925_v33 = vpop.xlane.xlu1 %4924 }
 0x9a3   : > { %7666 = vpow2.f32 %v5046_v29  ;;  %v5014_v21 = vsub.f32 %v9849_v55, %v4928_v53  ;;  %v5013_v60 = vsub.f32 %v9845_v4, %v4925_v33 }
 0x9a4   : > { %7668 = vpow2.f32 %v5044_v20 }
 0x9a5   : > { %v5048_v23 = vmul.f32 1.442695, %v5013_v60  ;;  %v5050_v48 = vmul.f32 1.442695, %v5014_v21 }
 0x9a6   : > { %v4934_v18 = vpop.xlane.xlu0 %4933  ;;  %v4931_v25 = vpop.xlane.xlu1 %4930 }
 0x9a7   : > { %v5016_v7 = vsub.f32 %v9857_v37, %v4934_v18  ;;  %v5015_v47 = vsub.f32 %v9861_v63, %v4931_v25  ;;  %7670 = vpow2.f32 %v5048_v23 }
 0x9a8   : > { %7672 = vpow2.f32 %v5050_v48 }
 0x9a9   : > { %v5054_v36 = vmul.f32 1.442695, %v5016_v7  ;;  %v5052_v51 = vmul.f32 1.442695, %v5015_v47 }
 0x9aa   : > { %v4940_v34 = vpop.xlane.xlu0 %4939  ;;  %v4937_v32 = vpop.xlane.xlu1 %4936 }
 0x9ab   : > { %7674 = vpow2.f32 %v5054_v36  ;;  %v5018_v55 = vsub.f32 %v9873_v61, %v4940_v34  ;;  %v5017_v4 = vsub.f32 %v9869_v56, %v4937_v32  ;;  %v7872_v32 = vld [vmem:[%s10358_s5 + $0x18] sm:$0xff]  }
 0x9ac   : > { %7676 = vpow2.f32 %v5052_v51  ;;  %v7665_v12 = vpop.eup %7664 }
 0x9ad   : > { %v5056_v13 = vmul.f32 1.442695, %v5017_v4  ;;  %v5058_v35 = vmul.f32 1.442695, %v5018_v55  ;;  %v5106_v33 = vsel %vm868_vm2, %v7665_v12, 0.0 }
 0x9ae   : > { %v4946_v22 = vpop.xlane.xlu0 %4945  ;;  %v4943_v30 = vpop.xlane.xlu1 %4942 }
 0x9af   : > { %v5020_v37 = vsub.f32 %v9881_v28, %v4946_v22  ;;  %7678 = vpow2.f32 %v5056_v13  ;;  %v5019_v59 = vsub.f32 %v9885_v43, %v4943_v30  ;;  %v7873_v13 = vld [vmem:[%s10358_s5 + $0x10] sm:$0xff]  }
 0x9b0   : > { %v7667_v63 = vpop.eup %7666  ;;  %7680 = vpow2.f32 %v5058_v35 }
 0x9b1   : > { %v7669_v45 = vpop.eup %7668  ;;  %v5062_v16 = vmul.f32 1.442695, %v5020_v37  ;;  %v5112_v1 = vsel %vm868_vm2, %v7667_v63, 0.0  ;;  %v5060_v61 = vmul.f32 1.442695, %v5019_v59 }
 0x9b2   : > { %v4952_v6 = vpop.xlane.xlu0 %4951  ;;  %5113 = vadd.xlane.f32.xlu0 %v5112_v1  ;;  %v4949_v56 = vpop.xlane.xlu1 %4948  ;;  %v5202_v29 = vpack.c.bf16 %v7669_v45, %v7665_v12 }
 0x9b3   : > { %7682 = vpow2.f32 %v5062_v16  ;;  %v5022_v20 = vsub.f32 %v9897_v10, %v4952_v6  ;;  %v5021_v53 = vsub.f32 %v9893_v52, %v4949_v56 }
 0x9b4   : > { %7684 = vpow2.f32 %v5060_v61  ;;  %7095 = vmatprep.mubr.msk.bf16.mxu1 %vm868_vm2, %v5202_v29  ;;  %v7671_v28 = vpop.eup %7670 }
 0x9b5   : > { %v5064_v43 = vmul.f32 1.442695, %v5021_v53  ;;  %v5203_v21 = vpack.c.bf16 %v7671_v28, %v7667_v63  ;;  %v5066_v60 = vmul.f32 1.442695, %v5022_v20  ;;  %v5115_v48 = vsel %vm868_vm2, %v7671_v28, 0.0  ;;  %v7673_v25 = vpop.eup %7672 }
 0x9b6   : > { %v4958_v23 = vpop.xlane.xlu0 %4957  ;;  %5107 = vadd.xlane.f32.xlu0 %v5106_v33  ;;  %v4955_v18 = vpop.xlane.xlu1 %4954  ;;  %5116 = vadd.xlane.f32.xlu1 %v5115_v48  ;;  %v5118_v37 = vsel %vm868_vm2, %v7673_v25, 0.0 }
 0x9b7   : > { %v5024_v7 = vsub.f32 %v9905_v2, %v4958_v23  ;;  %v5023_v52 = vsub.f32 %v9909_v42, %v4955_v18  ;;  %7686 = vpow2.f32 %v5064_v43  ;;  %7096 = vmatmul.mubr.msk.bf16.vlgmr.msra.gmra.mxu1 %vm868_vm2, %v5203_v21  ;;  %v5109_v2 = vsel %vm868_vm2, %v7669_v45, 0.0 }
 0x9b8   : > { %v7675_v10 = vpop.eup %7674  ;;  %7136 = vmatpush3.bf16.msra.mxu1 %v7872_v32  ;;  %7688 = vpow2.f32 %v5066_v60 }
 0x9b9   : > { %v7677_v47 = vpop.eup %7676  ;;  %v5070_v36 = vmul.f32 1.442695, %v5024_v7  ;;  %v5068_v51 = vmul.f32 1.442695, %v5023_v52  ;;  %v5124_v34 = vsel %vm868_vm2, %v7675_v10, 0.0  ;;  %7137 = vmatprep.subr.bf16.mxu1 %v7873_v13 }
 0x9ba   : > { %v4964_v55 = vpop.xlane.xlu0 %4963  ;;  %5125 = vadd.xlane.f32.xlu0 %v5124_v34  ;;  %v4961_v42 = vpop.xlane.xlu1 %4960  ;;  %v5204_v4 = vpack.c.bf16 %v7677_v47, %v7673_v25  ;;  %5110 = vadd.xlane.f32.xlu1 %v5109_v2  ;;  %v5121_v33 = vsel %vm868_vm2, %v7677_v47, 0.0 }
 0x9bb   : > { %7690 = vpow2.f32 %v5070_v36  ;;  %v5026_v35 = vsub.f32 %v9921_v44, %v4964_v55  ;;  %v5025_v22 = vsub.f32 %v9917_v9, %v4961_v42  ;;  %v10053_v44 = vld [vmem:[%s10358_s5 + $0x38] sm:$0xff]  }
 0x9bc   : > { %7692 = vpow2.f32 %v5068_v51  ;;  %7099 = vmatprep.mubr.msk.bf16.mxu1 %vm868_vm2, %v5204_v4  ;;  %v7679_v30 = vpop.eup %7678  ;;  %7138 = vmatpush3.bf16.msra.mxu1 %v7873_v13 }
 0x9bd   : > { %v5072_v12 = vmul.f32 1.442695, %v5025_v22  ;;  %v5074_v63 = vmul.f32 1.442695, %v5026_v35  ;;  %v5127_v45 = vsel %vm868_vm2, %v7679_v30, 0.0  ;;  %v5205_v1 = vpack.c.bf16 %v7679_v30, %v7675_v10  ;;  %7151 = vmatprep.subr.bf16.mxu1 %v10053_v44  ;;  %v7681_v9 = vpop.eup %7680 }
 0x9be   : > { %v4970_v59 = vpop.xlane.xlu0 %4969  ;;  %5119 = vadd.xlane.f32.xlu0 %v5118_v37  ;;  %v4967_v16 = vpop.xlane.xlu1 %4966  ;;  %5128 = vadd.xlane.f32.xlu1 %v5127_v45  ;;  %v5130_v18 = vsel %vm868_vm2, %v7681_v9, 0.0 }
 0x9bf   : > { %v5028_v61 = vsub.f32 %v9929_v31, %v4970_v59  ;;  %v5027_v6 = vsub.f32 %v9933_v24, %v4967_v16  ;;  %7694 = vpow2.f32 %v5072_v12  ;;  %7100 = vmatmul.mubr.msk.bf16.gmra.mxu1 %vm868_vm2, %v5205_v1 }
 0x9c0   : > { %v7683_v56 = vpop.eup %7682  ;;  %7696 = vpow2.f32 %v5074_v63 }
 0x9c1   : > { %v7685_v29 = vpop.eup %7684  ;;  %v5078_v20 = vmul.f32 1.442695, %v5028_v61  ;;  %v5076_v53 = vmul.f32 1.442695, %v5027_v6  ;;  %v5136_v28 = vsel %vm868_vm2, %v7683_v56, 0.0 }
 0x9c2   : > { %v4976_v43 = vpop.xlane.xlu0 %4975  ;;  %5137 = vadd.xlane.f32.xlu0 %v5136_v28  ;;  %v4973_v21 = vpop.xlane.xlu1 %4972  ;;  %v5206_v60 = vpack.c.bf16 %v7685_v29, %v7681_v9  ;;  %5122 = vadd.xlane.f32.xlu1 %v5121_v33  ;;  %v5133_v4 = vsel %vm868_vm2, %v7685_v29, 0.0 }
 0x9c3   : > { %7698 = vpow2.f32 %v5078_v20  ;;  %v5030_v31 = vsub.f32 %v9945_v11, %v4976_v43  ;;  %v5029_v24 = vsub.f32 %v9941_v14, %v4973_v21 }
 0x9c4   : > { %7700 = vpow2.f32 %v5076_v53  ;;  %7103 = vmatprep.mubr.msk.bf16.mxu1 %vm868_vm2, %v5206_v60  ;;  %v7687_v23 = vpop.eup %7686 }
 0x9c5   : > { %v5080_v48 = vmul.f32 1.442695, %v5029_v24  ;;  %v5082_v25 = vmul.f32 1.442695, %v5030_v31  ;;  %v5139_v52 = vsel %vm868_vm2, %v7687_v23, 0.0  ;;  %v5207_v47 = vpack.c.bf16 %v7687_v23, %v7683_v56  ;;  %v7689_v36 = vpop.eup %7688 }
 0x9c6   : > { %v4982_v7 = vpop.xlane.xlu0 %4981  ;;  %5131 = vadd.xlane.f32.xlu0 %v5130_v18  ;;  %v4979_v10 = vpop.xlane.xlu1 %4978  ;;  %5140 = vadd.xlane.f32.xlu1 %v5139_v52  ;;  %v5142_v12 = vsel %vm868_vm2, %v7689_v36, 0.0 }
 0x9c7   : > { %v5032_v11 = vsub.f32 %v9953_v8, %v4982_v7  ;;  %v5031_v14 = vsub.f32 %v9957_v49, %v4979_v10  ;;  %7702 = vpow2.f32 %v5080_v48  ;;  %7104 = vmatmul.mubr.msk.bf16.gmra.mxu1 %vm868_vm2, %v5207_v47 }
 0x9c8   : > { %v7691_v51 = vpop.eup %7690  ;;  %7704 = vpow2.f32 %v5082_v25 }
 0x9c9   : > { %v7693_v34 = vpop.eup %7692  ;;  %v5086_v32 = vmul.f32 1.442695, %v5032_v11  ;;  %v5084_v55 = vmul.f32 1.442695, %v5031_v14  ;;  %v5148_v2 = vsel %vm868_vm2, %v7691_v51, 0.0 }
 0x9ca   : > { %v4988_v42 = vpop.xlane.xlu0 %4987  ;;  %5149 = vadd.xlane.f32.xlu0 %v5148_v2  ;;  %v4985_v13 = vpop.xlane.xlu1 %4984  ;;  %v5208_v35 = vpack.c.bf16 %v7693_v34, %v7689_v36  ;;  %5134 = vadd.xlane.f32.xlu1 %v5133_v4  ;;  %v5145_v53 = vsel %vm868_vm2, %v7693_v34, 0.0 }
 0x9cb   : > { %7706 = vpow2.f32 %v5086_v32  ;;  %v5034_v8 = vsub.f32 %v9969_v46, %v4988_v42  ;;  %v5033_v49 = vsub.f32 %v9965_v50, %v4985_v13 }
 0x9cc   : > { %7708 = vpow2.f32 %v5084_v55  ;;  %7107 = vmatprep.mubr.msk.bf16.mxu1 %vm868_vm2, %v5208_v35  ;;  %v7695_v22 = vpop.eup %7694 }
 0x9cd   : > { %v5088_v30 = vmul.f32 1.442695, %v5033_v49  ;;  %v5090_v37 = vmul.f32 1.442695, %v5034_v8  ;;  %v5151_v59 = vsel %vm868_vm2, %v7695_v22, 0.0  ;;  %v5209_v16 = vpack.c.bf16 %v7695_v22, %v7691_v51  ;;  %v7697_v1 = vpop.eup %7696 }
 0x9ce   : > { %v4994_v63 = vpop.xlane.xlu0 %4993  ;;  %5143 = vadd.xlane.f32.xlu0 %v5142_v12  ;;  %v4991_v45 = vpop.xlane.xlu1 %4990  ;;  %5152 = vadd.xlane.f32.xlu1 %v5151_v59  ;;  %v5154_v31 = vsel %vm868_vm2, %v7697_v1, 0.0 }
 0x9cf   : > { %v5036_v46 = vsub.f32 %v9977_v39, %v4994_v63  ;;  %v5035_v50 = vsub.f32 %v9981_v0, %v4991_v45  ;;  %7710 = vpow2.f32 %v5088_v30  ;;  %7108 = vmatmul.mubr.msk.bf16.gmra.mxu1 %vm868_vm2, %v5209_v16 }
 0x9d0   : > { %v7699_v9 = vpop.eup %7698  ;;  %7712 = vpow2.f32 %v5090_v37 }
 0x9d1   : > { %v7701_v61 = vpop.eup %7700  ;;  %v5094_v6 = vmul.f32 1.442695, %v5036_v46  ;;  %v5092_v56 = vmul.f32 1.442695, %v5035_v50  ;;  %v5160_v29 = vsel %vm868_vm2, %v7699_v9, 0.0 }
 0x9d2   : > { %5161 = vadd.xlane.f32.xlu0 %v5160_v29  ;;  %v5000_v20 = vpop.xlane.xlu0 %4999  ;;  %v4997_v28 = vpop.xlane.xlu1 %4996  ;;  %v5210_v43 = vpack.c.bf16 %v7701_v61, %v7697_v1  ;;  %5146 = vadd.xlane.f32.xlu1 %v5145_v53  ;;  %v5157_v11 = vsel %vm868_vm2, %v7701_v61, 0.0  ;;  %v3335_v29 = vsel %vm336_vm0, %v9630_v57, 0.0 }
 0x9d3   : > { %7714 = vpow2.f32 %v5094_v6  ;;  %v5038_v39 = vsub.f32 %v9993_v40, %v5000_v20  ;;  %v5037_v0 = vsub.f32 %v9989_v27, %v4997_v28  ;;  %v3336_v53 = vadd.f32 %v3335_v29, %v9285_v62 }
 0x9d4   : > { %7716 = vpow2.f32 %v5092_v56  ;;  %7111 = vmatprep.mubr.msk.bf16.mxu1 %vm868_vm2, %v5210_v43  ;;  %v7703_v33 = vpop.eup %7702  ;;  %v7057_v56 = vpop.f32.mrf.mxu1 }
 0x9d5   : > { %v5098_v21 = vmul.f32 1.442695, %v5038_v39  ;;  %v5096_v60 = vmul.f32 1.442695, %v5037_v0  ;;  %v5163_v23 = vsel %vm868_vm2, %v7703_v33, 0.0  ;;  %v5211_v18 = vpack.c.bf16 %v7703_v33, %v7699_v9  ;;  %v7705_v25 = vpop.eup %7704 }
 0x9d6   : > { %5155 = vadd.xlane.f32.xlu0 %v5154_v31  ;;  %v5006_v24 = vpop.xlane.xlu0 %5005  ;;  %v5003_v48 = vpop.xlane.xlu1 %5002  ;;  %5164 = vadd.xlane.f32.xlu1 %v5163_v23  ;;  %v5166_v32 = vsel %vm868_vm2, %v7705_v25, 0.0  ;;  %v10116_v39 = vld [vmem:[%s10359_s6] ss:$0 sm:$0xff]  ;;  %v4670_v57 = vsel %vm336_vm0, %v7057_v56, 0.0 }
 0x9d7   : > { %v5040_v40 = vsub.f32 %v10001_v3, %v5006_v24  ;;  %v5039_v27 = vsub.f32 %v10005_v19, %v5003_v48  ;;  %7718 = vpow2.f32 %v5096_v60  ;;  %7112 = vmatmul.mubr.msk.bf16.gmra.mxu1 %vm868_vm2, %v5211_v18  ;;  %v4612_v20 = vpop.f32.mrf.mxu1  ;;  %v3367_v0 = vadd.f32 %v10116_v39, %v9475_v58 }
 0x9d8   : > { %v7707_v7 = vpop.eup %7706  ;;  %7720 = vpow2.f32 %v5098_v21  ;;  %v4640_v28 = vsel %vm336_vm0, %v4612_v20, 0.0  ;;  %v3368_v33 = vadd.f32 %v10116_v39, %v3336_v53  ;;  %v3369_v62 = vadd.f32 %v10116_v39, %v9469_v54 }
 0x9d9   : > { %v7709_v52 = vpop.eup %7708  ;;  %v5102_v10 = vmul.f32 1.442695, %v5040_v40  ;;  %v5100_v47 = vmul.f32 1.442695, %v5039_v27  ;;  %v5172_v36 = vsel %vm868_vm2, %v7707_v7, 0.0  ;;  %v7058_v43 = vpop.f32.mrf.mxu1  ;;  %v4641_v21 = vadd.f32 %v4640_v28, %v9812_v17 }
 0x9da   : > { %5173 = vadd.xlane.f32.xlu0 %v5172_v36  ;;  %v5009_v14 = vpop.xlane.xlu1 %5008  ;;  %v5212_v51 = vpack.c.bf16 %v7709_v52, %v7705_v25  ;;  %5158 = vadd.xlane.f32.xlu1 %v5157_v11  ;;  %v5169_v35 = vsel %vm868_vm2, %v7709_v52, 0.0  ;;  %v4671_v31 = vadd.f32 %v4670_v57, %v9808_v26  ;;  %v3370_v58 = vadd.f32 %v10116_v39, %v9480_v5 }
 0x9db   : > { %v5041_v3 = vsub.f32 %v10013_v38, %v5009_v14  ;;  %7722 = vpow2.f32 %v5100_v47  ;;  %v4615_v60 = vpop.f32.mrf.mxu1  ;;  %v4687_v24 = vadd.f32 %v10116_v39, %v4641_v21  ;;  %v4685_v18 = vsel %vm336_vm0, %v7058_v43, 0.0 }
 0x9dc   : > { %7115 = vmatprep.mubr.msk.bf16.mxu1 %vm868_vm2, %v5212_v51  ;;  %v7711_v19 = vpop.eup %7710  ;;  %7724 = vpow2.f32 %v5102_v10  ;;  %v4655_v23 = vsel %vm336_vm0, %v4615_v60, 0.0  ;;  %v4689_v17 = vadd.f32 %v10116_v39, %v4671_v31  ;;  %v4686_v54 = vadd.f32 %v4685_v18, %v9815_v15 }
 0x9dd   : > { %v5104_v34 = vmul.f32 1.442695, %v5041_v3  ;;  %v5175_v55 = vsel %vm868_vm2, %v7711_v19, 0.0  ;;  %v5213_v2 = vpack.c.bf16 %v7711_v19, %v7707_v7  ;;  %v7713_v42 = vpop.eup %7712  ;;  %v4656_v48 = vadd.f32 %v4655_v23, %v9818_v41 }
 0x9de   : > { %5167 = vadd.xlane.f32.xlu0 %v5166_v32  ;;  %5176 = vadd.xlane.f32.xlu1 %v5175_v55  ;;  %v5178_v22 = vsel %vm868_vm2, %v7713_v42, 0.0  ;;  %v4690_v25 = vadd.f32 %v10116_v39, %v4686_v54 }
 0x9df   : > { %7726 = vpow2.f32 %v5104_v34  ;;  %7116 = vmatmul.mubr.msk.bf16.gmra.mxu1 %vm868_vm2, %v5213_v2  ;;  %v4688_v26 = vadd.f32 %v10116_v39, %v4656_v48 }
 0x9e0   : > { %v7715_v4 = vpop.eup %7714 }
 0x9e1   : > { %v7717_v13 = vpop.eup %7716  ;;  %v5184_v38 = vsel %vm868_vm2, %v7715_v4, 0.0 }
 0x9e2   : > { %5185 = vadd.xlane.f32.xlu0 %v5184_v38  ;;  %v5214_v8 = vpack.c.bf16 %v7717_v13, %v7713_v42  ;;  %5170 = vadd.xlane.f32.xlu1 %v5169_v35  ;;  %v5181_v16 = vsel %vm868_vm2, %v7717_v13, 0.0 }
 0x9e4   : > { %7119 = vmatprep.mubr.msk.bf16.mxu1 %vm868_vm2, %v5214_v8  ;;  %v7719_v49 = vpop.eup %7718 }
 0x9e5   : > { %v7721_v30 = vpop.eup %7720  ;;  %v5187_v12 = vsel %vm868_vm2, %v7719_v49, 0.0  ;;  %v5215_v37 = vpack.c.bf16 %v7719_v49, %v7715_v4 }
 0x9e6   : > { %5179 = vadd.xlane.f32.xlu0 %v5178_v22  ;;  %5188 = vadd.xlane.f32.xlu1 %v5187_v12  ;;  %v5190_v59 = vsel %vm868_vm2, %v7721_v30, 0.0 }
 0x9e7   : > { %7120 = vmatmul.mubr.msk.bf16.gmra.mxu1 %vm868_vm2, %v5215_v37 }
 0x9e8   : > { %v7723_v63 = vpop.eup %7722 }
 0x9e9   : > { %v7725_v45 = vpop.eup %7724  ;;  %v5216_v1 = vpack.c.bf16 %v7723_v63, %v7721_v30  ;;  %v5193_v61 = vsel %vm868_vm2, %v7723_v63, 0.0 }
 0x9ea   : > { %5191 = vadd.xlane.f32.xlu0 %v5190_v59  ;;  %5182 = vadd.xlane.f32.xlu1 %v5181_v16  ;;  %v5196_v50 = vsel %vm868_vm2, %v7725_v45, 0.0 }
 0x9eb   : > { %7123 = vmatprep.mubr.msk.bf16.mxu1 %vm868_vm2, %v5216_v1 }
 0x9ec   : > { %v7727_v46 = vpop.eup %7726 }
 0x9ed   : > { %v5217_v9 = vpack.c.bf16 %v7727_v46, %v7725_v45  ;;  %v5199_v6 = vsel %vm868_vm2, %v7727_v46, 0.0 }
 0x9ee   : > { %5197 = vadd.xlane.f32.xlu0 %v5196_v50  ;;  %5194 = vadd.xlane.f32.xlu1 %v5193_v61 }
 0x9ef   : > { %7124 = vmatmul.mubr.msk.bf16.gmra.mxu1 %vm868_vm2, %v5217_v9 }
 0x9f2   : > { %5200 = vadd.xlane.f32.xlu1 %v5199_v6 }
 0xa03   : > { %3377 = vrot.lane.b32.xlu1 %v3368_v33, %s7964_s27 }
 0xa04   : > { %3375 = vrot.lane.b32.xlu0 %v3367_v0, %s7964_s27 }
 0xa07   : > { %3379 = vrot.lane.b32.xlu1 %v3369_v62, %s7964_s27 }
 0xa08   : > { %4695 = vrot.lane.b32.xlu0 %v4687_v24, %s7965_s28 }
 0xa0b   : > { %3381 = vrot.lane.b32.xlu1 %v3370_v58, %s7964_s27  ;;  %s6046_s27 = sshll.u32 %s8937_s19, 4  ;;  %s10308_s27 = int_to_ptr.vmem [resolvable:$true] %s6046_s27 }
 0xa0c   : > { %4699 = vrot.lane.b32.xlu0 %v4689_v17, %s7965_s28  ;;  %v7876_v17 = vld [vmem:[%s10358_s5 + $0x28] sm:$0xff]   ;;  %s7899_s9 = scalar_lea.vmem %s10308_s27, 512  ;;  %p7906_p5 = scmp.lt.s32.totalorder %s10308_s27, %s7904_s20 }
 0xa0d   : > { %p7900_p2 = scmp.ne.s32.totalorder %s10308_s27, %s7899_s9  ;;  %p7907_p6 = scmp.lt.s32.totalorder %s7905_s21, %s7899_s9 }
 0xa0f   : > { %4697 = vrot.lane.b32.xlu1 %v4688_v26, %s7965_s28  ;;  %v7877_v26 = vld [vmem:[%s10358_s5 + $0x20] sm:$0xff]   ;;  %p7901_p3 = pnand %p7900_p2, %p8051_p10  ;;  %p7908_p7 = por %p7907_p6, %p7906_p5 }
 0xa11   : > { %p7902_p4 = pneg %p7901_p3 }
 0xa13   : > { %4701 = vrot.lane.b32.xlu1 %v4690_v25, %s7965_s28  ;;  %p7909_p8 = pnand %p7908_p7, %p7902_p4 }
 0xa3b   : > { %v5114_v40 = vpop.xlane.xlu0 %5113 }
 0xa3f   : > { %v5108_v27 = vpop.xlane.xlu0 %5107  ;;  %v5117_v7 = vpop.xlane.xlu1 %5116 }
 0xa40   : > { %7728 = vrcp.f32 %v5108_v27 }
 0xa41   : > { %7730 = vrcp.f32 %v5117_v7 }
 0xa43   : > { %v5126_v5 = vpop.xlane.xlu0 %5125  ;;  %v5111_v52 = vpop.xlane.xlu1 %5110 }
 0xa44   : > { %7732 = vrcp.f32 %v5111_v52 }
 0xa45   : > { %7734 = vrcp.f32 %v5114_v40 }
 0xa47   : > { %v5120_v10 = vpop.xlane.xlu0 %5119  ;;  %v5129_v47 = vpop.xlane.xlu1 %5128 }
 0xa48   : > { %7736 = vrcp.f32 %v5120_v10 }
 0xa49   : > { %7738 = vrcp.f32 %v5129_v47 }
 0xa4b   : > { %v5138_v41 = vpop.xlane.xlu0 %5137  ;;  %v5123_v36 = vpop.xlane.xlu1 %5122 }
 0xa4c   : > { %7740 = vrcp.f32 %v5123_v36  ;;  %v7878_v36 = vld [vmem:[%s10358_s5 + $0x48] sm:$0xff]  }
 0xa4d   : > { %7742 = vrcp.f32 %v5126_v5  ;;  %v7729_v1 = vpop.eup %7728 }
 0xa4e   : > { %v7731_v9 = vpop.eup %7730 }
 0xa4f   : > { %v5132_v11 = vpop.xlane.xlu0 %5131  ;;  %v5141_v14 = vpop.xlane.xlu1 %5140 }
 0xa50   : > { %7744 = vrcp.f32 %v5132_v11 }
 0xa51   : > { %v7733_v61 = vpop.eup %7732  ;;  %7746 = vrcp.f32 %v5141_v14 }
 0xa52   : > { %v7735_v29 = vpop.eup %7734 }
 0xa53   : > { %v10136_v51 = vpop.xlane.xlu0 %5149  ;;  %v5135_v15 = vpop.xlane.xlu1 %5134 }
 0xa54   : > { %7748 = vrcp.f32 %v5135_v15 }
 0xa55   : > { %7750 = vrcp.f32 %v5138_v41  ;;  %v7737_v31 = vpop.eup %7736 }
 0xa56   : > { %v7739_v58 = vpop.eup %7738 }
 0xa57   : > { %v10138_v3 = vpop.xlane.xlu0 %5143  ;;  %v10140_v19 = vpop.xlane.xlu1 %5152 }
 0xa58   : > { %7752 = vrcp.f32 %v10138_v3 }
 0xa59   : > { %v7741_v48 = vpop.eup %7740  ;;  %7754 = vrcp.f32 %v10140_v19 }
 0xa5a   : > { %v7743_v25 = vpop.eup %7742 }
 0xa5b   : > { %v10142_v34 = vpop.xlane.xlu0 %5161  ;;  %v10144_v32 = vpop.xlane.xlu1 %5146 }
 0xa5c   : > { %7756 = vrcp.f32 %v10144_v32 }
 0xa5d   : > { %7758 = vrcp.f32 %v10136_v51  ;;  %v7745_v11 = vpop.eup %7744 }
 0xa5e   : > { %v7747_v3 = vpop.eup %7746 }
 0xa5f   : > { %v10146_v55 = vpop.xlane.xlu0 %5155  ;;  %v10148_v2 = vpop.xlane.xlu1 %5164 }
 0xa60   : > { %7760 = vrcp.f32 %v10146_v55  ;;  %v7880_v55 = vld [vmem:[%s10358_s5 + $0x58] sm:$0xff]  }
 0xa61   : > { %v7749_v51 = vpop.eup %7748  ;;  %7762 = vrcp.f32 %v10148_v2 }
 0xa63   : > { %v10150_v42 = vpop.xlane.xlu0 %5173  ;;  %v10152_v4 = vpop.xlane.xlu1 %5158 }
 0xa64   : > { %7764 = vrcp.f32 %v10152_v4 }
 0xa65   : > { %7766 = vrcp.f32 %v10142_v34  ;;  %v7881_v34 = vld [vmem:[%s10358_s5 + $0x40] sm:$0xff]  }
 0xa67   : > { %v10154_v13 = vpop.xlane.xlu0 %5167  ;;  %v10156_v38 = vpop.xlane.xlu1 %5176 }
 0xa68   : > { %7768 = vrcp.f32 %v10154_v13 }
 0xa69   : > { %7770 = vrcp.f32 %v10156_v38 }
 0xa6b   : > { %v10158_v35 = vpop.xlane.xlu0 %5185  ;;  %v10160_v8 = vpop.xlane.xlu1 %5170 }
 0xa6c   : > { %7772 = vrcp.f32 %v10160_v8 }
 0xa6d   : > { %7774 = vrcp.f32 %v10150_v42  ;;  %v7883_v42 = vld [vmem:[%s10358_s5 + $0x50] sm:$0xff]  }
 0xa6f   : > { %v10162_v49 = vpop.xlane.xlu0 %5179  ;;  %v10164_v22 = vpop.xlane.xlu1 %5188 }
 0xa70   : > { %7776 = vrcp.f32 %v10162_v49 }
 0xa71   : > { %7778 = vrcp.f32 %v10164_v22 }
 0xa73   : > { %v10166_v30 = vpop.xlane.xlu0 %5191  ;;  %v10168_v12 = vpop.xlane.xlu1 %5182 }
 0xa74   : > { %7780 = vrcp.f32 %v10168_v12 }
 0xa77   : > { %v10170_v37 = vpop.xlane.xlu0 %5197  ;;  %v7097_v63 = vpop.f32.mrf.mxu1 }
 0xa78   : > { %v10172_v59 = vpop.xlane.xlu1 %5194  ;;  %v5461_v43 = vmul.f32 %v7735_v29, %v7097_v63  ;;  %v7879_v63 = vld [vmem:[%s10358_s5 + $0x30] sm:$0xff]  }
 0xa79   : > { %v5300_v45 = vpop.f32.mrf.mxu1 }
 0xa7a   : > { %v5459_v20 = vmul.f32 %v7729_v1, %v5300_v45  ;;  %v7751_v45 = vpop.eup %7750  ;;  %7782 = vrcp.f32 %v10158_v35  ;;  %v7885_v35 = vld [vmem:[%s10358_s5 + $0x60] sm:$0xff]  }
 0xa7b   : > { %v3376_v16 = vpop.permute.xlu0 %3375  ;;  %v7098_v46 = vpop.f32.mrf.mxu1 }
 0xa7c   : > { %3388 = vst.msk [vmem:[%s8937_s19] sm:$0xff] %vm3387_vm6, %v3376_v16  ;;  %v10176_v50 = vpop.xlane.xlu1 %5200  ;;  %v5462_v6 = vmul.f32 %v7731_v9, %v7098_v46  ;;  %v7753_v2 = vpop.eup %7752  ;;  %7784 = vrcp.f32 %v10166_v30 }
 0xa7d   : > { %v5303_v56 = vpop.f32.mrf.mxu1  ;;  %v7755_v4 = vpop.eup %7754  ;;  %7786 = vrcp.f32 %v10176_v50 }
 0xa7e   : > { %v5460_v53 = vmul.f32 %v7733_v61, %v5303_v56  ;;  %v5492_v57 = vpack.c.bf16 %v5462_v6, %v5461_v43 }
 0xa7f   : > { %v4696_v28 = vpop.permute.xlu0 %4695  ;;  %v7101_v0 = vpop.f32.mrf.mxu1 }
 0xa80   : > { %4708 = vst.msk [vmem:[%s8937_s19] sm:$0xff] %vm4707_vm7, %v4696_v28  ;;  %v3378_v33 = vpop.permute.xlu1 %3377  ;;  %v5491_v21 = vpack.c.bf16 %v5460_v53, %v5459_v20  ;;  %v5465_v7 = vmul.f32 %v7743_v25, %v7101_v0  ;;  %v7757_v20 = vpop.eup %7756  ;;  %7788 = vrcp.f32 %v10172_v59  ;;  %v7886_v59 = vld [vmem:[%s10358_s5 + $0x70] sm:$0xff]  }
 0xa81   : > { %3389 = vst.msk [vmem:[%s8937_s19 + $0x8] sm:$0xff] %vm3387_vm6, %v3378_v33  ;;  %v5316_v60 = vpop.f32.mrf.mxu1  ;;  %v7759_v43 = vpop.eup %7758  ;;  %7790 = vrcp.f32 %v10170_v37 }
 0xa82   : > { %7131 = vmatprep.mubr.msk.bf16.mxu0 %vm336_vm0, %v5491_v21  ;;  %v5463_v40 = vmul.f32 %v7737_v31, %v5316_v60  ;;  %v7761_v13 = vpop.eup %7760 }
 0xa83   : > { %v4700_v62 = vpop.permute.xlu0 %4699  ;;  %v7102_v24 = vpop.f32.mrf.mxu1  ;;  %7132 = vmatmul.mubr.msk.bf16.vlgmr.msra.gmra.mxu0 %vm336_vm0, %v5492_v57 }
 0xa84   : > { %v3380_v23 = vpop.permute.xlu1 %3379  ;;  %7144 = vmatpush3.bf16.msra.mxu0 %v7876_v17  ;;  %v5466_v18 = vmul.f32 %v7739_v58, %v7102_v24  ;;  %v7882_v24 = vld [vmem:[%s10358_s5 + $0x68] sm:$0xff]   ;;  %v7763_v38 = vpop.eup %7762 }
 0xa85   : > { %3390 = vst.msk [vmem:[%s8937_s19 + $0x10] sm:$0xff] %vm3387_vm6, %v3380_v23  ;;  %v5319_v54 = vpop.f32.mrf.mxu1  ;;  %7145 = vmatprep.subr.bf16.mxu0 %v7877_v26  ;;  %v7765_v8 = vpop.eup %7764 }
 0xa86   : > { %4710 = vst.msk [vmem:[%s8937_s19 + $0x10] sm:$0xff] %vm4707_vm7, %v4700_v62  ;;  %v5464_v27 = vmul.f32 %v7741_v48, %v5319_v54  ;;  %v5494_v47 = vpack.c.bf16 %v5466_v18, %v5465_v7  ;;  %v7767_v48 = vpop.eup %7766 }
 0xa87   : > { %v7105_v5 = vpop.f32.mrf.mxu1  ;;  %v7769_v49 = vpop.eup %7768 }
 0xa88   : > { %v3382_v52 = vpop.permute.xlu1 %3381  ;;  %v5493_v10 = vpack.c.bf16 %v5464_v27, %v5463_v40  ;;  %7146 = vmatpush3.bf16.msra.mxu0 %v7877_v26  ;;  %v5469_v46 = vmul.f32 %v7751_v45, %v7105_v5  ;;  %v7884_v5 = vld [vmem:[%s10358_s5 + $0x78] sm:$0xff]   ;;  %v7771_v22 = vpop.eup %7770 }
 0xa89   : > { %3391 = vst.msk [vmem:[%s8937_s19 + $0x18] sm:$0xff] %vm3387_vm6, %v3382_v52  ;;  %v5332_v41 = vpop.f32.mrf.mxu1  ;;  %7159 = vmatprep.subr.bf16.mxu0 %v7878_v36  ;;  %v7773_v12 = vpop.eup %7772 }
 0xa8a   : > { %7139 = vmatprep.mubr.msk.bf16.mxu1 %vm336_vm0, %v5493_v10  ;;  %v5467_v16 = vmul.f32 %v7745_v11, %v5332_v41  ;;  %v7775_v41 = vpop.eup %7774 }
 0xa8b   : > { %v7106_v14 = vpop.f32.mrf.mxu1  ;;  %7140 = vmatmul.mubr.msk.bf16.vlgmr.msra.gmra.mxu1 %vm336_vm0, %v5494_v47 }
 0xa8c   : > { %v4698_v15 = vpop.permute.xlu1 %4697  ;;  %7152 = vmatpush3.bf16.msra.mxu1 %v10053_v44  ;;  %v5470_v19 = vmul.f32 %v7747_v3, %v7106_v14 }
 0xa8d   : > { %4709 = vst.msk [vmem:[%s8937_s19 + $0x8] sm:$0xff] %vm4707_vm7, %v4698_v15  ;;  %v5335_v32 = vpop.f32.mrf.mxu1  ;;  %7153 = vmatprep.subr.bf16.mxu1 %v7879_v63 }
 0xa8e   : > { %v5468_v1 = vmul.f32 %v7749_v51, %v5335_v32  ;;  %v5496_v6 = vpack.c.bf16 %v5470_v19, %v5469_v46  ;;  %v7777_v32 = vpop.eup %7776 }
 0xa8f   : > { %v7109_v9 = vpop.f32.mrf.mxu1  ;;  %v7779_v30 = vpop.eup %7778 }
 0xa90   : > { %v4702_v61 = vpop.permute.xlu1 %4701  ;;  %v5495_v44 = vpack.c.bf16 %v5468_v1, %v5467_v16  ;;  %7154 = vmatpush3.bf16.msra.mxu1 %v7879_v63  ;;  %v5473_v21 = vmul.f32 %v7759_v43, %v7109_v9  ;;  %v7781_v45 = vpop.eup %7780 }
 0xa91   : > { %4711 = vst.msk [vmem:[%s8937_s19 + $0x18] sm:$0xff] %vm4707_vm7, %v4702_v61  ;;  %v5348_v56 = vpop.f32.mrf.mxu1  ;;  %7167 = vmatprep.subr.bf16.mxu1 %v7880_v55  ;;  %v7783_v1 = vpop.eup %7782 }
 0xa92   : > { %7147 = vmatprep.mubr.msk.bf16.mxu0 %vm336_vm0, %v5495_v44  ;;  %v5471_v0 = vmul.f32 %v7753_v2, %v5348_v56 }
 0xa93   : > { %v7110_v29 = vpop.f32.mrf.mxu1  ;;  %7148 = vmatmul.mubr.msk.bf16.vlgmr.msra.gmra.mxu0 %vm336_vm0, %v5496_v6 }
 0xa94   : > { %7160 = vmatpush3.bf16.msra.mxu0 %v7878_v36  ;;  %v5474_v53 = vmul.f32 %v7755_v4, %v7110_v29 }
 0xa95   : > { %v5351_v28 = vpop.f32.mrf.mxu1  ;;  %7161 = vmatprep.subr.bf16.mxu0 %v7881_v34 }
 0xa96   : > { %v5472_v33 = vmul.f32 %v7757_v20, %v5351_v28  ;;  %v5498_v62 = vpack.c.bf16 %v5474_v53, %v5473_v21 }
 0xa97   : > { %v7113_v57 = vpop.f32.mrf.mxu1 }
 0xa98   : > { %v5497_v60 = vpack.c.bf16 %v5472_v33, %v5471_v0  ;;  %7162 = vmatpush3.bf16.msra.mxu0 %v7881_v34  ;;  %v5477_v26 = vmul.f32 %v7767_v48, %v7113_v57 }
 0xa99   : > { %v5364_v31 = vpop.f32.mrf.mxu1  ;;  %7175 = vmatprep.subr.bf16.mxu0 %v7882_v24 }
 0xa9a   : > { %7155 = vmatprep.mubr.msk.bf16.mxu1 %vm336_vm0, %v5497_v60  ;;  %v5475_v18 = vmul.f32 %v7761_v13, %v5364_v31 }
 0xa9b   : > { %v7114_v23 = vpop.f32.mrf.mxu1  ;;  %7156 = vmatmul.mubr.msk.bf16.vlgmr.msra.gmra.mxu1 %vm336_vm0, %v5498_v62 }
 0xa9c   : > { %7168 = vmatpush3.bf16.msra.mxu1 %v7880_v55  ;;  %v5478_v58 = vmul.f32 %v7763_v38, %v7114_v23  ;;  %v7785_v55 = vpop.eup %7784 }
 0xa9d   : > { %v5367_v17 = vpop.f32.mrf.mxu1  ;;  %7169 = vmatprep.subr.bf16.mxu1 %v7883_v42  ;;  %v7787_v29 = vpop.eup %7786 }
 0xa9e   : > { %v5476_v54 = vmul.f32 %v7765_v8, %v5367_v17  ;;  %v5500_v27 = vpack.c.bf16 %v5478_v58, %v5477_v26  ;;  %v7789_v4 = vpop.eup %7788 }
 0xa9f   : > { %v7117_v25 = vpop.f32.mrf.mxu1  ;;  %v7791_v28 = vpop.eup %7790 }
 0xaa0   : > { %v5499_v40 = vpack.c.bf16 %v5476_v54, %v5475_v18  ;;  %7170 = vmatpush3.bf16.msra.mxu1 %v7883_v42  ;;  %v5481_v14 = vmul.f32 %v7775_v41, %v7117_v25 }
 0xaa1   : > { %v5380_v7 = vpop.f32.mrf.mxu1  ;;  %7183 = vmatprep.subr.bf16.mxu1 %v7884_v5 }
 0xaa2   : > { %7163 = vmatprep.mubr.msk.bf16.mxu0 %vm336_vm0, %v5499_v40  ;;  %v5479_v36 = vmul.f32 %v7769_v49, %v5380_v7 }
 0xaa3   : > { %v7118_v52 = vpop.f32.mrf.mxu1  ;;  %7164 = vmatmul.mubr.msk.bf16.vlgmr.msra.gmra.mxu0 %vm336_vm0, %v5500_v27 }
 0xaa4   : > { %7176 = vmatpush3.bf16.msra.mxu0 %v7882_v24  ;;  %v5482_v10 = vmul.f32 %v7771_v22, %v7118_v52 }
 0xaa5   : > { %v5383_v47 = vpop.f32.mrf.mxu1  ;;  %7177 = vmatprep.subr.bf16.mxu0 %v7885_v35 }
 0xaa6   : > { %v5480_v11 = vmul.f32 %v7773_v12, %v5383_v47  ;;  %v5502_v51 = vpack.c.bf16 %v5482_v10, %v5481_v14 }
 0xaa7   : > { %v7121_v15 = vpop.f32.mrf.mxu1 }
 0xaa8   : > { %v5501_v3 = vpack.c.bf16 %v5480_v11, %v5479_v36  ;;  %7178 = vmatpush3.bf16.msra.mxu0 %v7885_v35  ;;  %v5485_v9 = vmul.f32 %v7783_v1, %v7121_v15 }
 0xaa9   : > { %v5396_v19 = vpop.f32.mrf.mxu1 }
 0xaaa   : > { %7171 = vmatprep.mubr.msk.bf16.mxu1 %vm336_vm0, %v5501_v3  ;;  %v5483_v37 = vmul.f32 %v7777_v32, %v5396_v19 }
 0xaab   : > { %v7122_v63 = vpop.f32.mrf.mxu1  ;;  %7172 = vmatmul.mubr.msk.bf16.vlgmr.msra.gmra.mxu1 %vm336_vm0, %v5502_v51 }
 0xaac   : > { %7184 = vmatpush3.bf16.msra.mxu1 %v7884_v5  ;;  %v5486_v50 = vmul.f32 %v7779_v30, %v7122_v63 }
 0xaad   : > { %v5399_v16 = vpop.f32.mrf.mxu1  ;;  %7185 = vmatprep.subr.bf16.mxu1 %v7886_v59 }
 0xaae   : > { %v5484_v46 = vmul.f32 %v7781_v45, %v5399_v16  ;;  %v5504_v6 = vpack.c.bf16 %v5486_v50, %v5485_v9 }
 0xaaf   : > { %v7125_v61 = vpop.f32.mrf.mxu1 }
 0xab0   : > { %v5503_v44 = vpack.c.bf16 %v5484_v46, %v5483_v37  ;;  %7186 = vmatpush3.bf16.msra.mxu1 %v7886_v59  ;;  %v5489_v0 = vmul.f32 %v7791_v28, %v7125_v61 }
 0xab1   : > { %v5412_v56 = vpop.f32.mrf.mxu1 }
 0xab2   : > { %7179 = vmatprep.mubr.msk.bf16.mxu0 %vm336_vm0, %v5503_v44  ;;  %v5487_v34 = vmul.f32 %v7785_v55, %v5412_v56 }
 0xab3   : > { %v7126_v2 = vpop.f32.mrf.mxu1  ;;  %7180 = vmatmul.mubr.msk.bf16.vlgmr.msra.gmra.mxu0 %vm336_vm0, %v5504_v6 }
 0xab4   : > { %v5490_v20 = vmul.f32 %v7787_v29, %v7126_v2 }
 0xab5   : > { %v5415_v53 = vpop.f32.mrf.mxu1 }
 0xab6   : > { %v5488_v43 = vmul.f32 %v7789_v4, %v5415_v53  ;;  %v5506_v21 = vpack.c.bf16 %v5490_v20, %v5489_v0 }
 0xab8   : > { %v5505_v33 = vpack.c.bf16 %v5488_v43, %v5487_v34 }
 0xaba   : > { %7187 = vmatprep.mubr.msk.bf16.mxu1 %vm336_vm0, %v5505_v33 }
 0xabb   : > { %7188 = vmatmul.mubr.msk.bf16.vlgmr.msra.gmra.mxu1 %vm336_vm0, %v5506_v21 }
 0xb43   : > { %v7133_v57 = vpop.f32.mrf.mxu0 }
 0xb44   : > { %v5977_v41 = vsel %vm336_vm0, %v7133_v57, 0.0 }
 0xb45   : > { %v5547_v60 = vpop.f32.mrf.mxu0 }
 0xb46   : > { %v5947_v22 = vsel %vm336_vm0, %v5547_v60, 0.0 }
 0xb47   : > { %v7134_v62 = vpop.f32.mrf.mxu0 }
 0xb48   : > { %v5992_v16 = vsel %vm336_vm0, %v7134_v62, 0.0 }
 0xb49   : > { %v5550_v24 = vpop.f32.mrf.mxu0 }
 0xb4a   : > { %v5962_v15 = vsel %vm336_vm0, %v5550_v24, 0.0 }
 0xb4b   : > { %v7141_v31 = vpop.f32.mrf.mxu1 }
 0xb4c   : > { %v5978_v12 = vsel %vm336_vm0, %v7141_v31, 0.0 }
 0xb4d   : > { %v5602_v13 = vpop.f32.mrf.mxu1  ;;  %v5979_v3 = vadd.f32 %v5978_v12, %v5977_v41 }
 0xb4e   : > { %v5948_v5 = vsel %vm336_vm0, %v5602_v13, 0.0 }
 0xb4f   : > { %v7142_v38 = vpop.f32.mrf.mxu1  ;;  %v5949_v47 = vadd.f32 %v5948_v5, %v5947_v22 }
 0xb50   : > { %v5993_v63 = vsel %vm336_vm0, %v7142_v38, 0.0 }
 0xb51   : > { %v5605_v58 = vpop.f32.mrf.mxu1  ;;  %v5994_v56 = vadd.f32 %v5993_v63, %v5992_v16 }
 0xb52   : > { %v5963_v36 = vsel %vm336_vm0, %v5605_v58, 0.0 }
 0xb53   : > { %v7149_v23 = vpop.f32.mrf.mxu0  ;;  %v5964_v59 = vadd.f32 %v5963_v36, %v5962_v15 }
 0xb54   : > { %v5980_v11 = vsel %vm336_vm0, %v7149_v23, 0.0 }
 0xb55   : > { %v5657_v8 = vpop.f32.mrf.mxu0  ;;  %v5981_v1 = vadd.f32 %v5980_v11, %v5979_v3 }
 0xb56   : > { %v5950_v10 = vsel %vm336_vm0, %v5657_v8, 0.0 }
 0xb57   : > { %v7150_v17 = vpop.f32.mrf.mxu0  ;;  %v5951_v51 = vadd.f32 %v5950_v10, %v5949_v47 }
 0xb58   : > { %v5995_v9 = vsel %vm336_vm0, %v7150_v17, 0.0 }
 0xb59   : > { %v5660_v48 = vpop.f32.mrf.mxu0  ;;  %v5996_v43 = vadd.f32 %v5995_v9, %v5994_v56 }
 0xb5a   : > { %v5965_v30 = vsel %vm336_vm0, %v5660_v48, 0.0 }
 0xb5b   : > { %v7157_v42 = vpop.f32.mrf.mxu1  ;;  %v5966_v55 = vadd.f32 %v5965_v30, %v5964_v59 }
 0xb5c   : > { %v5982_v45 = vsel %vm336_vm0, %v7157_v42, 0.0 }
 0xb5d   : > { %v5712_v18 = vpop.f32.mrf.mxu1  ;;  %v5983_v2 = vadd.f32 %v5982_v45, %v5981_v1 }
 0xb5e   : > { %v5952_v14 = vsel %vm336_vm0, %v5712_v18, 0.0 }
 0xb5f   : > { %v7158_v26 = vpop.f32.mrf.mxu1  ;;  %v5953_v37 = vadd.f32 %v5952_v14, %v5951_v51 }
 0xb60   : > { %v5997_v20 = vsel %vm336_vm0, %v7158_v26, 0.0 }
 0xb61   : > { %v5715_v40 = vpop.f32.mrf.mxu1  ;;  %v5998_v13 = vadd.f32 %v5997_v20, %v5996_v43 }
 0xb62   : > { %v5967_v61 = vsel %vm336_vm0, %v5715_v40, 0.0 }
 0xb63   : > { %v7165_v54 = vpop.f32.mrf.mxu0  ;;  %v5968_v0 = vadd.f32 %v5967_v61, %v5966_v55 }
 0xb64   : > { %v5984_v44 = vsel %vm336_vm0, %v7165_v54, 0.0 }
 0xb65   : > { %v5767_v25 = vpop.f32.mrf.mxu0  ;;  %v5985_v33 = vadd.f32 %v5984_v44, %v5983_v2 }
 0xb66   : > { %v5954_v50 = vsel %vm336_vm0, %v5767_v25, 0.0 }
 0xb67   : > { %v7166_v27 = vpop.f32.mrf.mxu0  ;;  %v5955_v29 = vadd.f32 %v5954_v50, %v5953_v37 }
 0xb68   : > { %v5999_v62 = vsel %vm336_vm0, %v7166_v27, 0.0 }
 0xb69   : > { %v5770_v49 = vpop.f32.mrf.mxu0  ;;  %v6000_v54 = vadd.f32 %v5999_v62, %v5998_v13 }
 0xb6a   : > { %v5969_v53 = vsel %vm336_vm0, %v5770_v49, 0.0 }
 0xb6b   : > { %v7173_v7 = vpop.f32.mrf.mxu1  ;;  %v5970_v23 = vadd.f32 %v5969_v53, %v5968_v0 }
 0xb6c   : > { %v5986_v28 = vsel %vm336_vm0, %v7173_v7, 0.0 }
 0xb6d   : > { %v5822_v52 = vpop.f32.mrf.mxu1  ;;  %v5987_v38 = vadd.f32 %v5986_v28, %v5985_v33 }
 0xb6e   : > { %v5956_v6 = vsel %vm336_vm0, %v5822_v52, 0.0 }
 0xb6f   : > { %v7174_v19 = vpop.f32.mrf.mxu1  ;;  %v5957_v21 = vadd.f32 %v5956_v6, %v5955_v29 }
 0xb70   : > { %v6001_v17 = vsel %vm336_vm0, %v7174_v19, 0.0 }
 0xb71   : > { %v5825_v4 = vpop.f32.mrf.mxu1  ;;  %v6002_v5 = vadd.f32 %v6001_v17, %v6000_v54 }
 0xb72   : > { %v5971_v31 = vsel %vm336_vm0, %v5825_v4, 0.0 }
 0xb73   : > { %v7181_v35 = vpop.f32.mrf.mxu0  ;;  %v5972_v26 = vadd.f32 %v5971_v31, %v5970_v23 }
 0xb74   : > { %v5988_v24 = vsel %vm336_vm0, %v7181_v35, 0.0 }
 0xb75   : > { %v5877_v32 = vpop.f32.mrf.mxu0  ;;  %v5989_v25 = vadd.f32 %v5988_v24, %v5987_v38 }
 0xb76   : > { %v5958_v34 = vsel %vm336_vm0, %v5877_v32, 0.0 }
 0xb77   : > { %v7182_v46 = vpop.f32.mrf.mxu0  ;;  %v5959_v8 = vadd.f32 %v5958_v34, %v5957_v21 }
 0xb78   : > { %v6003_v7 = vsel %vm336_vm0, %v7182_v46, 0.0 }
 0xb79   : > { %v5880_v57 = vpop.f32.mrf.mxu0  ;;  %v6004_v35 = vadd.f32 %v6003_v7, %v6002_v5 }
 0xb7a   : > { %v5973_v42 = vsel %vm336_vm0, %v5880_v57, 0.0 }
 0xb7b   : > { %v7189_v60 = vpop.f32.mrf.mxu1  ;;  %v5974_v49 = vadd.f32 %v5973_v42, %v5972_v26 }
 0xb7c   : > { %v5990_v48 = vsel %vm336_vm0, %v7189_v60, 0.0 }
 0xb7d   : > { %v5932_v58 = vpop.f32.mrf.mxu1  ;;  %v5991_v52 = vadd.f32 %v5990_v48, %v5989_v25 }
 0xb7e   : > { %v5960_v18 = vsel %vm336_vm0, %v5932_v58, 0.0 }
 0xb7f   : > { %v5961_v40 = vadd.f32 %v5960_v18, %v5959_v8  ;;  %v7190_v27 = vpop.f32.mrf.mxu1  ;;  %v6009_v36 = vadd.f32 %v10116_v39, %v5991_v52 }
 0xb80   : > { %v6005_v10 = vsel %vm336_vm0, %v7190_v27, 0.0 }
 0xb81   : > { %v6007_v22 = vadd.f32 %v10116_v39, %v5961_v40  ;;  %v5935_v12 = vpop.f32.mrf.mxu1  ;;  %v6006_v11 = vadd.f32 %v6005_v10, %v6004_v35 }
 0xb82   : > { %v5975_v47 = vsel %vm336_vm0, %v5935_v12, 0.0 }
 0xb83   : > { %v5976_v41 = vadd.f32 %v5975_v47, %v5974_v49  ;;  %6015 = vrot.lane.b32.xlu0 %v6007_v22, %s7966_s25  ;;  %v6010_v15 = vadd.f32 %v10116_v39, %v6006_v11 }
 0xb85   : > { %v6008_v14 = vadd.f32 %v10116_v39, %v5976_v41 }
 0xb87   : > { %6019 = vrot.lane.b32.xlu0 %v6009_v36, %s7966_s25  ;;  %6017 = vrot.lane.b32.xlu1 %v6008_v14, %s7966_s25 }
 0xb8b   : > { %6021 = vrot.lane.b32.xlu1 %v6010_v15, %s7966_s25 }
 0xbf5   : > { %v6016_v3 = vpop.permute.xlu0 %6015 }
 0xbf6   : > { %6028 = vst.msk [vmem:[%s8937_s19] sm:$0xff] %vm6027_vm8, %v6016_v3 }
 0xbf9   : > { %v6020_v51 = vpop.permute.xlu0 %6019  ;;  %v6018_v19 = vpop.permute.xlu1 %6017 }
 0xbfa   : > { %6030 = vst.msk [vmem:[%s8937_s19 + $0x10] sm:$0xff] %vm6027_vm8, %v6020_v51  ;;  %6029 = vst.msk [vmem:[%s8937_s19 + $0x8] sm:$0xff] %vm6027_vm8, %v6018_v19 }
 0xbfd   : > { %v6022_v39 = vpop.permute.xlu1 %6021 }
 0xbfe   : > { %6031 = vst.msk [vmem:[%s8937_s19 + $0x18] sm:$0xff] %vm6027_vm8, %v6022_v39 }
 0xbff   : > { %7912 = shalt.err (!%p7909_p8)
}
 0xc00   : > { %s7913_s10 = scalar_lea.hbm %s10306_s13, 512  ;;  %s7917_s23 = scalar_lea.hbm %s10360_s7, 1024 }
 0xc01   : > { %p7914_p9 = scmp.ne.s32.totalorder %s10306_s13, %s7913_s10  ;;  %p7918_p0 = scmp.lt.s32.totalorder %s10306_s13, %s10360_s7 }
 0xc02   : > { %p7919_p1 = scmp.lt.s32.totalorder %s7917_s23, %s7913_s10 }
 0xc03   : > { %p7915_p12 = pnand %p7914_p9, %p8051_p10 }
 0xc04   : > { %p7920_p2 = por %p7919_p1, %p7918_p0 }
 0xc05   : > { %p7916_p13 = pneg %p7915_p12 }
 0xc07   : > { %p7921_p3 = pnand %p7920_p2, %p7916_p13 }
 0xc09   : > { %7924 = shalt.err (!%p7921_p3)
}
 0xc0a   : > { %s7968_s26 = smov 128   ;;  %s7969_s28 = smov 8  }
 0xc0b   : > { %7195 = dma.vmem_to_hbm [thread:$0]  (%p8051_p10), %s10308_s27, 512, %s10306_s13, %s10313_s18, %s7968_s26, %s7968_s26, %s7969_s28  }
 0xc0c PF: > { %p7201_p4 = scmp.ge.s32.totalorder %s7961_s8, 2  ;;  %s6061_s12 = sand.u32 1, %s7949_s29  }
 0xc0d   : > { %s6062_s9 = scalar_lea.sflag [#allocation5], %s6061_s12 }
 0xc0e   : > { %p7198_p5 = pnand %p7201_p4, %p8055_p11 }
 0xc10   : > { %p7199_p6 = pneg %p7198_p5 }
 0xc12   : > { %7944 = dma.done.wait (%p7199_p6), %s6062_s9, 512  }
 0xc13   : > { %7946 = vsyncadd (%p7199_p6), %s6062_s9, 4294966784  ;;  %p23_p7 = scmp.ge.s32.totalorder %s8038_s11, 4   ;;  %s10371_s29 = smov %s7953_s30 }
 0xc14   : > { %s10372_s30 = smov %s7957_s0  ;;  %s10373_s0 = smov %s8049_s14 }
 0xc15   : > { %s10374_s8 = smov %s8038_s11  ;;  %25 = sbr.rel (!%p23_p7) target bundleno = 18 (0x12), region = 79 }
 0xc1a   :  { %6067 = vsyncpa [#allocation5], 1 }
 0xc1b   :  { %6069 = vsyncpa [#allocation5 + $0x1], 1 }

</bundles_post_ra>
